<compile_context>
chip_gen: v5e
topology: v5e:2x2
jax: 0.10.0
libtpu: 0.0.40
codegen_flags: <defaults>
</compile_context>

<pallas_src>
import functools

import jax
import jax.numpy as jnp
from jax import lax
from jax.experimental import pallas as pl
from jax.experimental.pallas import tpu as pltpu


# ---------------------------------------------------------------------------
# host-side helpers
# ---------------------------------------------------------------------------
def _border_masks(h, w):
    """(9, h*w) float32 validity masks for the 9 taps of a 3x3 window with
    padding=1, applied on an h*w-flattened lane axis."""
    hw = h * w
    p = jnp.arange(hw, dtype=jnp.int32)
    row = p // w
    col = p % w
    masks = []
    for dh in range(3):
        for dw in range(3):
            ok = ((row + dh - 1 >= 0) & (row + dh - 1 < h) &
                  (col + dw - 1 >= 0) & (col + dw - 1 < w))
            masks.append(ok.astype(jnp.float32))
    return jnp.stack(masks, axis=0)                            # (9, hw)


def _attention_weight_matrix(w_p1, n_segment):
    """Fold the Conv3d(2->1, 3x3x3, pad 1) weights into an (Mpad, 9*srows_pad)
    matrix acting on the stacked+shifted per-frame channel stats.

    Row m (< T) is output frame m; column k*srows_pad + ci*T + s multiplies the
    spatial-tap-k shifted stats of channel ci (0=avg, 1=max) of input frame s.
    """
    T = n_segment
    srows = 2 * T
    srows_pad = max(8, ((srows + 7) // 8) * 8)
    m_pad = max(8, ((T + 7) // 8) * 8)
    t_idx = jnp.arange(T)[:, None]
    s_idx = jnp.arange(T)[None, :]
    dt = s_idx - t_idx + 1                                     # (T, T)
    valid = ((dt >= 0) & (dt < 3)).astype(w_p1.dtype)
    dt_c = jnp.clip(dt, 0, 2)
    # wg[ci, t, s, dh, dw] = w_p1[ci, dt(t,s), dh, dw] * valid(t, s)
    wg = w_p1[:, dt_c, :, :] * valid[None, :, :, None, None]   # (2, T, T, 3, 3)
    wb = jnp.transpose(wg, (1, 3, 4, 0, 2)).reshape(T, 9, srows)
    wb = jnp.pad(wb, ((0, m_pad - T), (0, 0), (0, srows_pad - srows)))
    return wb.reshape(m_pad, 9 * srows_pad).astype(jnp.float32)


# ---------------------------------------------------------------------------
# fused per-clip kernel
# ---------------------------------------------------------------------------
def _tap(val, off, period, mask_row):
    """Shift `val` (rows, period*k) by spatial tap offset `off` (roll over the
    lane axis) and zero out-of-bounds taps with the precomputed border mask."""
    shift = (-off) % period
    rolled = val if shift == 0 else pltpu.roll(val, shift, axis=1)
    return rolled * mask_row


def _action_kernel(wfc1_ref, wfc2_ref, x_ref, masks_ref, watt_ref, wnet_ref,
                   bnet_ref, o_ref, pre_ref, patch_ref, *, n_segment, c, h, w):
    T = n_segment
    hw = h * w
    N = T * hw
    Th = T // 2
    srows_pad = watt_ref.shape[1] // 9

    masks = masks_ref[...]                                     # (9, T*hw), f32

    # ---- key-frame branch: per-frame global max -> FC1 -> ReLU -> FC2 -> softmax
    gmax = []
    for t in range(T):
        xt = x_ref[0, t]                                       # (c, hw)
        gmax.append(jnp.max(jnp.max(xt, axis=1, keepdims=True),
                            axis=0, keepdims=True))            # (1, 1)
    hid = []
    for j in range(Th):
        a = gmax[0] * wfc1_ref[j * T]
        for t in range(1, T):
            a = a + gmax[t] * wfc1_ref[j * T + t]
        hid.append(jnp.maximum(a, 0.0))
    logits = []
    for t in range(T):
        a = hid[0] * wfc2_ref[t * Th]
        for j in range(1, Th):
            a = a + hid[j] * wfc2_ref[t * Th + j]
        logits.append(a)
    zmax = logits[0]
    for t in range(1, T):
        zmax = jnp.maximum(zmax, logits[t])
    exps = [jnp.exp(l - zmax) for l in logits]
    denom = exps[0]
    for t in range(1, T):
        denom = denom + exps[t]
    # hoisted (1, hw) rows so the broadcast is built once per frame
    kf_rows = [jnp.broadcast_to(e / denom, (1, hw)) for e in exps]

    # ---- stage 1: stacked per-frame channel stats (avg rows, then max rows)
    avg_rows, max_rows = [], []
    for t in range(T):
        xk = x_ref[0, t] * kf_rows[t]                          # (c, hw)
        avg_rows.append(jnp.mean(xk, axis=0, keepdims=True))
        max_rows.append(jnp.max(xk, axis=0, keepdims=True))
    rows = avg_rows + max_rows
    if srows_pad > 2 * T:
        rows.append(jnp.zeros((srows_pad - 2 * T, hw), jnp.float32))
    stats = jnp.concatenate(rows, axis=0)                      # (srows_pad, hw)

    # 9 spatial taps = 9 rolls of the whole stack; full temporal-spatial Conv3d
    # collapses to one small MXU matmul against the folded weight matrix.
    taps = []
    for dh in range(3):
        for dw in range(3):
            k = dh * 3 + dw
            off = (dh - 1) * w + (dw - 1)
            taps.append(_tap(stats, off, hw, masks[k:k + 1, :hw]))
    tap_stack = jnp.concatenate(taps, axis=0)                  # (9*srows_pad, hw)
    att = jnp.dot(watt_ref[...], tap_stack,
                  preferred_element_type=jnp.float32)          # (m_pad, hw)
    sig = jax.nn.sigmoid(att)

    # ---- x_p1; channel-attention softmax over a singleton dim is exactly 1.0,
    #      so x_p2 + x == 3*x_p1 + x.  Lane-dense stores into the clip-wide
    #      (c, T*hw) scratch consumed by the conv im2col below.
    for t in range(T):
        xk = x_ref[0, t] * kf_rows[t]
        xp1 = xk * sig[t:t + 1, :] + xk
        pre_ref[:, t * hw:(t + 1) * hw] = (xp1 * 3.0 +
                                           x_ref[0, t]).astype(pre_ref.dtype)

    # ---- wrapped 3x3 Conv2d: im2col taps written straight into a VMEM scratch
    #      (no huge concatenated value -> no vreg spills), one MXU matmul.
    #      Rolls wrap across frame boundaries, but the tiled border masks zero
    #      every wrapped tap (correct for 3x3 / pad 1 / this flattening order).
    for dh in range(3):
        for dw in range(3):
            k = dh * 3 + dw
            off = (dh - 1) * w + (dw - 1)
            pre = pre_ref[...]                                 # reload per tap: short live ranges
            patch_ref[k * c:(k + 1) * c, :] = _tap(
                pre, off, N, masks[k:k + 1, :]).astype(patch_ref.dtype)

    acc = jnp.dot(wnet_ref[...], patch_ref[...],
                  preferred_element_type=jnp.float32)          # (cout, T*hw)
    acc = acc + bnet_ref[...]                                  # bias added once
    for t in range(T):
        o_ref[0, t] = acc[:, t * hw:(t + 1) * hw].astype(o_ref.dtype)


# ---------------------------------------------------------------------------
# full forward
# ---------------------------------------------------------------------------
def action_forward(x, P, n_segment, mxu_dtype=jnp.float32):
    nt, c, h, w = x.shape
    T = n_segment
    assert T >= 2 and nt % T == 0
    nb = nt // T
    hw = h * w
    cout = P['w_net'].shape[0]
    assert P['w_net'].shape[1] == c and P['w_net'].shape[2:] == (3, 3), \
        "wrapped net must be a 3x3 stride-1 pad-1 Conv2d"
    dtype = x.dtype

    masks = jnp.tile(_border_masks(h, w), (1, T))              # (9, T*hw)
    watt = _attention_weight_matrix(P['w_p1'], T)              # (8, 72) for T=3
    w_mat = (P['w_net'].transpose(0, 2, 3, 1)
             .reshape(cout, 9 * c).astype(mxu_dtype))          # (cout, 9c)
    bias = P['b_net'].reshape(cout, 1).astype(jnp.float32)
    x4 = x.reshape(nb, T, c, hw)

    kernel = functools.partial(_action_kernel, n_segment=T, c=c, h=h, w=w)
    out4 = pl.pallas_call(
        kernel,
        out_shape=jax.ShapeDtypeStruct((nb, T, cout, hw), dtype),
        grid=(nb,),
        in_specs=[
            pl.BlockSpec(memory_space=pltpu.MemorySpace.SMEM),      # fc1 weights
            pl.BlockSpec(memory_space=pltpu.MemorySpace.SMEM),      # fc2 weights
            pl.BlockSpec((1, T, c, hw), lambda b: (b, 0, 0, 0)),    # x, one clip
            pl.BlockSpec((9, T * hw), lambda b: (0, 0)),            # border masks
            pl.BlockSpec(watt.shape, lambda b: (0, 0)),             # folded Conv3d weights
            pl.BlockSpec((cout, 9 * c), lambda b: (0, 0)),          # net weight matrix
            pl.BlockSpec((cout, 1), lambda b: (0, 0)),              # net bias
        ],
        out_specs=pl.BlockSpec((1, T, cout, hw), lambda b: (b, 0, 0, 0)),
        scratch_shapes=[pltpu.VMEM((c, T * hw), jnp.float32),       # pre = x_p2 + x
                        pltpu.VMEM((9 * c, T * hw), mxu_dtype)],    # im2col patches
        compiler_params=pltpu.CompilerParams(
            dimension_semantics=("parallel",),
            vmem_limit_bytes=32 * 1024 * 1024),
    )(P['w_fc1'].reshape(-1), P['w_fc2'].reshape(-1),
      x4, masks, watt, w_mat, bias)
    return out4.reshape(nt, cout, h, w)


# ------------------------- deterministic params -------------------------
def init_params(key, c, cout, n_segment):
    rc = c // 16
    ks = jax.random.split(key, 8)

    def u(k, shape, fan_in):
        b = 1.0 / jnp.sqrt(float(fan_in))
        return jax.random.uniform(k, shape, jnp.float32, -b, b)

    return dict(
        w_fc1=u(ks[0], (n_segment // 2, n_segment), n_segment),    # Linear
        w_fc2=u(ks[1], (n_segment, n_segment // 2), n_segment // 2),
        w_p1=u(ks[2], (2, 3, 3, 3), 2 * 27),                       # Conv3d(2,1,3)
        w_sq=u(ks[3], (rc, c), c),                                 # 1x1 squeeze (reference only)
        w_c1=u(ks[4], (rc, rc, 3), rc * 3),                        # Conv1d      (reference only)
        w_ex=u(ks[5], (c, rc), rc),                                # 1x1 expand  (reference only)
        w_net=u(ks[6], (cout, c, 3, 3), c * 9),                    # wrapped net
        b_net=u(ks[7], (cout,), c * 9),
    )


# --------------------------- reference (plain JAX) ---------------------------
def reference_forward(x, P, n_segment):
    nt, c, h, w = x.shape
    nb = nt // n_segment
    rc = c // 16
    gmax = jnp.max(x.reshape(nt, -1), axis=1).reshape(nb, n_segment)
    z = jnp.maximum(gmax @ P['w_fc1'].T, 0.0) @ P['w_fc2'].T
    kf = jax.nn.softmax(z, axis=1).reshape(nt, 1, 1, 1)
    x_kf = kf * x
    avg = jnp.mean(x_kf, axis=1, keepdims=True)
    mx = jnp.max(x_kf, axis=1, keepdims=True)
    a5 = avg.reshape(nb, n_segment, 1, h, w).transpose(0, 2, 1, 3, 4)
    m5 = mx.reshape(nb, n_segment, 1, h, w).transpose(0, 2, 1, 3, 4)
    p1in = jnp.concatenate([a5, m5], axis=1)
    p1c = lax.conv_general_dilated(
        p1in, P['w_p1'][None], window_strides=(1, 1, 1),
        padding=[(1, 1)] * 3,
        dimension_numbers=('NCDHW', 'OIDHW', 'NCDHW'))
    p1c = p1c.transpose(0, 2, 1, 3, 4).reshape(nt, 1, h, w)
    x_p1 = x_kf * jax.nn.sigmoid(p1c) + x_kf

    def branch(pool):
        zz = pool @ P['w_sq'].T
        zz = zz.reshape(nb, n_segment, rc).transpose(0, 2, 1)
        zp = jnp.pad(zz, ((0, 0), (0, 0), (1, 1)))
        y = sum(jnp.einsum('oi,bit->bot', P['w_c1'][:, :, k],
                           zp[:, :, k:k + n_segment]) for k in range(3))
        y = jnp.maximum(y, 0.0).transpose(0, 2, 1).reshape(nt, rc)
        y = y @ P['w_ex'].T
        return jax.nn.softmax(y.reshape(nt, c, 1, 1), axis=2)

    cta1 = branch(jnp.mean(x_p1, axis=(2, 3)))
    cta2 = branch(jnp.max(x_p1, axis=(2, 3)))
    x_p2 = cta1 * x_p1 + cta2 * x_p1 + x_p1
    pre = x_p2 + x
    out = lax.conv_general_dilated(
        pre, P['w_net'], window_strides=(1, 1), padding=[(1, 1), (1, 1)],
        dimension_numbers=('NCHW', 'OIHW', 'NCHW'))
    return out + P['b_net'].reshape(1, -1, 1, 1)


if __name__ == "__main__":
    key = jax.random.PRNGKey(0)
    n_segment = 3          # Action default
    n_batch = 2
    c, h, w = 32, 16, 16   # in_channels=32 -> reduced_channels=2
    cout = 32
    nt = n_batch * n_segment

    kx, kp = jax.random.split(key)
    x = jax.random.normal(kx, (nt, c, h, w), jnp.float32)
    P = init_params(kp, c, cout, n_segment)

    ref = jax.block_until_ready(reference_forward(x, P, n_segment))

    # exact path: f32 MXU operands
    fwd = jax.jit(functools.partial(action_forward, n_segment=n_segment,
                                    mxu_dtype=jnp.float32))
    out = jax.block_until_ready(fwd(x, P))
    assert out.shape == (nt, cout, h, w), out.shape
    err = float(jnp.max(jnp.abs(out - ref)))
    assert err < 1e-3, f"f32 path: max abs error too large: {err}"

    # bf16 MXU-operand path (recommended on v6e / v7x); accumulation stays f32,
    # so errors scale with the output dynamic range (~2^-8 per operand, K=288).
    fwd_bf16 = jax.jit(functools.partial(action_forward, n_segment=n_segment,
                                         mxu_dtype=jnp.bfloat16))
    out_bf = jax.block_until_ready(fwd_bf16(x, P))
    scale = max(float(jnp.max(jnp.abs(ref))), 1.0)
    err_bf = float(jnp.max(jnp.abs(out_bf - ref)))
    assert err_bf < 2e-2 * scale, \
        f"bf16 path: max abs error {err_bf} vs output scale {scale}"
    print("KERNEL_OK")
</pallas_src>

<mosaic_0001>
module attributes {stable_mosaic.version = 11 : i64} {
  func.func @_action_kernel(%arg0: i32, %arg1: memref<3xf32, #tpu.memory_space<smem>>, %arg2: memref<3xf32, #tpu.memory_space<smem>>, %arg3: memref<1x3x32x256xf32, #tpu.memory_space<vmem>>, %arg4: memref<9x768xf32, #tpu.memory_space<vmem>>, %arg5: memref<8x72xf32, #tpu.memory_space<vmem>>, %arg6: memref<32x288xf32, #tpu.memory_space<vmem>>, %arg7: memref<32x1xf32, #tpu.memory_space<vmem>>, %arg8: memref<1x3x32x256xf32, #tpu.memory_space<vmem>>, %arg9: memref<32x768xf32, #tpu.memory_space<vmem>>, %arg10: memref<288x768xf32, #tpu.memory_space<vmem>>) attributes {dimension_semantics = [#tpu.dimension_semantics<parallel>], iteration_bounds = array<i64: 2>, scalar_prefetch = 0 : i64, scratch_operands = 2 : i64, tpu.core_type = #tpu.core_type<tc>, window_params = [{transform_indices = @transform_0, window_bounds = array<i64: 3>}, {transform_indices = @transform_1, window_bounds = array<i64: 3>}, {transform_indices = @transform_2, window_bounds = array<i64: 1, 3, 32, 256>}, {pipeline_mode = #tpu.pipeline_mode<synchronous>, transform_indices = @transform_3, window_bounds = array<i64: 9, 768>}, {pipeline_mode = #tpu.pipeline_mode<synchronous>, transform_indices = @transform_4, window_bounds = array<i64: 8, 72>}, {pipeline_mode = #tpu.pipeline_mode<synchronous>, transform_indices = @transform_5, window_bounds = array<i64: 32, 288>}, {pipeline_mode = #tpu.pipeline_mode<synchronous>, transform_indices = @transform_6, window_bounds = array<i64: 32, 1>}, {transform_indices = @transform_7, window_bounds = array<i64: 1, 3, 32, 256>}]} {
    %c0 = arith.constant 0 : index
    %c0_0 = arith.constant 0 : index
    %0 = vector.load %arg4[%c0, %c0_0] : memref<9x768xf32, #tpu.memory_space<vmem>>, vector<9x768xf32>
    %c0_1 = arith.constant 0 : index
    %c0_2 = arith.constant 0 : index
    %c0_3 = arith.constant 0 : index
    %c0_4 = arith.constant 0 : index
    %1 = vector.load %arg3[%c0_1, %c0_2, %c0_3, %c0_4] : memref<1x3x32x256xf32, #tpu.memory_space<vmem>>, vector<1x1x32x256xf32>
    %2 = vector.shape_cast %1 : vector<1x1x32x256xf32> to vector<32x256xf32>
    %cst = arith.constant dense<0xFF800000> : vector<32xf32>
    %3 = vector.multi_reduction <maximumf>, %2, %cst [1] : vector<32x256xf32> to vector<32xf32>
    %4 = vector.shape_cast %3 : vector<32xf32> to vector<32x1xf32>
    %cst_5 = arith.constant dense<0xFF800000> : vector<1xf32>
    %5 = vector.multi_reduction <maximumf>, %4, %cst_5 [0] : vector<32x1xf32> to vector<1xf32>
    %6 = vector.shape_cast %5 : vector<1xf32> to vector<1x1xf32>
    %c0_6 = arith.constant 0 : index
    %c1 = arith.constant 1 : index
    %c0_7 = arith.constant 0 : index
    %c0_8 = arith.constant 0 : index
    %7 = vector.load %arg3[%c0_6, %c1, %c0_7, %c0_8] : memref<1x3x32x256xf32, #tpu.memory_space<vmem>>, vector<1x1x32x256xf32>
    %8 = vector.shape_cast %7 : vector<1x1x32x256xf32> to vector<32x256xf32>
    %cst_9 = arith.constant dense<0xFF800000> : vector<32xf32>
    %9 = vector.multi_reduction <maximumf>, %8, %cst_9 [1] : vector<32x256xf32> to vector<32xf32>
    %10 = vector.shape_cast %9 : vector<32xf32> to vector<32x1xf32>
    %cst_10 = arith.constant dense<0xFF800000> : vector<1xf32>
    %11 = vector.multi_reduction <maximumf>, %10, %cst_10 [0] : vector<32x1xf32> to vector<1xf32>
    %12 = vector.shape_cast %11 : vector<1xf32> to vector<1x1xf32>
    %c0_11 = arith.constant 0 : index
    %c2 = arith.constant 2 : index
    %c0_12 = arith.constant 0 : index
    %c0_13 = arith.constant 0 : index
    %13 = vector.load %arg3[%c0_11, %c2, %c0_12, %c0_13] : memref<1x3x32x256xf32, #tpu.memory_space<vmem>>, vector<1x1x32x256xf32>
    %14 = vector.shape_cast %13 : vector<1x1x32x256xf32> to vector<32x256xf32>
    %cst_14 = arith.constant dense<0xFF800000> : vector<32xf32>
    %15 = vector.multi_reduction <maximumf>, %14, %cst_14 [1] : vector<32x256xf32> to vector<32xf32>
    %16 = vector.shape_cast %15 : vector<32xf32> to vector<32x1xf32>
    %cst_15 = arith.constant dense<0xFF800000> : vector<1xf32>
    %17 = vector.multi_reduction <maximumf>, %16, %cst_15 [0] : vector<32x1xf32> to vector<1xf32>
    %18 = vector.shape_cast %17 : vector<1xf32> to vector<1x1xf32>
    %c0_16 = arith.constant 0 : index
    %19 = memref.load %arg1[%c0_16] : memref<3xf32, #tpu.memory_space<smem>>
    %20 = vector.broadcast %19 : f32 to vector<1x1xf32>
    %21 = arith.mulf %6, %20 : vector<1x1xf32>
    %c1_17 = arith.constant 1 : index
    %22 = memref.load %arg1[%c1_17] : memref<3xf32, #tpu.memory_space<smem>>
    %23 = vector.broadcast %22 : f32 to vector<1x1xf32>
    %24 = arith.mulf %12, %23 : vector<1x1xf32>
    %25 = arith.addf %21, %24 : vector<1x1xf32>
    %c2_18 = arith.constant 2 : index
    %26 = memref.load %arg1[%c2_18] : memref<3xf32, #tpu.memory_space<smem>>
    %27 = vector.broadcast %26 : f32 to vector<1x1xf32>
    %28 = arith.mulf %18, %27 : vector<1x1xf32>
    %29 = arith.addf %25, %28 : vector<1x1xf32>
    %cst_19 = arith.constant 0.000000e+00 : f32
    %30 = vector.broadcast %cst_19 : f32 to vector<1x1xf32>
    %31 = arith.maximumf %29, %30 : vector<1x1xf32>
    %c0_20 = arith.constant 0 : index
    %32 = memref.load %arg2[%c0_20] : memref<3xf32, #tpu.memory_space<smem>>
    %33 = vector.broadcast %32 : f32 to vector<1x1xf32>
    %34 = arith.mulf %31, %33 : vector<1x1xf32>
    %c1_21 = arith.constant 1 : index
    %35 = memref.load %arg2[%c1_21] : memref<3xf32, #tpu.memory_space<smem>>
    %36 = vector.broadcast %35 : f32 to vector<1x1xf32>
    %37 = arith.mulf %31, %36 : vector<1x1xf32>
    %c2_22 = arith.constant 2 : index
    %38 = memref.load %arg2[%c2_22] : memref<3xf32, #tpu.memory_space<smem>>
    %39 = vector.broadcast %38 : f32 to vector<1x1xf32>
    %40 = arith.mulf %31, %39 : vector<1x1xf32>
    %41 = arith.maximumf %34, %37 : vector<1x1xf32>
    %42 = arith.maximumf %41, %40 : vector<1x1xf32>
    %43 = arith.subf %34, %42 : vector<1x1xf32>
    %44 = math.exp %43 : vector<1x1xf32>
    %45 = arith.subf %37, %42 : vector<1x1xf32>
    %46 = math.exp %45 : vector<1x1xf32>
    %47 = arith.subf %40, %42 : vector<1x1xf32>
    %48 = math.exp %47 : vector<1x1xf32>
    %49 = arith.addf %44, %46 : vector<1x1xf32>
    %50 = arith.addf %49, %48 : vector<1x1xf32>
    %51 = arith.divf %44, %50 : vector<1x1xf32>
    %52 = vector.shape_cast %51 : vector<1x1xf32> to vector<1x1xf32>
    %53 = vector.broadcast %52 : vector<1x1xf32> to vector<1x256xf32>
    %54 = arith.divf %46, %50 : vector<1x1xf32>
    %55 = vector.shape_cast %54 : vector<1x1xf32> to vector<1x1xf32>
    %56 = vector.broadcast %55 : vector<1x1xf32> to vector<1x256xf32>
    %57 = arith.divf %48, %50 : vector<1x1xf32>
    %58 = vector.shape_cast %57 : vector<1x1xf32> to vector<1x1xf32>
    %59 = vector.broadcast %58 : vector<1x1xf32> to vector<1x256xf32>
    %c0_23 = arith.constant 0 : index
    %c0_24 = arith.constant 0 : index
    %c0_25 = arith.constant 0 : index
    %c0_26 = arith.constant 0 : index
    %60 = vector.load %arg3[%c0_23, %c0_24, %c0_25, %c0_26] : memref<1x3x32x256xf32, #tpu.memory_space<vmem>>, vector<1x1x32x256xf32>
    %61 = vector.shape_cast %60 : vector<1x1x32x256xf32> to vector<32x256xf32>
    %62 = vector.broadcast %53 : vector<1x256xf32> to vector<32x256xf32>
    %63 = arith.mulf %61, %62 : vector<32x256xf32>
    %cst_27 = arith.constant dense<0.000000e+00> : vector<256xf32>
    %64 = vector.multi_reduction <add>, %63, %cst_27 [0] : vector<32x256xf32> to vector<256xf32>
    %65 = vector.shape_cast %64 : vector<256xf32> to vector<1x256xf32>
    %cst_28 = arith.constant 3.200000e+01 : f32
    %66 = vector.broadcast %cst_28 : f32 to vector<1x256xf32>
    %67 = arith.divf %65, %66 : vector<1x256xf32>
    %cst_29 = arith.constant dense<0xFF800000> : vector<256xf32>
    %68 = vector.multi_reduction <maximumf>, %63, %cst_29 [0] : vector<32x256xf32> to vector<256xf32>
    %69 = vector.shape_cast %68 : vector<256xf32> to vector<1x256xf32>
    %c0_30 = arith.constant 0 : index
    %c1_31 = arith.constant 1 : index
    %c0_32 = arith.constant 0 : index
    %c0_33 = arith.constant 0 : index
    %70 = vector.load %arg3[%c0_30, %c1_31, %c0_32, %c0_33] : memref<1x3x32x256xf32, #tpu.memory_space<vmem>>, vector<1x1x32x256xf32>
    %71 = vector.shape_cast %70 : vector<1x1x32x256xf32> to vector<32x256xf32>
    %72 = vector.broadcast %56 : vector<1x256xf32> to vector<32x256xf32>
    %73 = arith.mulf %71, %72 : vector<32x256xf32>
    %cst_34 = arith.constant dense<0.000000e+00> : vector<256xf32>
    %74 = vector.multi_reduction <add>, %73, %cst_34 [0] : vector<32x256xf32> to vector<256xf32>
    %75 = vector.shape_cast %74 : vector<256xf32> to vector<1x256xf32>
    %cst_35 = arith.constant 3.200000e+01 : f32
    %76 = vector.broadcast %cst_35 : f32 to vector<1x256xf32>
    %77 = arith.divf %75, %76 : vector<1x256xf32>
    %cst_36 = arith.constant dense<0xFF800000> : vector<256xf32>
    %78 = vector.multi_reduction <maximumf>, %73, %cst_36 [0] : vector<32x256xf32> to vector<256xf32>
    %79 = vector.shape_cast %78 : vector<256xf32> to vector<1x256xf32>
    %c0_37 = arith.constant 0 : index
    %c2_38 = arith.constant 2 : index
    %c0_39 = arith.constant 0 : index
    %c0_40 = arith.constant 0 : index
    %80 = vector.load %arg3[%c0_37, %c2_38, %c0_39, %c0_40] : memref<1x3x32x256xf32, #tpu.memory_space<vmem>>, vector<1x1x32x256xf32>
    %81 = vector.shape_cast %80 : vector<1x1x32x256xf32> to vector<32x256xf32>
    %82 = vector.broadcast %59 : vector<1x256xf32> to vector<32x256xf32>
    %83 = arith.mulf %81, %82 : vector<32x256xf32>
    %cst_41 = arith.constant dense<0.000000e+00> : vector<256xf32>
    %84 = vector.multi_reduction <add>, %83, %cst_41 [0] : vector<32x256xf32> to vector<256xf32>
    %85 = vector.shape_cast %84 : vector<256xf32> to vector<1x256xf32>
    %cst_42 = arith.constant 3.200000e+01 : f32
    %86 = vector.broadcast %cst_42 : f32 to vector<1x256xf32>
    %87 = arith.divf %85, %86 : vector<1x256xf32>
    %cst_43 = arith.constant dense<0xFF800000> : vector<256xf32>
    %88 = vector.multi_reduction <maximumf>, %83, %cst_43 [0] : vector<32x256xf32> to vector<256xf32>
    %89 = vector.shape_cast %88 : vector<256xf32> to vector<1x256xf32>
    %cst_44 = arith.constant 0.000000e+00 : f32
    %90 = vector.broadcast %cst_44 : f32 to vector<2x256xf32>
    %91 = tpu.concatenate %67, %77, %87, %69, %79, %89, %90 in 0 : vector<1x256xf32>, vector<1x256xf32>, vector<1x256xf32>, vector<1x256xf32>, vector<1x256xf32>, vector<1x256xf32>, vector<2x256xf32> -> vector<8x256xf32>
    %92 = vector.extract_strided_slice %0 {offsets = [0, 0], sizes = [1, 256], strides = [1, 1]} : vector<9x768xf32> to vector<1x256xf32>
    %c17_i32 = arith.constant 17 : i32
    %93 = tpu.dynamic_rotate %91 by %c17_i32 dim 1 : vector<8x256xf32>, i32 -> vector<8x256xf32>
    %94 = vector.broadcast %92 : vector<1x256xf32> to vector<8x256xf32>
    %95 = arith.mulf %93, %94 : vector<8x256xf32>
    %96 = vector.extract_strided_slice %0 {offsets = [1, 0], sizes = [1, 256], strides = [1, 1]} : vector<9x768xf32> to vector<1x256xf32>
    %c16_i32 = arith.constant 16 : i32
    %97 = tpu.dynamic_rotate %91 by %c16_i32 dim 1 : vector<8x256xf32>, i32 -> vector<8x256xf32>
    %98 = vector.broadcast %96 : vector<1x256xf32> to vector<8x256xf32>
    %99 = arith.mulf %97, %98 : vector<8x256xf32>
    %100 = vector.extract_strided_slice %0 {offsets = [2, 0], sizes = [1, 256], strides = [1, 1]} : vector<9x768xf32> to vector<1x256xf32>
    %c15_i32 = arith.constant 15 : i32
    %101 = tpu.dynamic_rotate %91 by %c15_i32 dim 1 : vector<8x256xf32>, i32 -> vector<8x256xf32>
    %102 = vector.broadcast %100 : vector<1x256xf32> to vector<8x256xf32>
    %103 = arith.mulf %101, %102 : vector<8x256xf32>
    %104 = vector.extract_strided_slice %0 {offsets = [3, 0], sizes = [1, 256], strides = [1, 1]} : vector<9x768xf32> to vector<1x256xf32>
    %c1_i32 = arith.constant 1 : i32
    %105 = tpu.dynamic_rotate %91 by %c1_i32 dim 1 : vector<8x256xf32>, i32 -> vector<8x256xf32>
    %106 = vector.broadcast %104 : vector<1x256xf32> to vector<8x256xf32>
    %107 = arith.mulf %105, %106 : vector<8x256xf32>
    %108 = vector.extract_strided_slice %0 {offsets = [4, 0], sizes = [1, 256], strides = [1, 1]} : vector<9x768xf32> to vector<1x256xf32>
    %109 = vector.broadcast %108 : vector<1x256xf32> to vector<8x256xf32>
    %110 = arith.mulf %91, %109 : vector<8x256xf32>
    %111 = vector.extract_strided_slice %0 {offsets = [5, 0], sizes = [1, 256], strides = [1, 1]} : vector<9x768xf32> to vector<1x256xf32>
    %c255_i32 = arith.constant 255 : i32
    %112 = tpu.dynamic_rotate %91 by %c255_i32 dim 1 : vector<8x256xf32>, i32 -> vector<8x256xf32>
    %113 = vector.broadcast %111 : vector<1x256xf32> to vector<8x256xf32>
    %114 = arith.mulf %112, %113 : vector<8x256xf32>
    %115 = vector.extract_strided_slice %0 {offsets = [6, 0], sizes = [1, 256], strides = [1, 1]} : vector<9x768xf32> to vector<1x256xf32>
    %c241_i32 = arith.constant 241 : i32
    %116 = tpu.dynamic_rotate %91 by %c241_i32 dim 1 : vector<8x256xf32>, i32 -> vector<8x256xf32>
    %117 = vector.broadcast %115 : vector<1x256xf32> to vector<8x256xf32>
    %118 = arith.mulf %116, %117 : vector<8x256xf32>
    %119 = vector.extract_strided_slice %0 {offsets = [7, 0], sizes = [1, 256], strides = [1, 1]} : vector<9x768xf32> to vector<1x256xf32>
    %c240_i32 = arith.constant 240 : i32
    %120 = tpu.dynamic_rotate %91 by %c240_i32 dim 1 : vector<8x256xf32>, i32 -> vector<8x256xf32>
    %121 = vector.broadcast %119 : vector<1x256xf32> to vector<8x256xf32>
    %122 = arith.mulf %120, %121 : vector<8x256xf32>
    %123 = vector.extract_strided_slice %0 {offsets = [8, 0], sizes = [1, 256], strides = [1, 1]} : vector<9x768xf32> to vector<1x256xf32>
    %c239_i32 = arith.constant 239 : i32
    %124 = tpu.dynamic_rotate %91 by %c239_i32 dim 1 : vector<8x256xf32>, i32 -> vector<8x256xf32>
    %125 = vector.broadcast %123 : vector<1x256xf32> to vector<8x256xf32>
    %126 = arith.mulf %124, %125 : vector<8x256xf32>
    %127 = tpu.concatenate %95, %99, %103, %107, %110, %114, %118, %122, %126 in 0 : vector<8x256xf32>, vector<8x256xf32>, vector<8x256xf32>, vector<8x256xf32>, vector<8x256xf32>, vector<8x256xf32>, vector<8x256xf32>, vector<8x256xf32>, vector<8x256xf32> -> vector<72x256xf32>
    %c0_45 = arith.constant 0 : index
    %c0_46 = arith.constant 0 : index
    %128 = vector.load %arg5[%c0_45, %c0_46] : memref<8x72xf32, #tpu.memory_space<vmem>>, vector<8x72xf32>
    %cst_47 = arith.constant dense<0.000000e+00> : vector<8x256xf32>
    %129 = tpu.matmul %128, %127, %cst_47 {dimension_numbers = #tpu.dot_dimension_numbers<[1], [0], [0], [1], [0, 0, 1, 1], [], []>} : vector<8x72xf32>, vector<72x256xf32>, vector<8x256xf32> -> vector<8x256xf32>
    %130 = arith.negf %129 : vector<8x256xf32>
    %131 = math.exp %130 : vector<8x256xf32>
    %cst_48 = arith.constant 1.000000e+00 : f32
    %132 = vector.broadcast %cst_48 : f32 to vector<8x256xf32>
    %133 = arith.addf %132, %131 : vector<8x256xf32>
    %134 = arith.divf %132, %133 : vector<8x256xf32>
    %c0_49 = arith.constant 0 : index
    %c0_50 = arith.constant 0 : index
    %c0_51 = arith.constant 0 : index
    %c0_52 = arith.constant 0 : index
    %135 = vector.load %arg3[%c0_49, %c0_50, %c0_51, %c0_52] : memref<1x3x32x256xf32, #tpu.memory_space<vmem>>, vector<1x1x32x256xf32>
    %136 = vector.shape_cast %135 : vector<1x1x32x256xf32> to vector<32x256xf32>
    %137 = vector.broadcast %53 : vector<1x256xf32> to vector<32x256xf32>
    %138 = arith.mulf %136, %137 : vector<32x256xf32>
    %139 = vector.extract_strided_slice %134 {offsets = [0, 0], sizes = [1, 256], strides = [1, 1]} : vector<8x256xf32> to vector<1x256xf32>
    %140 = vector.broadcast %139 : vector<1x256xf32> to vector<32x256xf32>
    %141 = arith.mulf %138, %140 : vector<32x256xf32>
    %142 = arith.addf %141, %138 : vector<32x256xf32>
    %cst_53 = arith.constant 3.000000e+00 : f32
    %143 = vector.broadcast %cst_53 : f32 to vector<32x256xf32>
    %144 = arith.mulf %142, %143 : vector<32x256xf32>
    %c0_54 = arith.constant 0 : index
    %c0_55 = arith.constant 0 : index
    %c0_56 = arith.constant 0 : index
    %c0_57 = arith.constant 0 : index
    %145 = vector.load %arg3[%c0_54, %c0_55, %c0_56, %c0_57] : memref<1x3x32x256xf32, #tpu.memory_space<vmem>>, vector<1x1x32x256xf32>
    %146 = vector.shape_cast %145 : vector<1x1x32x256xf32> to vector<32x256xf32>
    %147 = arith.addf %144, %146 : vector<32x256xf32>
    %c0_58 = arith.constant 0 : index
    %c0_59 = arith.constant 0 : index
    %148 = vector.load %arg9[%c0_58, %c0_59] : memref<32x768xf32, #tpu.memory_space<vmem>>, vector<32x256xf32>
    tpu.vector_store %arg9[%c0_58, %c0_59], %147 {strides = array<i32>} : memref<32x768xf32, #tpu.memory_space<vmem>>, vector<32x256xf32>,
    %c0_60 = arith.constant 0 : index
    %c1_61 = arith.constant 1 : index
    %c0_62 = arith.constant 0 : index
    %c0_63 = arith.constant 0 : index
    %149 = vector.load %arg3[%c0_60, %c1_61, %c0_62, %c0_63] : memref<1x3x32x256xf32, #tpu.memory_space<vmem>>, vector<1x1x32x256xf32>
    %150 = vector.shape_cast %149 : vector<1x1x32x256xf32> to vector<32x256xf32>
    %151 = vector.broadcast %56 : vector<1x256xf32> to vector<32x256xf32>
    %152 = arith.mulf %150, %151 : vector<32x256xf32>
    %153 = vector.extract_strided_slice %134 {offsets = [1, 0], sizes = [1, 256], strides = [1, 1]} : vector<8x256xf32> to vector<1x256xf32>
    %154 = vector.broadcast %153 : vector<1x256xf32> to vector<32x256xf32>
    %155 = arith.mulf %152, %154 : vector<32x256xf32>
    %156 = arith.addf %155, %152 : vector<32x256xf32>
    %cst_64 = arith.constant 3.000000e+00 : f32
    %157 = vector.broadcast %cst_64 : f32 to vector<32x256xf32>
    %158 = arith.mulf %156, %157 : vector<32x256xf32>
    %c0_65 = arith.constant 0 : index
    %c1_66 = arith.constant 1 : index
    %c0_67 = arith.constant 0 : index
    %c0_68 = arith.constant 0 : index
    %159 = vector.load %arg3[%c0_65, %c1_66, %c0_67, %c0_68] : memref<1x3x32x256xf32, #tpu.memory_space<vmem>>, vector<1x1x32x256xf32>
    %160 = vector.shape_cast %159 : vector<1x1x32x256xf32> to vector<32x256xf32>
    %161 = arith.addf %158, %160 : vector<32x256xf32>
    %c0_69 = arith.constant 0 : index
    %c256 = arith.constant 256 : index
    %162 = vector.load %arg9[%c0_69, %c256] : memref<32x768xf32, #tpu.memory_space<vmem>>, vector<32x256xf32>
    tpu.vector_store %arg9[%c0_69, %c256], %161 {strides = array<i32>} : memref<32x768xf32, #tpu.memory_space<vmem>>, vector<32x256xf32>,
    %c0_70 = arith.constant 0 : index
    %c2_71 = arith.constant 2 : index
    %c0_72 = arith.constant 0 : index
    %c0_73 = arith.constant 0 : index
    %163 = vector.load %arg3[%c0_70, %c2_71, %c0_72, %c0_73] : memref<1x3x32x256xf32, #tpu.memory_space<vmem>>, vector<1x1x32x256xf32>
    %164 = vector.shape_cast %163 : vector<1x1x32x256xf32> to vector<32x256xf32>
    %165 = vector.broadcast %59 : vector<1x256xf32> to vector<32x256xf32>
    %166 = arith.mulf %164, %165 : vector<32x256xf32>
    %167 = vector.extract_strided_slice %134 {offsets = [2, 0], sizes = [1, 256], strides = [1, 1]} : vector<8x256xf32> to vector<1x256xf32>
    %168 = vector.broadcast %167 : vector<1x256xf32> to vector<32x256xf32>
    %169 = arith.mulf %166, %168 : vector<32x256xf32>
    %170 = arith.addf %169, %166 : vector<32x256xf32>
    %cst_74 = arith.constant 3.000000e+00 : f32
    %171 = vector.broadcast %cst_74 : f32 to vector<32x256xf32>
    %172 = arith.mulf %170, %171 : vector<32x256xf32>
    %c0_75 = arith.constant 0 : index
    %c2_76 = arith.constant 2 : index
    %c0_77 = arith.constant 0 : index
    %c0_78 = arith.constant 0 : index
    %173 = vector.load %arg3[%c0_75, %c2_76, %c0_77, %c0_78] : memref<1x3x32x256xf32, #tpu.memory_space<vmem>>, vector<1x1x32x256xf32>
    %174 = vector.shape_cast %173 : vector<1x1x32x256xf32> to vector<32x256xf32>
    %175 = arith.addf %172, %174 : vector<32x256xf32>
    %c0_79 = arith.constant 0 : index
    %c512 = arith.constant 512 : index
    %176 = vector.load %arg9[%c0_79, %c512] : memref<32x768xf32, #tpu.memory_space<vmem>>, vector<32x256xf32>
    tpu.vector_store %arg9[%c0_79, %c512], %175 {strides = array<i32>} : memref<32x768xf32, #tpu.memory_space<vmem>>, vector<32x256xf32>,
    %c0_80 = arith.constant 0 : index
    %c0_81 = arith.constant 0 : index
    %177 = vector.load %arg9[%c0_80, %c0_81] : memref<32x768xf32, #tpu.memory_space<vmem>>, vector<32x768xf32>
    %178 = vector.extract_strided_slice %0 {offsets = [0, 0], sizes = [1, 768], strides = [1, 1]} : vector<9x768xf32> to vector<1x768xf32>
    %c17_i32_82 = arith.constant 17 : i32
    %179 = tpu.dynamic_rotate %177 by %c17_i32_82 dim 1 : vector<32x768xf32>, i32 -> vector<32x768xf32>
    %180 = vector.broadcast %178 : vector<1x768xf32> to vector<32x768xf32>
    %181 = arith.mulf %179, %180 : vector<32x768xf32>
    %c0_83 = arith.constant 0 : index
    %c0_84 = arith.constant 0 : index
    %182 = vector.load %arg10[%c0_83, %c0_84] : memref<288x768xf32, #tpu.memory_space<vmem>>, vector<32x768xf32>
    tpu.vector_store %arg10[%c0_83, %c0_84], %181 {strides = array<i32>} : memref<288x768xf32, #tpu.memory_space<vmem>>, vector<32x768xf32>,
    %c0_85 = arith.constant 0 : index
    %c0_86 = arith.constant 0 : index
    %183 = vector.load %arg9[%c0_85, %c0_86] : memref<32x768xf32, #tpu.memory_space<vmem>>, vector<32x768xf32>
    %184 = vector.extract_strided_slice %0 {offsets = [1, 0], sizes = [1, 768], strides = [1, 1]} : vector<9x768xf32> to vector<1x768xf32>
    %c16_i32_87 = arith.constant 16 : i32
    %185 = tpu.dynamic_rotate %183 by %c16_i32_87 dim 1 : vector<32x768xf32>, i32 -> vector<32x768xf32>
    %186 = vector.broadcast %184 : vector<1x768xf32> to vector<32x768xf32>
    %187 = arith.mulf %185, %186 : vector<32x768xf32>
    %c32 = arith.constant 32 : index
    %c0_88 = arith.constant 0 : index
    %188 = vector.load %arg10[%c32, %c0_88] : memref<288x768xf32, #tpu.memory_space<vmem>>, vector<32x768xf32>
    tpu.vector_store %arg10[%c32, %c0_88], %187 {strides = array<i32>} : memref<288x768xf32, #tpu.memory_space<vmem>>, vector<32x768xf32>,
    %c0_89 = arith.constant 0 : index
    %c0_90 = arith.constant 0 : index
    %189 = vector.load %arg9[%c0_89, %c0_90] : memref<32x768xf32, #tpu.memory_space<vmem>>, vector<32x768xf32>
    %190 = vector.extract_strided_slice %0 {offsets = [2, 0], sizes = [1, 768], strides = [1, 1]} : vector<9x768xf32> to vector<1x768xf32>
    %c15_i32_91 = arith.constant 15 : i32
    %191 = tpu.dynamic_rotate %189 by %c15_i32_91 dim 1 : vector<32x768xf32>, i32 -> vector<32x768xf32>
    %192 = vector.broadcast %190 : vector<1x768xf32> to vector<32x768xf32>
    %193 = arith.mulf %191, %192 : vector<32x768xf32>
    %c64 = arith.constant 64 : index
    %c0_92 = arith.constant 0 : index
    %194 = vector.load %arg10[%c64, %c0_92] : memref<288x768xf32, #tpu.memory_space<vmem>>, vector<32x768xf32>
    tpu.vector_store %arg10[%c64, %c0_92], %193 {strides = array<i32>} : memref<288x768xf32, #tpu.memory_space<vmem>>, vector<32x768xf32>,
    %c0_93 = arith.constant 0 : index
    %c0_94 = arith.constant 0 : index
    %195 = vector.load %arg9[%c0_93, %c0_94] : memref<32x768xf32, #tpu.memory_space<vmem>>, vector<32x768xf32>
    %196 = vector.extract_strided_slice %0 {offsets = [3, 0], sizes = [1, 768], strides = [1, 1]} : vector<9x768xf32> to vector<1x768xf32>
    %c1_i32_95 = arith.constant 1 : i32
    %197 = tpu.dynamic_rotate %195 by %c1_i32_95 dim 1 : vector<32x768xf32>, i32 -> vector<32x768xf32>
    %198 = vector.broadcast %196 : vector<1x768xf32> to vector<32x768xf32>
    %199 = arith.mulf %197, %198 : vector<32x768xf32>
    %c96 = arith.constant 96 : index
    %c0_96 = arith.constant 0 : index
    %200 = vector.load %arg10[%c96, %c0_96] : memref<288x768xf32, #tpu.memory_space<vmem>>, vector<32x768xf32>
    tpu.vector_store %arg10[%c96, %c0_96], %199 {strides = array<i32>} : memref<288x768xf32, #tpu.memory_space<vmem>>, vector<32x768xf32>,
    %c0_97 = arith.constant 0 : index
    %c0_98 = arith.constant 0 : index
    %201 = vector.load %arg9[%c0_97, %c0_98] : memref<32x768xf32, #tpu.memory_space<vmem>>, vector<32x768xf32>
    %202 = vector.extract_strided_slice %0 {offsets = [4, 0], sizes = [1, 768], strides = [1, 1]} : vector<9x768xf32> to vector<1x768xf32>
    %203 = vector.broadcast %202 : vector<1x768xf32> to vector<32x768xf32>
    %204 = arith.mulf %201, %203 : vector<32x768xf32>
    %c128 = arith.constant 128 : index
    %c0_99 = arith.constant 0 : index
    %205 = vector.load %arg10[%c128, %c0_99] : memref<288x768xf32, #tpu.memory_space<vmem>>, vector<32x768xf32>
    tpu.vector_store %arg10[%c128, %c0_99], %204 {strides = array<i32>} : memref<288x768xf32, #tpu.memory_space<vmem>>, vector<32x768xf32>,
    %c0_100 = arith.constant 0 : index
    %c0_101 = arith.constant 0 : index
    %206 = vector.load %arg9[%c0_100, %c0_101] : memref<32x768xf32, #tpu.memory_space<vmem>>, vector<32x768xf32>
    %207 = vector.extract_strided_slice %0 {offsets = [5, 0], sizes = [1, 768], strides = [1, 1]} : vector<9x768xf32> to vector<1x768xf32>
    %c767_i32 = arith.constant 767 : i32
    %208 = tpu.dynamic_rotate %206 by %c767_i32 dim 1 : vector<32x768xf32>, i32 -> vector<32x768xf32>
    %209 = vector.broadcast %207 : vector<1x768xf32> to vector<32x768xf32>
    %210 = arith.mulf %208, %209 : vector<32x768xf32>
    %c160 = arith.constant 160 : index
    %c0_102 = arith.constant 0 : index
    %211 = vector.load %arg10[%c160, %c0_102] : memref<288x768xf32, #tpu.memory_space<vmem>>, vector<32x768xf32>
    tpu.vector_store %arg10[%c160, %c0_102], %210 {strides = array<i32>} : memref<288x768xf32, #tpu.memory_space<vmem>>, vector<32x768xf32>,
    %c0_103 = arith.constant 0 : index
    %c0_104 = arith.constant 0 : index
    %212 = vector.load %arg9[%c0_103, %c0_104] : memref<32x768xf32, #tpu.memory_space<vmem>>, vector<32x768xf32>
    %213 = vector.extract_strided_slice %0 {offsets = [6, 0], sizes = [1, 768], strides = [1, 1]} : vector<9x768xf32> to vector<1x768xf32>
    %c753_i32 = arith.constant 753 : i32
    %214 = tpu.dynamic_rotate %212 by %c753_i32 dim 1 : vector<32x768xf32>, i32 -> vector<32x768xf32>
    %215 = vector.broadcast %213 : vector<1x768xf32> to vector<32x768xf32>
    %216 = arith.mulf %214, %215 : vector<32x768xf32>
    %c192 = arith.constant 192 : index
    %c0_105 = arith.constant 0 : index
    %217 = vector.load %arg10[%c192, %c0_105] : memref<288x768xf32, #tpu.memory_space<vmem>>, vector<32x768xf32>
    tpu.vector_store %arg10[%c192, %c0_105], %216 {strides = array<i32>} : memref<288x768xf32, #tpu.memory_space<vmem>>, vector<32x768xf32>,
    %c0_106 = arith.constant 0 : index
    %c0_107 = arith.constant 0 : index
    %218 = vector.load %arg9[%c0_106, %c0_107] : memref<32x768xf32, #tpu.memory_space<vmem>>, vector<32x768xf32>
    %219 = vector.extract_strided_slice %0 {offsets = [7, 0], sizes = [1, 768], strides = [1, 1]} : vector<9x768xf32> to vector<1x768xf32>
    %c752_i32 = arith.constant 752 : i32
    %220 = tpu.dynamic_rotate %218 by %c752_i32 dim 1 : vector<32x768xf32>, i32 -> vector<32x768xf32>
    %221 = vector.broadcast %219 : vector<1x768xf32> to vector<32x768xf32>
    %222 = arith.mulf %220, %221 : vector<32x768xf32>
    %c224 = arith.constant 224 : index
    %c0_108 = arith.constant 0 : index
    %223 = vector.load %arg10[%c224, %c0_108] : memref<288x768xf32, #tpu.memory_space<vmem>>, vector<32x768xf32>
    tpu.vector_store %arg10[%c224, %c0_108], %222 {strides = array<i32>} : memref<288x768xf32, #tpu.memory_space<vmem>>, vector<32x768xf32>,
    %c0_109 = arith.constant 0 : index
    %c0_110 = arith.constant 0 : index
    %224 = vector.load %arg9[%c0_109, %c0_110] : memref<32x768xf32, #tpu.memory_space<vmem>>, vector<32x768xf32>
    %225 = vector.extract_strided_slice %0 {offsets = [8, 0], sizes = [1, 768], strides = [1, 1]} : vector<9x768xf32> to vector<1x768xf32>
    %c751_i32 = arith.constant 751 : i32
    %226 = tpu.dynamic_rotate %224 by %c751_i32 dim 1 : vector<32x768xf32>, i32 -> vector<32x768xf32>
    %227 = vector.broadcast %225 : vector<1x768xf32> to vector<32x768xf32>
    %228 = arith.mulf %226, %227 : vector<32x768xf32>
    %c256_111 = arith.constant 256 : index
    %c0_112 = arith.constant 0 : index
    %229 = vector.load %arg10[%c256_111, %c0_112] : memref<288x768xf32, #tpu.memory_space<vmem>>, vector<32x768xf32>
    tpu.vector_store %arg10[%c256_111, %c0_112], %228 {strides = array<i32>} : memref<288x768xf32, #tpu.memory_space<vmem>>, vector<32x768xf32>,
    %c0_113 = arith.constant 0 : index
    %c0_114 = arith.constant 0 : index
    %230 = vector.load %arg6[%c0_113, %c0_114] : memref<32x288xf32, #tpu.memory_space<vmem>>, vector<32x288xf32>
    %c0_115 = arith.constant 0 : index
    %c0_116 = arith.constant 0 : index
    %231 = vector.load %arg10[%c0_115, %c0_116] : memref<288x768xf32, #tpu.memory_space<vmem>>, vector<288x768xf32>
    %cst_117 = arith.constant dense<0.000000e+00> : vector<32x768xf32>
    %232 = tpu.matmul %230, %231, %cst_117 {dimension_numbers = #tpu.dot_dimension_numbers<[1], [0], [0], [1], [0, 0, 1, 1], [], []>} : vector<32x288xf32>, vector<288x768xf32>, vector<32x768xf32> -> vector<32x768xf32>
    %c0_118 = arith.constant 0 : index
    %c0_119 = arith.constant 0 : index
    %233 = vector.load %arg7[%c0_118, %c0_119] : memref<32x1xf32, #tpu.memory_space<vmem>>, vector<32x1xf32>
    %234 = vector.broadcast %233 : vector<32x1xf32> to vector<32x768xf32>
    %235 = arith.addf %232, %234 : vector<32x768xf32>
    %236 = vector.extract_strided_slice %235 {offsets = [0, 0], sizes = [32, 256], strides = [1, 1]} : vector<32x768xf32> to vector<32x256xf32>
    %c0_120 = arith.constant 0 : index
    %c0_121 = arith.constant 0 : index
    %c0_122 = arith.constant 0 : index
    %c0_123 = arith.constant 0 : index
    %237 = vector.load %arg8[%c0_120, %c0_121, %c0_122, %c0_123] : memref<1x3x32x256xf32, #tpu.memory_space<vmem>>, vector<1x1x32x256xf32>
    %238 = vector.shape_cast %237 : vector<1x1x32x256xf32> to vector<32x256xf32>
    %239 = vector.shape_cast %236 : vector<32x256xf32> to vector<1x1x32x256xf32>
    tpu.vector_store %arg8[%c0_120, %c0_121, %c0_122, %c0_123], %239 {strides = array<i32>} : memref<1x3x32x256xf32, #tpu.memory_space<vmem>>, vector<1x1x32x256xf32>,
    %240 = vector.extract_strided_slice %235 {offsets = [0, 256], sizes = [32, 256], strides = [1, 1]} : vector<32x768xf32> to vector<32x256xf32>
    %c0_124 = arith.constant 0 : index
    %c1_125 = arith.constant 1 : index
    %c0_126 = arith.constant 0 : index
    %c0_127 = arith.constant 0 : index
    %241 = vector.load %arg8[%c0_124, %c1_125, %c0_126, %c0_127] : memref<1x3x32x256xf32, #tpu.memory_space<vmem>>, vector<1x1x32x256xf32>
    %242 = vector.shape_cast %241 : vector<1x1x32x256xf32> to vector<32x256xf32>
    %243 = vector.shape_cast %240 : vector<32x256xf32> to vector<1x1x32x256xf32>
    tpu.vector_store %arg8[%c0_124, %c1_125, %c0_126, %c0_127], %243 {strides = array<i32>} : memref<1x3x32x256xf32, #tpu.memory_space<vmem>>, vector<1x1x32x256xf32>,
    %244 = vector.extract_strided_slice %235 {offsets = [0, 512], sizes = [32, 256], strides = [1, 1]} : vector<32x768xf32> to vector<32x256xf32>
    %c0_128 = arith.constant 0 : index
    %c2_129 = arith.constant 2 : index
    %c0_130 = arith.constant 0 : index
    %c0_131 = arith.constant 0 : index
    %245 = vector.load %arg8[%c0_128, %c2_129, %c0_130, %c0_131] : memref<1x3x32x256xf32, #tpu.memory_space<vmem>>, vector<1x1x32x256xf32>
    %246 = vector.shape_cast %245 : vector<1x1x32x256xf32> to vector<32x256xf32>
    %247 = vector.shape_cast %244 : vector<32x256xf32> to vector<1x1x32x256xf32>
    tpu.vector_store %arg8[%c0_128, %c2_129, %c0_130, %c0_131], %247 {strides = array<i32>} : memref<1x3x32x256xf32, #tpu.memory_space<vmem>>, vector<1x1x32x256xf32>,
    return
  }
  func.func @transform_0(%arg0: i32) -> i32 {
    %c0_i32 = arith.constant 0 : i32
    %c0_i32_0 = arith.constant 0 : i32
    return %c0_i32 : i32
  }
  func.func @transform_1(%arg0: i32) -> i32 {
    %c0_i32 = arith.constant 0 : i32
    %c0_i32_0 = arith.constant 0 : i32
    return %c0_i32 : i32
  }
  func.func @transform_2(%arg0: i32) -> (i32, i32, i32, i32) {
    %c0_i32 = arith.constant 0 : i32
    %c0_i32_0 = arith.constant 0 : i32
    %c0_i32_1 = arith.constant 0 : i32
    %c0_i32_2 = arith.constant 0 : i32
    return %arg0, %c0_i32, %c0_i32_0, %c0_i32_1 : i32, i32, i32, i32
  }
  func.func @transform_3(%arg0: i32) -> (i32, i32) {
    %c0_i32 = arith.constant 0 : i32
    %c0_i32_0 = arith.constant 0 : i32
    %c0_i32_1 = arith.constant 0 : i32
    return %c0_i32, %c0_i32_0 : i32, i32
  }
  func.func @transform_4(%arg0: i32) -> (i32, i32) {
    %c0_i32 = arith.constant 0 : i32
    %c0_i32_0 = arith.constant 0 : i32
    %c0_i32_1 = arith.constant 0 : i32
    return %c0_i32, %c0_i32_0 : i32, i32
  }
  func.func @transform_5(%arg0: i32) -> (i32, i32) {
    %c0_i32 = arith.constant 0 : i32
    %c0_i32_0 = arith.constant 0 : i32
    %c0_i32_1 = arith.constant 0 : i32
    return %c0_i32, %c0_i32_0 : i32, i32
  }
  func.func @transform_6(%arg0: i32) -> (i32, i32) {
    %c0_i32 = arith.constant 0 : i32
    %c0_i32_0 = arith.constant 0 : i32
    %c0_i32_1 = arith.constant 0 : i32
    return %c0_i32, %c0_i32_0 : i32, i32
  }
  func.func @transform_7(%arg0: i32) -> (i32, i32, i32, i32) {
    %c0_i32 = arith.constant 0 : i32
    %c0_i32_0 = arith.constant 0 : i32
    %c0_i32_1 = arith.constant 0 : i32
    %c0_i32_2 = arith.constant 0 : i32
    return %arg0, %c0_i32, %c0_i32_0, %c0_i32_1 : i32, i32, i32, i32
  }
}

</mosaic_0001>

<bundles_post_ra>
// kernel: action_forward.1
= control target key start
LH: loop header
LB: loop body
LE: loop exit
PB: predicated region body
PF: predicated region fallthrough
CT: control target
= control target key end

     0   :  { %12 = vsyncpa [#allocation5], 0  ;;  %s5939_s0 = inlined_call_operand.vmem [shape: f32[3], index: 0, kind: input, shape index: {}]   ;;  %s5940_s1 = inlined_call_operand.vmem [shape: f32[3], index: 1, kind: input, shape index: {}]   ;;  %s5941_s2 = inlined_call_operand.vmem [shape: f32[2,3,32,256], index: 2, kind: input, shape index: {}]   ;;  %s5942_s3 = inlined_call_operand.vmem [shape: f32[9,768], index: 3, kind: input, shape index: {}]   ;;  %s5943_s4 = inlined_call_operand.vmem [shape: f32[8,72], index: 4, kind: input, shape index: {}]   ;;  %s5944_s5 = inlined_call_operand.vmem [shape: f32[32,288], index: 5, kind: input, shape index: {}]   ;;  %s5945_s6 = inlined_call_operand.vmem [shape: f32[32,1], index: 6, kind: input, shape index: {}]   ;;  %s5946_s7 = inlined_call_operand.vmem [shape: f32[2,3,32,256], index: 7, kind: output, shape index: {}]  }
   0x1   :  { %13 = vsyncpa [#allocation7], 0  ;;  %s3401_s24 = smov 0  }
   0x2 LB: > { %s3106_s25 = sadd.s32 4294967295, %s3347_s24   ;;  %p3108_p0 = scmp.ge.s32.totalorder %s3347_s24, 1  ;;  %s3347_s24 = sphi %s3401_s24, %s19_s24  }
   0x3   : > { %p202_p1 = scmp.lt.s32.totalorder %s3347_s24, 3  ;;  %s214_s28 = sshll.u32 %s5939_s0, 4  ;;  %s215_s28 = int_to_ptr.vmem [resolvable:$true] %s214_s28 }
   0x4   : > { %p3231_p3 = scmp.eq.s32.totalorder %s3106_s25, 0  ;;  %s224_s8 = sshll.u32 %s5940_s1, 4  ;;  %s225_s8 = int_to_ptr.vmem [resolvable:$true] %s224_s8 }
   0x5   : > { %p203_p2 = pnand %p3108_p0, %p202_p1  ;;  %s3349_s9 = smov [#allocation4]  }
   0x6   : > { %s3350_s10 = smov [#allocation6]  }
   0x7   : > { %p3224_p4 = pneg %p203_p2 }
   0x8   : > { %257 = sbr.rel (%p203_p2) target bundleno = 1426 (0x592), region = 48 }
   0x9   : > { %p3225_p5 = pnand %p3231_p3, %p3224_p4 }
   0xb   : > { %3227 = dma.vmem_to_smem (!%p3225_p5), %s215_s28, 16, %s3349_s9, [#allocation5]  }
   0xc   : > { %3230 = dma.vmem_to_smem (!%p3225_p5), %s225_s8, 16, %s3350_s10, [#allocation7]  }
   0xd   : > { %3338 = dma.done.wait (%p3231_p3), [#allocation5], 16  }
   0xe   : > { %3340 = vsyncadd (%p3231_p3), [#allocation5], 4294967280 }
   0xf   : > { %3342 = dma.done.wait (%p3231_p3), [#allocation7], 16  }
  0x10   : > { %3344 = vsyncadd (%p3231_p3), [#allocation7], 4294967280 }
  0x11   : > { %269 = sfence }
  0x12   : > { %p296_p6 = scmp.lt.s32.totalorder %s3106_s25, 1  ;;  %s3133_s15 = sld [smem:[#allocation4 + $0x1]]  ;;  %vm603_vm5 = vcmask 1040384   ;;  %vm606_vm6 = vcmask 1041408   ;;  %vm609_vm7 = vcmask 1042432   ;;  %vm612_vm8 = vcmask 1043456  }
  0x13   : > { %s407_s16 = sld [smem:[#allocation4]]  ;;  %vm615_vm9 = vcmask 1044480   ;;  %vm618_vm10 = vcmask 1045504   ;;  %s3352_s21 = smov 17  }
  0x14   : > { %s6259_s25 = smov (!%p296_p6, %s3106_s25), 1  ;;  %s3134_s17 = sld [smem:[#allocation4 + $0x2]] }
  0x15   : > { %s3215_s11 = smul.u32 192, %s6259_s25  ;;  %s419_s18 = sld [smem:[#allocation6]] }
  0x16   : > { %s3135_s19 = sld [smem:[#allocation6 + $0x1]]  ;;  %s3353_s22 = smov 15  }
  0x17   : > { %s3428_s14 = scalar_lea.vmem %s5941_s2, %s3215_s11  ;;  %s3136_s20 = sld [smem:[#allocation6 + $0x2]] }
  0x18   : > { %v3431_v0 = vld [vmem:[%s3428_s14 + $0x40] sm:$0xff]  ;;  %v3434_v1 = vld [vmem:[%s3428_s14 + $0x48] sm:$0xff]  ;;  %v3455_v9 = vld [vmem:[%s3428_s14 + $0x50] sm:$0xff]  ;;  %s3354_s23 = smov 16   ;;  %s3355_s26 = smov 127  }
  0x19   : > { %v3437_v2 = vld [vmem:[%s3428_s14 + $0x20] sm:$0xff]  ;;  %v356_v3 = vmax.f32 %v3431_v0, %v3434_v1  ;;  %v3442_v4 = vld [vmem:[%s3428_s14 + $0x28] sm:$0xff]  ;;  %v3458_v10 = vld [vmem:[%s3428_s14 + $0x58] sm:$0xff]  ;;  %s3356_s27 = smov 113   ;;  %s3357_s28 = smov 1  }
  0x1a   : > { %v3445_v5 = vld [vmem:[%s3428_s14] sm:$0xff]  ;;  %v3448_v6 = vld [vmem:[%s3428_s14 + $0x8] sm:$0xff]  ;;  %v332_v7 = vmax.f32 %v3437_v2, %v3442_v4  ;;  %v3461_v11 = vld [vmem:[%s3428_s14 + $0x30] sm:$0xff]  ;;  %v359_v15 = vmax.f32 %v3455_v9, %v3458_v10  ;;  %s3358_s29 = smov 111   ;;  %s3359_s30 = smov 112  }
  0x1b   : > { %v326_v8 = vmax.f32 %v3445_v5, %v3448_v6  ;;  %357 = vmax.xlane.f32.xlu2 %v356_v3  ;;  %v3464_v12 = vld [vmem:[%s3428_s14 + $0x38] sm:$0xff]  ;;  %v3467_v13 = vld [vmem:[%s3428_s14 + $0x10] sm:$0xff]  ;;  %v3479_v18 = vld [vmem:[%s3428_s14 + $0x80] sm:$0xff] }
  0x1c   : > { %333 = vmax.xlane.f32.xlu1 %v332_v7  ;;  %v3470_v14 = vld [vmem:[%s3428_s14 + $0x18] sm:$0xff]  ;;  %v335_v16 = vmax.f32 %v3461_v11, %v3464_v12  ;;  %v3482_v19 = vld [vmem:[%s3428_s14 + $0x88] sm:$0xff]  ;;  %v3485_v20 = vld [vmem:[%s3428_s14 + $0x70] sm:$0xff] }
  0x1d   : > { %327 = vmax.xlane.f32.xlu0 %v326_v8  ;;  %v329_v17 = vmax.f32 %v3467_v13, %v3470_v14  ;;  %v3488_v21 = vld [vmem:[%s3428_s14 + $0x78] sm:$0xff]  ;;  %v3491_v22 = vld [vmem:[%s3428_s14 + $0x60] sm:$0xff]  ;;  %v3494_v23 = vld [vmem:[%s3428_s14 + $0x68] sm:$0xff]  ;;  %v386_v24 = vmax.f32 %v3479_v18, %v3482_v19 }
  0x1e   : > { %v365_v25 = vmax.f32 %v3485_v20, %v3488_v21  ;;  %v362_v26 = vmax.f32 %v3491_v22, %v3494_v23  ;;  %v3503_v27 = vld [vmem:[%s3428_s14 + $0xb0] sm:$0xff]  ;;  %v3506_v28 = vld [vmem:[%s3428_s14 + $0xb8] sm:$0xff]  ;;  %v3509_v29 = vld [vmem:[%s3428_s14 + $0xa0] sm:$0xff] }
  0x1f   : > { %v3512_v30 = vld [vmem:[%s3428_s14 + $0xa8] sm:$0xff]  ;;  %v3515_v31 = vld [vmem:[%s3428_s14 + $0x90] sm:$0xff]  ;;  %v3518_v32 = vld [vmem:[%s3428_s14 + $0x98] sm:$0xff]  ;;  %v395_v33 = vmax.f32 %v3503_v27, %v3506_v28 }
  0x20   : > { %v392_v34 = vmax.f32 %v3509_v29, %v3512_v30  ;;  %v389_v35 = vmax.f32 %v3515_v31, %v3518_v32 }
  0x23   : > { %360 = vmax.xlane.f32.xlu2 %v359_v15 }
  0x24   : > { %336 = vmax.xlane.f32.xlu1 %v335_v16 }
  0x25   : > { %330 = vmax.xlane.f32.xlu0 %v329_v17 }
  0x2b   : > { %387 = vmax.xlane.f32.xlu2 %v386_v24 }
  0x2c   : > { %366 = vmax.xlane.f32.xlu1 %v365_v25  ;;  %v411_v25 = vstv %s3133_s15 }
  0x2d   : > { %363 = vmax.xlane.f32.xlu0 %v362_v26 }
  0x33   : > { %396 = vmax.xlane.f32.xlu2 %v395_v33 }
  0x34   : > { %393 = vmax.xlane.f32.xlu1 %v392_v34  ;;  %v408_v34 = vstv %s407_s16 }
  0x35   : > { %390 = vmax.xlane.f32.xlu0 %v389_v35 }
  0x8e   : > { %v358_v36 = vpop.xlane.xlu2 %357 }
  0x8f   : > { %v334_v37 = vpop.xlane.xlu1 %333 }
  0x90   : > { %v328_v38 = vpop.xlane.xlu0 %327 }
  0x96   : > { %v361_v39 = vpop.xlane.xlu2 %360 }
  0x97   : > { %v337_v40 = vpop.xlane.xlu1 %336  ;;  %v368_v49 = vmax.f32 %v358_v36, %v361_v39 }
  0x98   : > { %v331_v41 = vpop.xlane.xlu0 %330  ;;  %v339_v42 = vmax.f32 %v334_v37, %v337_v40  ;;  %v415_v37 = vstv %s3134_s17  ;;  %s5804_s17 = scalar_lea.vmem %s5946_s7, %s3215_s11 }
  0x99   : > { %v338_v43 = vmax.f32 %v328_v38, %v331_v41 }
  0x9b   : > { %v340_v44 = vmax.f32 %v338_v43, %v339_v42  ;;  %v420_v43 = vstv %s419_s18 }
  0x9d   : > { %v341_v45 = vrot.slane %v340_v44, 4 }
  0x9e   : > { %v388_v46 = vpop.xlane.xlu2 %387 }
  0x9f   : > { %v367_v47 = vpop.xlane.xlu1 %366  ;;  %v342_v51 = vmax.f32 %v340_v44, %v341_v45  ;;  %v423_v44 = vstv %s3135_s19 }
  0xa0   : > { %v364_v48 = vpop.xlane.xlu0 %363 }
  0xa1   : > { %v369_v50 = vmax.f32 %v364_v48, %v367_v47  ;;  %v343_v54 = vrot.slane %v342_v51, 2 }
  0xa3   : > { %v370_v52 = vmax.f32 %v368_v49, %v369_v50  ;;  %v344_v62 = vmax.f32 %v342_v51, %v343_v54 }
  0xa5   : > { %v371_v53 = vrot.slane %v370_v52, 4  ;;  %v345_v15 = vrot.slane %v344_v62, 1 }
  0xa6   : > { %v397_v56 = vpop.xlane.xlu2 %396 }
  0xa7   : > { %v372_v55 = vmax.f32 %v370_v52, %v371_v53  ;;  %v394_v57 = vpop.xlane.xlu1 %393  ;;  %v346_v26 = vmax.f32 %v344_v62, %v345_v15  ;;  %v3351_v62 = vmov 32.0  }
  0xa8   : > { %v391_v58 = vpop.xlane.xlu0 %390  ;;  %v399_v60 = vmax.f32 %v394_v57, %v397_v56 }
  0xa9   : > { %v373_v59 = vrot.slane %v372_v55, 2  ;;  %v398_v61 = vmax.f32 %v388_v46, %v391_v58  ;;  %v409_v38 = vmul.f32 %v408_v34, %v346_v26  ;;  %v426_v46 = vstv %s3136_s20 }
  0xab   : > { %v374_v63 = vmax.f32 %v372_v55, %v373_v59  ;;  %v400_v3 = vmax.f32 %v398_v61, %v399_v60 }
  0xad   : > { %v375_v7 = vrot.slane %v374_v63, 1  ;;  %v401_v8 = vrot.slane %v400_v3, 4 }
  0xaf   : > { %v402_v16 = vmax.f32 %v400_v3, %v401_v8  ;;  %v376_v17 = vmax.f32 %v374_v63, %v375_v7 }
  0xb1   : > { %v403_v24 = vrot.slane %v402_v16, 2  ;;  %v412_v35 = vmul.f32 %v411_v25, %v376_v17 }
  0xb3   : > { %v404_v33 = vmax.f32 %v402_v16, %v403_v24  ;;  %v413_v40 = vadd.f32 %v412_v35, %v409_v38 }
  0xb5   : > { %v405_v36 = vrot.slane %v404_v33, 1 }
  0xb7   : > { %v406_v39 = vmax.f32 %v404_v33, %v405_v36 }
  0xb9   : > { %v416_v41 = vmul.f32 %v415_v37, %v406_v39 }
  0xbb   : > { %v417_v42 = vadd.f32 %v416_v41, %v413_v40 }
  0xbd   : > { %v418_v45 = vmax.f32 %v417_v42, 0.0 }
  0xbf   : > { %v421_v47 = vmul.f32 %v420_v43, %v418_v45  ;;  %v424_v48 = vmul.f32 %v423_v44, %v418_v45  ;;  %v427_v49 = vmul.f32 %v426_v46, %v418_v45 }
  0xc1   : > { %v428_v50 = vmax.f32 %v421_v47, %v424_v48 }
  0xc3   : > { %v429_v51 = vmax.f32 %v428_v50, %v427_v49 }
  0xc5   : > { %v430_v52 = vsub.f32 %v421_v47, %v429_v51  ;;  %v433_v53 = vsub.f32 %v424_v48, %v429_v51  ;;  %v436_v54 = vsub.f32 %v427_v49, %v429_v51 }
  0xc7   : > { %v431_v55 = vmul.f32 1.442695, %v430_v52  ;;  %v434_v56 = vmul.f32 1.442695, %v433_v53  ;;  %v437_v57 = vmul.f32 1.442695, %v436_v54 }
  0xc9   : > { %3264 = vpow2.f32 %v431_v55 }
  0xca   : > { %3266 = vpow2.f32 %v434_v56 }
  0xcb   : > { %3268 = vpow2.f32 %v437_v57 }
  0xcc   : > { %3270 = vrcp.f32 %v3351_v62 }
  0xcf   : > { %v3265_v58 = vpop.eup %3264 }
  0xd0   : > { %v3267_v59 = vpop.eup %3266 }
  0xd1   : > { %v439_v60 = vadd.f32 %v3267_v59, %v3265_v58  ;;  %v3269_v61 = vpop.eup %3268 }
  0xd2   : > { %v3526_v3 = vpop.eup %3270 }
  0xd3   : > { %v440_v63 = vadd.f32 %v3269_v61, %v439_v60  ;;  %v485_v8 = vmul.f32 32.0, %v3526_v3  ;;  %vm489_vm4 = vweird.f32 %v3526_v3 }
  0xd5   : > { %3272 = vrcp.f32 %v440_v63  ;;  %v452_v17 = vand.u32 2147483648, %v440_v63  ;;  %v486_v24 = vsub.f32 1.0, %v485_v8  ;;  %v450_v26 = vand.u32 2147483647, %v440_v63 }
  0xd6   : > { %vm446_vm1 = vweird.f32 %v440_v63 }
  0xd7   : > { %v453_v34 = vor.u32 1.1754944e-38, %v452_v17  ;;  %v487_v35 = vmul.f32 %v3526_v3, %v486_v24  ;;  %vm451_vm3 = vcmp.eq.f32.partialorder %v450_v26, 8.507059e+37 }
  0xd9   : > { %v488_v41 = vadd.f32 %v3526_v3, %v487_v35 }
  0xdb   : > { %v3273_v7 = vpop.eup %3272 }
  0xdc   : > { %v442_v15 = vmul.f32 %v3273_v7, %v440_v63  ;;  %vm447_vm0 = vweird.f32 %v3273_v7 }
  0xdd   : > { %vm448_vm2 = vmor %vm446_vm1, %vm447_vm0 }
  0xde   : > { %v443_v16 = vsub.f32 1.0, %v442_v15 }
  0xe0   : > { %v444_v25 = vmul.f32 %v3273_v7, %v443_v16 }
  0xe2   : > { %v445_v33 = vadd.f32 %v3273_v7, %v444_v25 }
  0xe4   : > { %v449_v36 = vsel %vm448_vm2, %v3273_v7, %v445_v33 }
  0xe5   : > { %v454_v37 = vsel %vm451_vm3, %v453_v34, %v449_v36  ;;  %vm716_vm3 = vcmask 588800  }
  0xe6   : > { %v455_v38 = vmul.f32 %v3265_v58, %v454_v37  ;;  %v3530_v39 = vmul.f32 %v3267_v59, %v454_v37  ;;  %v3532_v40 = vmul.f32 %v3269_v61, %v454_v37  ;;  %v3584_v37 = vsel %vm489_vm4, %v3526_v3, %v488_v41 }
  0xe8   : > { %v3536_v42 = vmul.f32 %v455_v38, %v3448_v6  ;;  %v3539_v43 = vmul.f32 %v455_v38, %v3470_v14  ;;  %v3542_v44 = vmul.f32 %v455_v38, %v3442_v4  ;;  %v3545_v45 = vmul.f32 %v455_v38, %v3464_v12 }
  0xe9   : > { %v512_v46 = vmul.f32 %v3434_v1, %v3530_v39  ;;  %v514_v47 = vmul.f32 %v3458_v10, %v3530_v39  ;;  %v516_v48 = vmul.f32 %v3494_v23, %v3530_v39  ;;  %v518_v49 = vmul.f32 %v3488_v21, %v3530_v39 }
  0xea   : > { %v475_v50 = vadd.f32 %v3539_v43, %v3536_v42  ;;  %v502_v4 = vmax.f32 %v3536_v42, %v3542_v44  ;;  %v503_v51 = vmax.f32 %v3539_v43, %v3545_v45  ;;  %v558_v1 = vmul.f32 %v3482_v19, %v3532_v40 }
  0xeb   : > { %v528_v52 = vadd.f32 %v514_v47, %v512_v46  ;;  %v548_v10 = vmax.f32 %v512_v46, %v516_v48  ;;  %v549_v53 = vmax.f32 %v514_v47, %v518_v49  ;;  %v560_v23 = vmul.f32 %v3518_v32, %v3532_v40 }
  0xec   : > { %v476_v21 = vadd.f32 %v475_v50, %v3542_v44  ;;  %v504_v54 = vmax.f32 %v502_v4, %v503_v51  ;;  %v562_v55 = vmul.f32 %v3512_v30, %v3532_v40  ;;  %v564_v56 = vmul.f32 %v3506_v28, %v3532_v40 }
  0xed   : > { %v529_v57 = vadd.f32 %v528_v52, %v516_v48  ;;  %v550_v58 = vmax.f32 %v548_v10, %v549_v53  ;;  %v574_v59 = vadd.f32 %v560_v23, %v558_v1  ;;  %v3571_v19 = vmul.f32 %v455_v38, %v3445_v5 }
  0xee   : > { %v477_v60 = vadd.f32 %v476_v21, %v3545_v45  ;;  %v505_v61 = vrot.slane %v504_v54, 4  ;;  %v594_v62 = vmax.f32 %v558_v1, %v562_v55  ;;  %v595_v32 = vmax.f32 %v560_v23, %v564_v56 }
  0xef   : > { %v530_v63 = vadd.f32 %v529_v57, %v518_v49  ;;  %v551_v7 = vrot.slane %v550_v58, 4  ;;  %v575_v8 = vadd.f32 %v574_v59, %v562_v55  ;;  %v3575_v15 = vmul.f32 %v455_v38, %v3467_v13 }
  0xf0   : > { %v478_v30 = vrot.slane %v477_v60, 4  ;;  %v506_v28 = vmax.f32 %v504_v54, %v505_v61  ;;  %v596_v16 = vmax.f32 %v594_v62, %v595_v32  ;;  %v3579_v26 = vmul.f32 %v455_v38, %v3437_v2 }
  0xf1   : > { %v531_v17 = vrot.slane %v530_v63, 4  ;;  %v552_v24 = vmax.f32 %v550_v58, %v551_v7  ;;  %v576_v25 = vadd.f32 %v575_v8, %v564_v56  ;;  %v466_v36 = vadd.f32 %v3575_v15, %v3571_v19 }
  0xf2   : > { %v479_v33 = vadd.f32 %v478_v30, %v477_v60  ;;  %v507_v34 = vrot.slane %v506_v28, 2  ;;  %v597_v35 = vrot.slane %v596_v16, 4  ;;  %v3587_v48 = vmul.f32 %v455_v38, %v3461_v11 }
  0xf3   : > { %v532_v46 = vadd.f32 %v531_v17, %v530_v63  ;;  %v577_v47 = vrot.slane %v576_v25, 4  ;;  %v553_v50 = vrot.slane %v552_v24, 2  ;;  %v467_v51 = vadd.f32 %v466_v36, %v3579_v26 }
  0xf4   : > { %v480_v49 = vrot.slane %v479_v33, 2  ;;  %v598_v4 = vmax.f32 %v596_v16, %v597_v35  ;;  %v508_v1 = vmax.f32 %v506_v28, %v507_v34  ;;  %v493_v38 = vmax.f32 %v3571_v19, %v3579_v26 }
  0xf5   : > { %v533_v52 = vrot.slane %v532_v46, 2  ;;  %v578_v10 = vadd.f32 %v577_v47, %v576_v25  ;;  %v468_v3 = vadd.f32 %v467_v51, %v3587_v48  ;;  %v554_v55 = vmax.f32 %v552_v24, %v553_v50 }
  0xf6   : > { %v481_v53 = vadd.f32 %v480_v49, %v479_v33  ;;  %v599_v23 = vrot.slane %v598_v4, 2  ;;  %v494_v57 = vmax.f32 %v3575_v15, %v3587_v48  ;;  %v509_v58 = vrot.slane %v508_v1, 1 }
  0xf7   : > { %v534_v41 = vadd.f32 %v533_v52, %v532_v46  ;;  %v579_v21 = vrot.slane %v578_v10, 2  ;;  %v469_v56 = vrot.slane %v468_v3, 4  ;;  %v3597_v32 = vmul.f32 %v3431_v0, %v3530_v39 }
  0xf8   : > { %v482_v54 = vrot.slane %v481_v53, 1  ;;  %v600_v62 = vmax.f32 %v598_v4, %v599_v23  ;;  %v3601_v30 = vmul.f32 %v3455_v9, %v3530_v39  ;;  %v555_v16 = vrot.slane %v554_v55, 1 }
  0xf9   : > { %v535_v59 = vrot.slane %v534_v41, 1  ;;  %v580_v60 = vadd.f32 %v579_v21, %v578_v10  ;;  %v470_v8 = vadd.f32 %v469_v56, %v468_v3  ;;  %v495_v17 = vmax.f32 %v493_v38, %v494_v57 }
  0xfa   : > { %v483_v61 = vadd.f32 %v482_v54, %v481_v53  ;;  %v3606_v24 = vmul.f32 %v3491_v22, %v3530_v39  ;;  %v510_v25 = vmax.f32 %v508_v1, %v509_v58  ;;  %v3611_v34 = vmul.f32 %v3485_v20, %v3530_v39 }
  0xfb   : > { %v536_v63 = vadd.f32 %v535_v59, %v534_v41  ;;  %v581_v7 = vrot.slane %v580_v60, 1  ;;  %v601_v35 = vrot.slane %v600_v62, 1  ;;  %v519_v9 = vadd.f32 %v3601_v30, %v3597_v32 }
  0xfc   : > { %v492_v28 = vmul.f32 %v3584_v37, %v483_v61  ;;  %v539_v36 = vmax.f32 %v3597_v32, %v3606_v24  ;;  %v3619_v46 = vmul.f32 %v3479_v18, %v3532_v40  ;;  %v471_v49 = vrot.slane %v470_v8, 2 }
  0xfd   : > { %v538_v33 = vmul.f32 %v536_v63, %v3584_v37  ;;  %v582_v0 = vadd.f32 %v581_v7, %v580_v60  ;;  %v540_v20 = vmax.f32 %v3601_v30, %v3611_v34  ;;  %v556_v50 = vmax.f32 %v554_v55, %v555_v16 }
  0xfe   : > { %v520_v4 = vadd.f32 %v519_v9, %v3606_v24  ;;  %v3628_v51 = vmul.f32 %v3515_v31, %v3532_v40  ;;  %v3632_v1 = vmul.f32 %v3509_v29, %v3532_v40  ;;  %v496_v52 = vrot.slane %v495_v17, 4 }
  0xff   : > { %v584_v22 = vmul.f32 %v582_v0, %v3584_v37  ;;  %v605_v47 = vsel %vm603_vm5, %v492_v28, %v538_v33  ;;  %v541_v10 = vmax.f32 %v539_v36, %v540_v20  ;;  %v3637_v53 = vmul.f32 %v3503_v27, %v3532_v40 }
 0x100   : > { %v602_v23 = vmax.f32 %v600_v62, %v601_v35  ;;  %v521_v41 = vadd.f32 %v520_v4, %v3611_v34  ;;  %v565_v31 = vadd.f32 %v3628_v51, %v3619_v46  ;;  %v472_v29 = vadd.f32 %v471_v49, %v470_v8 }
 0x101   : > { %v608_v18 = vsel %vm606_vm6, %v605_v47, %v584_v22  ;;  %v542_v38 = vrot.slane %v541_v10, 4  ;;  %v585_v54 = vmax.f32 %v3619_v46, %v3632_v1  ;;  %v497_v58 = vmax.f32 %v495_v17, %v496_v52 }
 0x102   : > { %v611_v3 = vsel %vm609_vm7, %v608_v18, %v510_v25  ;;  %v522_v56 = vrot.slane %v521_v41, 4  ;;  %v566_v27 = vadd.f32 %v565_v31, %v3632_v1  ;;  %v586_v59 = vmax.f32 %v3628_v51, %v3637_v53 }
 0x103   : > { %v614_v21 = vsel %vm612_vm8, %v611_v3, %v556_v50  ;;  %v543_v61 = vmax.f32 %v541_v10, %v542_v38  ;;  %v473_v63 = vrot.slane %v472_v29, 1  ;;  %v498_v16 = vrot.slane %v497_v58, 2 }
 0x104   : > { %v617_v55 = vsel %vm615_vm9, %v614_v21, %v602_v23  ;;  %v523_v60 = vadd.f32 %v522_v56, %v521_v41  ;;  %v567_v62 = vadd.f32 %v566_v27, %v3637_v53  ;;  %v587_v7 = vmax.f32 %v585_v54, %v586_v59 }
 0x105   : > { %v3649_v57 = vsel %vm618_vm10, %v617_v55, 0.0  ;;  %v544_v0 = vrot.slane %v543_v61, 2  ;;  %v474_v35 = vadd.f32 %v473_v63, %v472_v29  ;;  %v499_v47 = vmax.f32 %v497_v58, %v498_v16 }
 0x106   : > { %623 = vrot.lane.b32.xlu1 %v3649_v57, %s3352_s21  ;;  %v524_v8 = vrot.slane %v523_v60, 2  ;;  %v568_v28 = vrot.slane %v567_v62, 4  ;;  %v588_v25 = vrot.slane %v587_v7, 4 }
 0x107   : > { %v545_v50 = vmax.f32 %v543_v61, %v544_v0  ;;  %v491_v18 = vmul.f32 %v3584_v37, %v474_v35  ;;  %v500_v3 = vrot.slane %v499_v47, 1 }
 0x108   : > { %v525_v33 = vadd.f32 %v524_v8, %v523_v60  ;;  %v569_v17 = vadd.f32 %v568_v28, %v567_v62  ;;  %v589_v9 = vmax.f32 %v587_v7, %v588_v25 }
 0x109   : > { %v546_v41 = vrot.slane %v545_v50, 1  ;;  %v501_v54 = vmax.f32 %v499_v47, %v500_v3  ;;  %v3258_v47 = vld [vmem:[%s5942_s3 + $0x30] ss:$0 sm:$0xff] }
 0x10a   : > { %v526_v36 = vrot.slane %v525_v33, 1  ;;  %v570_v22 = vrot.slane %v569_v17, 2  ;;  %v590_v49 = vrot.slane %v589_v9, 2 }
 0x10b   : > { %v547_v55 = vmax.f32 %v545_v50, %v546_v41  ;;  %v3722_v50 = vld [vmem:[%s5942_s3] sm:$0xff] }
 0x10c   : > { %v527_v20 = vadd.f32 %v526_v36, %v525_v33  ;;  %v571_v4 = vadd.f32 %v570_v22, %v569_v17  ;;  %v591_v52 = vmax.f32 %v589_v9, %v590_v49  ;;  %v625_v36 = vlaneseq  ;;  %v3259_v49 = vld [vmem:[%s5942_s3 + $0x38] ss:$0 sm:$0xff] }
 0x10d   : > { %v3737_v3 = vperm.slane %v3722_v50, 6 }
 0x10e   : > { %647 = vrot.lane.b32.xlu1 %v3649_v57, %s3353_s22  ;;  %v537_v10 = vmul.f32 %v527_v20, %v3584_v37  ;;  %v572_v23 = vrot.slane %v571_v4, 1  ;;  %v592_v21 = vrot.slane %v591_v52, 1  ;;  %v3709_v22 = vand.u32 127, %v625_v36 }
 0x110   : > { %v573_v31 = vadd.f32 %v572_v23, %v571_v4  ;;  %v604_v29 = vsel %vm603_vm5, %v491_v18, %v537_v10  ;;  %v593_v27 = vmax.f32 %v591_v52, %v592_v21  ;;  %vm708_vm11 = vcmp.lt.s32.totalorder %v3709_v22, 111  ;;  %v3727_v4 = vld [vmem:[%s5942_s3 + $0x8] sm:$0xff] }
 0x111   : > { %vm697_vm12 = vcmp.lt.s32.totalorder %v3709_v22, 112  ;;  %v3730_v10 = vperm.slane %v3722_v50, 7  ;;  %v3733_v23 = vperm.slane %v3727_v4, 7  ;;  %vm686_vm13 = vcmp.lt.s32.totalorder %v3709_v22, 113 }
 0x112   : > { %v583_v38 = vmul.f32 %v573_v31, %v3584_v37  ;;  %vm675_vm14 = vcmp.lt.s32.totalorder %v3709_v22, 127  ;;  %vm660_vm15 = vcmp.lt.s32.totalorder %v3709_v22, 1  ;;  %vm649_vm0 = vcmp.lt.s32.totalorder %v3709_v22, 15 }
 0x113   : > { %6050 = vst [vmem:[#allocation10_spill] sm:$0xff] %v3733_v23  ;;  %vm638_vm1 = vcmp.lt.s32.totalorder %v3709_v22, 16  ;;  %vm627_vm2 = vcmp.lt.s32.totalorder %v3709_v22, 17 }
 0x114   : > { %v607_v56 = vsel %vm606_vm6, %v604_v29, %v583_v38 }
 0x115   : > { %v610_v58 = vsel %vm609_vm7, %v607_v56, %v501_v54 }
 0x116   : > { %v613_v59 = vsel %vm612_vm8, %v610_v58, %v547_v55  ;;  %v3748_v55 = vperm.slane %v3727_v4, 6 }
 0x117   : > { %v616_v60 = vsel %vm615_vm9, %v613_v59, %v593_v27 }
 0x118   : > { %v3667_v61 = vsel %vm618_vm10, %v616_v60, 0.0  ;;  %6051 = vst [vmem:[#allocation11_spill] sm:$0xff] %v3748_v55  ;;  %v3758_v60 = vperm.slane %v3722_v50, 5 }
 0x119   : > { %634 = vrot.lane.b32.xlu2 %v3667_v61, %s3354_s23  ;;  %621 = vrot.lane.b32.xlu0 %v3667_v61, %s3352_s21 }
 0x11a   : > { %671 = vrot.lane.b32.xlu1 %v3667_v61, %s3355_s26  ;;  %6052 = vst [vmem:[#allocation12_spill] sm:$0xff] %v3758_v60 }
 0x121   : > { %645 = vrot.lane.b32.xlu2 %v3667_v61, %s3353_s22  ;;  %636 = vrot.lane.b32.xlu0 %v3649_v57, %s3354_s23 }
 0x122   : > { %684 = vrot.lane.b32.xlu1 %v3649_v57, %s3356_s27 }
 0x129   : > { %658 = vrot.lane.b32.xlu2 %v3649_v57, %s3357_s28  ;;  %656 = vrot.lane.b32.xlu0 %v3667_v61, %s3357_s28 }
 0x12a   : > { %704 = vrot.lane.b32.xlu1 %v3667_v61, %s3358_s29 }
 0x131   : > { %682 = vrot.lane.b32.xlu2 %v3667_v61, %s3356_s27  ;;  %673 = vrot.lane.b32.xlu0 %v3649_v57, %s3355_s26 }
 0x139   : > { %695 = vrot.lane.b32.xlu2 %v3649_v57, %s3359_s30  ;;  %693 = vrot.lane.b32.xlu0 %v3667_v61, %s3359_s30 }
 0x141   : > { %706 = vrot.lane.b32.xlu0 %v3649_v57, %s3358_s29 }
 0x173   : > { %v3697_v37 = vpop.permute.xlu2 %634 }
 0x178   : > { %v3699_v62 = vpop.permute.xlu1 %623 }
 0x17b   : > { %v3705_v8 = vpop.permute.xlu2 %645 }
 0x180   : > { %v3707_v28 = vpop.permute.xlu1 %647 }
 0x183   : > { %v659_v25 = vpop.permute.xlu2 %658 }
 0x18b   : > { %v3701_v63 = vpop.permute.xlu0 %621  ;;  %v683_v17 = vpop.permute.xlu2 %682 }
 0x18c   : > { %v672_v33 = vpop.permute.xlu1 %671 }
 0x193   : > { %v3703_v7 = vpop.permute.xlu0 %636  ;;  %v696_v20 = vpop.permute.xlu2 %695 }
 0x194   : > { %v685_v35 = vpop.permute.xlu1 %684 }
 0x195   : > { %v687_v56 = vsel %vm686_vm13, %v683_v17, %v685_v35  ;;  %v688_v27 = vsel %vm686_vm13, %v685_v35, %v683_v17  ;;  %v3768_v17 = vperm.slane %v3727_v4, 4 }
 0x196   : > { %v691_v35 = vmul.f32 %v3737_v3, %v687_v56  ;;  %v3812_v56 = vperm.slane %v3722_v50, 1 }
 0x197   : > { %6054 = vst [vmem:[#allocation14_spill] sm:$0xff] %v3768_v17 }
 0x198   : > { %6057 = vst [vmem:[#allocation17_spill] sm:$0xff] %v3812_v56 }
 0x19b   : > { %v657_v16 = vpop.permute.xlu0 %656 }
 0x19c   : > { %v705_v18 = vpop.permute.xlu1 %704 }
 0x1a3   : > { %v674_v0 = vpop.permute.xlu0 %673 }
 0x1a4   : > { %v676_v36 = vsel %vm675_vm14, %v672_v33, %v674_v0 }
 0x1ab   : > { %v694_v9 = vpop.permute.xlu0 %693 }
 0x1ac   : > { %v698_v21 = vsel %vm697_vm12, %v694_v9, %v696_v20  ;;  %v699_v29 = vsel %vm697_vm12, %v696_v20, %v694_v9  ;;  %v3761_v9 = vperm.slane %v3727_v4, 5  ;;  %v3773_v20 = vperm.slane %v3722_v50, 4 }
 0x1ad   : > { %v702_v58 = vmul.f32 %v3730_v10, %v698_v21  ;;  %v703_v59 = vmul.f32 %v3733_v23, %v699_v29  ;;  %v661_v21 = vsel %vm660_vm15, %v657_v16, %v659_v25 }
 0x1ae   : > { %6053 = vst [vmem:[#allocation13_spill] sm:$0xff] %v3761_v9  ;;  %v669_v29 = vmul.f32 %v3773_v20, %v3667_v61 }
 0x1af   : > { %6055 = vst [vmem:[#allocation15_spill] sm:$0xff] %v3773_v20 }
 0x1b3   : > { %v707_v52 = vpop.permute.xlu0 %706 }
 0x1b4   : > { %v709_v41 = vsel %vm708_vm11, %v705_v18, %v707_v52  ;;  %v710_v31 = vsel %vm708_vm11, %v707_v52, %v705_v18  ;;  %v3780_v18 = vperm.slane %v3722_v50, 3  ;;  %v3783_v52 = vperm.slane %v3727_v4, 3 }
 0x1b5   : > { %v713_v38 = vmul.f32 %v3258_v47, %v709_v41  ;;  %v714_v54 = vmul.f32 %v3259_v49, %v710_v31  ;;  %v677_v47 = vsel %vm675_vm14, %v674_v0, %v672_v33  ;;  %v692_v49 = vmul.f32 %v3748_v55, %v688_v27 }
 0x1b6   : > { %v680_v33 = vmul.f32 %v3758_v60, %v676_v36  ;;  %v681_v0 = vmul.f32 %v3761_v9, %v677_v47  ;;  %v670_v41 = vmul.f32 %v3768_v17, %v3649_v57  ;;  %v662_v31 = vsel %vm660_vm15, %v659_v25, %v657_v16 }
 0x1b7   : > { %727 = vmatpush.msra.mxu0 %v713_v38  ;;  %747 = vmatpush.msra.mxu1 %v714_v54  ;;  %v3794_v38 = vperm.slane %v3722_v50, 2  ;;  %v3797_v54 = vperm.slane %v3727_v4, 2  ;;  %v651_v57 = vsel %vm649_vm0, %v3707_v28, %v3705_v8  ;;  %v650_v16 = vsel %vm649_vm0, %v3705_v8, %v3707_v28 }
 0x1b8   : > { %v665_v61 = vmul.f32 %v3780_v18, %v662_v31  ;;  %v666_v25 = vmul.f32 %v3783_v52, %v661_v21  ;;  %v3815_v27 = vperm.slane %v3727_v4, 1  ;;  %v639_v8 = vsel %vm638_vm1, %v3697_v37, %v3703_v7 }
 0x1b9   : > { %728 = vmatpush.msra.mxu0 %v702_v58  ;;  %748 = vmatpush.msra.mxu1 %v703_v59  ;;  %6056 = vst [vmem:[#allocation16_spill] sm:$0xff] %v3794_v38  ;;  %v640_v58 = vsel %vm638_vm1, %v3703_v7, %v3697_v37  ;;  %v654_v28 = vmul.f32 %v3794_v38, %v651_v57  ;;  %v3828_v36 = vperm.slane %v3722_v50, 0  ;;  %v3831_v47 = vperm.slane %v3727_v4, 0 }
 0x1ba   : > { %v655_v59 = vmul.f32 %v3797_v54, %v650_v16  ;;  %v628_v37 = vsel %vm627_vm2, %v3701_v63, %v3699_v62  ;;  %v643_v7 = vmul.f32 %v3812_v56, %v640_v58  ;;  %v644_v50 = vmul.f32 %v3815_v27, %v639_v8 }
 0x1bb   : > { %729 = vmatpush.msra.mxu0 %v691_v35  ;;  %749 = vmatpush.msra.mxu1 %v692_v49  ;;  %6058 = vst [vmem:[#allocation18_spill] sm:$0xff] %v3828_v36  ;;  %v629_v35 = vsel %vm627_vm2, %v3699_v62, %v3701_v63  ;;  %v633_v49 = vmul.f32 %v3831_v47, %v628_v37 }
 0x1bc   : > { %v632_v4 = vmul.f32 %v3828_v36, %v629_v35 }
 0x1bd   : > { %730 = vmatpush.msra.mxu0 %v680_v33  ;;  %750 = vmatpush.msra.mxu1 %v681_v0  ;;  %v715_v33 = vld [vmem:[%s5943_s4] sm:$0xff] }
 0x1bf   : > { %731 = vmatpush.msra.mxu0 %v669_v29  ;;  %751 = vmatpush.msra.mxu1 %v670_v41 }
 0x1c1   : > { %732 = vmatpush.msra.mxu0 %v665_v61  ;;  %752 = vmatpush.msra.mxu1 %v666_v25 }
 0x1c3   : > { %733 = vmatpush.msra.mxu0 %v654_v28  ;;  %753 = vmatpush.msra.mxu1 %v655_v59 }
 0x1c5   : > { %734 = vmatpush.msra.mxu0 %v643_v7  ;;  %754 = vmatpush.msra.mxu1 %v644_v50 }
 0x1c7   : > { %735 = vmatpush.msra.mxu0 %v632_v4  ;;  %755 = vmatpush.msra.mxu1 %v633_v49 }
 0x1c8   : > { %3137 = vmatmul.msk.f32.vlgmr.msra.gmra.mxu0 %vm716_vm3, %v715_v33  ;;  %3138 = vmatmul.msk.f32.vlgmr.msra.gmra.mxu1 %vm716_vm3, %v715_v33 }
 0x245   : > { %v737_v62 = vpop.f32.mrf.mxu0  ;;  %v757_v63 = vpop.f32.mrf.mxu1 }
 0x246   : > { %v3139_v0 = vmul.f32 -1.442695, %v737_v62  ;;  %v3140_v41 = vmul.f32 -1.442695, %v757_v63 }
 0x248   : > { %3274 = vpow2.f32 %v3139_v0 }
 0x249   : > { %3276 = vpow2.f32 %v3140_v41 }
 0x24e   : > { %v3275_v31 = vpop.eup %3274 }
 0x24f   : > { %v3277_v21 = vpop.eup %3276  ;;  %v766_v29 = vadd.f32 1.0, %v3275_v31 }
 0x250   : > { %v767_v57 = vadd.f32 1.0, %v3277_v21 }
 0x251   : > { %3278 = vrcp.f32 %v766_v29  ;;  %v779_v28 = vand.u32 2147483648, %v766_v29  ;;  %v777_v37 = vand.u32 2147483647, %v766_v29  ;;  %vm773_vm5 = vweird.f32 %v766_v29 }
 0x252   : > { %3280 = vrcp.f32 %v767_v57  ;;  %vm788_vm7 = vweird.f32 %v767_v57  ;;  %v794_v62 = vand.u32 2147483648, %v767_v57  ;;  %v792_v0 = vand.u32 2147483647, %v767_v57 }
 0x253   : > { %v780_v4 = vor.u32 1.1754944e-38, %v779_v28  ;;  %vm778_vm9 = vcmp.eq.f32.partialorder %v777_v37, 8.507059e+37 }
 0x254   : > { %vm793_vm3 = vcmp.eq.f32.partialorder %v792_v0, 8.507059e+37 }
 0x257   : > { %v3279_v16 = vpop.eup %3278 }
 0x258   : > { %v3281_v61 = vpop.eup %3280  ;;  %v769_v25 = vmul.f32 %v3279_v16, %v766_v29  ;;  %vm774_vm4 = vweird.f32 %v3279_v16 }
 0x259   : > { %v784_v58 = vmul.f32 %v3281_v61, %v767_v57  ;;  %vm775_vm6 = vmor %vm773_vm5, %vm774_vm4  ;;  %vm789_vm8 = vweird.f32 %v3281_v61 }
 0x25a   : > { %v770_v8 = vsub.f32 1.0, %v769_v25  ;;  %vm790_vm10 = vmor %vm788_vm7, %vm789_vm8 }
 0x25b   : > { %v785_v59 = vsub.f32 1.0, %v784_v58  ;;  %v795_v58 = vor.u32 1.1754944e-38, %v794_v62 }
 0x25c   : > { %v771_v35 = vmul.f32 %v3279_v16, %v770_v8 }
 0x25d   : > { %v786_v7 = vmul.f32 %v3281_v61, %v785_v59 }
 0x25e   : > { %v772_v50 = vadd.f32 %v3279_v16, %v771_v35 }
 0x25f   : > { %v787_v49 = vadd.f32 %v3281_v61, %v786_v7 }
 0x260   : > { %v776_v33 = vsel %vm775_vm6, %v3279_v16, %v772_v50 }
 0x261   : > { %v3848_v63 = vsel %vm778_vm9, %v780_v4, %v776_v33  ;;  %v791_v31 = vsel %vm790_vm10, %v3281_v61, %v787_v49 }
 0x262   : > { %v798_v41 = vperm.slane %v3848_v63, 0  ;;  %v3857_v59 = vsel %vm793_vm3, %v795_v58, %v791_v31 }
 0x263   : > { %v799_v7 = vperm.slane %v3857_v59, 0 }
 0x264   : > { %v800_v21 = vmul.f32 %v798_v41, %v3571_v19  ;;  %v802_v25 = vmul.f32 %v798_v41, %v3575_v15  ;;  %v804_v29 = vmul.f32 %v798_v41, %v3579_v26  ;;  %v806_v61 = vmul.f32 %v798_v41, %v3587_v48 }
 0x265   : > { %v801_v49 = vmul.f32 %v799_v7, %v3536_v42  ;;  %v803_v33 = vmul.f32 %v799_v7, %v3539_v43  ;;  %v807_v62 = vmul.f32 %v799_v7, %v3545_v45 }
 0x266   : > { %v808_v8 = vadd.f32 %v800_v21, %v3571_v19  ;;  %v810_v16 = vadd.f32 %v802_v25, %v3575_v15  ;;  %v812_v28 = vadd.f32 %v804_v29, %v3579_v26  ;;  %v856_v15 = vperm.slane %v3848_v63, 1 }
 0x267   : > { %v814_v26 = vadd.f32 %v806_v61, %v3587_v48  ;;  %v805_v48 = vmul.f32 %v799_v7, %v3542_v44  ;;  %v815_v29 = vadd.f32 %v807_v62, %v3545_v45 }
 0x268   : > { %v816_v57 = vmul.f32 3.0, %v808_v8  ;;  %v818_v35 = vmul.f32 3.0, %v810_v16  ;;  %v820_v37 = vmul.f32 3.0, %v812_v28  ;;  %v860_v45 = vmul.f32 %v856_v15, %v3601_v30  ;;  %v3146_v8 = vld [vmem:[%s3428_s14 + $0x68] sm:$0xff]  ;;  %v3282_v28 = vld [vmem:[%s3428_s14 + $0x40] sm:$0xff] }
 0x269   : > { %v822_v0 = vmul.f32 3.0, %v814_v26  ;;  %v813_v58 = vadd.f32 %v805_v48, %v3542_v44  ;;  %v3142_v26 = vld [vmem:[%s3428_s14 + $0x48] sm:$0xff]  ;;  %v3284_v48 = vld [vmem:[%s3428_s14 + $0x70] sm:$0xff] }
 0x26a   : > { %v3862_v50 = vadd.f32 %v816_v57, %v3445_v5  ;;  %v3865_v4 = vadd.f32 %v818_v35, %v3467_v13  ;;  %v3868_v19 = vadd.f32 %v820_v37, %v3437_v2  ;;  %v858_v2 = vmul.f32 %v856_v15, %v3597_v32  ;;  %v3144_v35 = vld [vmem:[%s3428_s14 + $0x58] sm:$0xff] }
 0x26b   : > { %v809_v5 = vadd.f32 %v801_v49, %v3536_v42  ;;  %v811_v13 = vadd.f32 %v803_v33, %v3539_v43  ;;  %v3894_v43 = vadd.f32 %v822_v0, %v3461_v11  ;;  %v823_v11 = vmul.f32 3.0, %v815_v29  ;;  %v3285_v29 = vld [vmem:[%s3428_s14 + $0x60] sm:$0xff] }
 0x26c   : > { %984 = vrot.lane.b32.xlu0 %v3868_v19, %s3352_s21  ;;  %982 = vrot.lane.b32.xlu1 %v3865_v4, %s3352_s21  ;;  %v866_v21 = vadd.f32 %v858_v2, %v3597_v32  ;;  %v821_v44 = vmul.f32 3.0, %v813_v58  ;;  %v857_v37 = vperm.slane %v3857_v59, 1  ;;  %v868_v49 = vadd.f32 %v860_v45, %v3601_v30 }
 0x26d   : > { %980 = vrot.lane.b32.xlu2 %v3862_v50, %s3352_s21  ;;  %v817_v41 = vmul.f32 3.0, %v809_v5  ;;  %v819_v31 = vmul.f32 3.0, %v811_v13  ;;  %v3915_v7 = vadd.f32 %v823_v11, %v3464_v12  ;;  %v851_v2 = vmul.f32 %v3144_v35, %v3530_v39 }
 0x26e   : > { %v874_v32 = vmul.f32 3.0, %v866_v21  ;;  %v876_v62 = vmul.f32 3.0, %v868_v49 }
 0x26f   : > { %v3887_v25 = vadd.f32 %v819_v31, %v3470_v14  ;;  %v3891_v42 = vadd.f32 %v817_v41, %v3448_v6  ;;  %v864_v14 = vmul.f32 %v856_v15, %v3611_v34  ;;  %v862_v6 = vmul.f32 %v856_v15, %v3606_v24  ;;  %6062 = vst [vmem:[#allocation22_spill] sm:$0xff] %v3915_v7  ;;  %v3283_v15 = vld [vmem:[%s3428_s14 + $0x28] sm:$0xff] }
 0x270   : > { %v3909_v57 = vadd.f32 %v3282_v28, %v874_v32  ;;  %v3920_v33 = vadd.f32 %v3283_v15, %v821_v44  ;;  %v861_v13 = vmul.f32 %v857_v37, %v851_v2  ;;  %v914_v31 = vperm.slane %v3848_v63, 2 }
 0x271   : > { %6059 = vst [vmem:[#allocation19_spill] sm:$0xff] %v3887_v25  ;;  %v872_v16 = vadd.f32 %v864_v14, %v3611_v34  ;;  %v870_v61 = vadd.f32 %v862_v6, %v3606_v24  ;;  %v853_v34 = vmul.f32 %v3146_v8, %v3530_v39  ;;  %v849_v24 = vmul.f32 %v3142_v26, %v3530_v39  ;;  %v3148_v14 = vld [vmem:[%s3428_s14 + $0x78] sm:$0xff]  ;;  %v3286_v6 = vld [vmem:[%s3428_s14 + $0x50] sm:$0xff] }
 0x272   : > { %6060 = vst [vmem:[#allocation20_spill] sm:$0xff] %v3891_v42  ;;  %v869_v32 = vadd.f32 %v861_v13, %v851_v2  ;;  %v3940_v11 = vadd.f32 %v3286_v6, %v876_v62  ;;  %v918_v44 = vmul.f32 %v914_v31, %v3628_v51  ;;  %v855_v63 = vmul.f32 %v3148_v14, %v3530_v39  ;;  %v3156_v62 = vld [vmem:[%s3428_s14 + $0xb8] sm:$0xff]  ;;  %v3288_v6 = vld [vmem:[%s3428_s14 + $0x80] sm:$0xff] }
 0x273   : > { %6061 = vst [vmem:[#allocation21_spill] sm:$0xff] %v3909_v57  ;;  %v880_v12 = vmul.f32 3.0, %v872_v16  ;;  %v863_v30 = vmul.f32 %v857_v37, %v853_v34  ;;  %v878_v5 = vmul.f32 3.0, %v870_v61  ;;  %v859_v0 = vmul.f32 %v857_v37, %v849_v24 }
 0x274   : > { %990 = vrot.lane.b32.xlu0 %v3887_v25, %s3352_s21  ;;  %988 = vrot.lane.b32.xlu1 %v3891_v42, %s3352_s21  ;;  %6063 = vst [vmem:[#allocation23_spill] sm:$0xff] %v3920_v33  ;;  %v916_v28 = vmul.f32 %v914_v31, %v3619_v46  ;;  %v877_v61 = vmul.f32 3.0, %v869_v32  ;;  %v865_v49 = vmul.f32 %v857_v37, %v855_v63 }
 0x275   : > { %986 = vrot.lane.b32.xlu2 %v3894_v43, %s3352_s21  ;;  %v3932_v41 = vadd.f32 %v3284_v48, %v880_v12  ;;  %v871_v21 = vadd.f32 %v863_v30, %v853_v34  ;;  %v3936_v58 = vadd.f32 %v3285_v29, %v878_v5  ;;  %6066 = vst [vmem:[#allocation26_spill] sm:$0xff] %v3940_v11  ;;  %v3150_v34 = vld [vmem:[%s3428_s14 + $0x88] sm:$0xff] }
 0x276   : > { %v867_v45 = vadd.f32 %v859_v0, %v849_v24  ;;  %v926_v2 = vadd.f32 %v918_v44, %v3628_v51  ;;  %v915_v24 = vperm.slane %v3857_v59, 2  ;;  %v924_v39 = vadd.f32 %v916_v28, %v3619_v46  ;;  %v3287_v0 = vld [vmem:[%s3428_s14 + $0x90] sm:$0xff]  ;;  %v3152_v44 = vld [vmem:[%s3428_s14 + $0x98] sm:$0xff] }
 0x277   : > { %6064 = vst [vmem:[#allocation24_spill] sm:$0xff] %v3932_v41  ;;  %v879_v16 = vmul.f32 3.0, %v871_v21  ;;  %v3957_v30 = vadd.f32 %v3144_v35, %v877_v61  ;;  %v873_v5 = vadd.f32 %v865_v49, %v855_v63  ;;  %v907_v37 = vmul.f32 %v3150_v34, %v3532_v40  ;;  %v3154_v21 = vld [vmem:[%s3428_s14 + $0xa8] sm:$0xff] }
 0x278   : > { %6065 = vst [vmem:[#allocation25_spill] sm:$0xff] %v3936_v58  ;;  %v875_v15 = vmul.f32 3.0, %v867_v45  ;;  %v934_v51 = vmul.f32 3.0, %v926_v2  ;;  %v922_v46 = vmul.f32 %v914_v31, %v3637_v53  ;;  %v920_v35 = vmul.f32 %v914_v31, %v3632_v1 }
 0x279   : > { %v3953_v12 = vadd.f32 %v3146_v8, %v879_v16  ;;  %v917_v59 = vmul.f32 %v915_v24, %v907_v37  ;;  %v932_v8 = vmul.f32 3.0, %v924_v39  ;;  %v913_v31 = vmul.f32 %v3156_v62, %v3532_v40 }
 0x27a   : > { %v3959_v13 = vadd.f32 %v3142_v26, %v875_v15  ;;  %v881_v26 = vmul.f32 3.0, %v873_v5  ;;  %v3972_v48 = vadd.f32 %v3287_v0, %v934_v51  ;;  %v930_v32 = vadd.f32 %v922_v46, %v3637_v53  ;;  %v3290_v46 = vld [vmem:[%s3428_s14 + $0xa0] sm:$0xff] }
 0x27b   : > { %v925_v29 = vadd.f32 %v917_v59, %v907_v37  ;;  %v3977_v45 = vadd.f32 %v3288_v6, %v932_v8  ;;  %v928_v63 = vadd.f32 %v920_v35, %v3632_v1  ;;  %v911_v28 = vmul.f32 %v3154_v21, %v3532_v40  ;;  %v3289_v37 = vld [vmem:[%s3428_s14 + $0xb0] sm:$0xff] }
 0x27c   : > { %996 = vrot.lane.b32.xlu0 %v3909_v57, %s3352_s21  ;;  %994 = vrot.lane.b32.xlu1 %v3915_v7, %s3352_s21  ;;  %6067 = vst [vmem:[#allocation27_spill] sm:$0xff] %v3972_v48  ;;  %v3981_v16 = vadd.f32 %v3148_v14, %v881_v26  ;;  %v909_v53 = vmul.f32 %v3152_v44, %v3532_v40  ;;  %v938_v1 = vmul.f32 3.0, %v930_v32 }
 0x27d   : > { %992 = vrot.lane.b32.xlu2 %v3920_v33, %s3352_s21  ;;  %6068 = vst [vmem:[#allocation28_spill] sm:$0xff] %v3977_v45  ;;  %v923_v61 = vmul.f32 %v915_v24, %v913_v31  ;;  %v933_v49 = vmul.f32 3.0, %v925_v29  ;;  %v921_v14 = vmul.f32 %v915_v24, %v911_v28  ;;  %v936_v15 = vmul.f32 3.0, %v928_v63 }
 0x27e   : > { %v919_v2 = vmul.f32 %v915_v24, %v909_v53  ;;  %v3995_v51 = vadd.f32 %v3289_v37, %v938_v1 }
 0x27f   : > { %v931_v39 = vadd.f32 %v923_v61, %v913_v31  ;;  %v3992_v5 = vadd.f32 %v3150_v34, %v933_v49  ;;  %v929_v59 = vadd.f32 %v921_v14, %v911_v28  ;;  %v3998_v8 = vadd.f32 %v3290_v46, %v936_v15 }
 0x280   : > { %v927_v40 = vadd.f32 %v919_v2, %v909_v53 }
 0x281   : > { %6069 = vst [vmem:[#allocation29_spill] sm:$0xff] %v3992_v5  ;;  %v939_v35 = vmul.f32 3.0, %v931_v39  ;;  %v937_v34 = vmul.f32 3.0, %v929_v59 }
 0x282   : > { %6070 = vst [vmem:[#allocation30_spill] sm:$0xff] %v3998_v8  ;;  %v935_v24 = vmul.f32 3.0, %v927_v40 }
 0x283   : > { %v4006_v26 = vadd.f32 %v3156_v62, %v939_v35  ;;  %v4008_v0 = vadd.f32 %v3154_v21, %v937_v34 }
 0x284   : > { %1002 = vrot.lane.b32.xlu0 %v3932_v41, %s3352_s21  ;;  %1000 = vrot.lane.b32.xlu1 %v3936_v58, %s3352_s21  ;;  %v4010_v29 = vadd.f32 %v3152_v44, %v935_v24 }
 0x285   : > { %998 = vrot.lane.b32.xlu2 %v3940_v11, %s3352_s21  ;;  %6071 = vst [vmem:[#allocation31_spill] sm:$0xff] %v4006_v26 }
 0x286   : > { %6072 = vst [vmem:[#allocation32_spill] sm:$0xff] %v4008_v0 }
 0x287   : > { %6073 = vst [vmem:[#allocation33_spill] sm:$0xff] %v4010_v29 }
 0x28c   : > { %1008 = vrot.lane.b32.xlu0 %v3953_v12, %s3352_s21  ;;  %1006 = vrot.lane.b32.xlu1 %v3957_v30, %s3352_s21 }
 0x28d   : > { %1004 = vrot.lane.b32.xlu2 %v3959_v13, %s3352_s21 }
 0x294   : > { %1014 = vrot.lane.b32.xlu0 %v3972_v48, %s3352_s21  ;;  %1012 = vrot.lane.b32.xlu1 %v3977_v45, %s3352_s21 }
 0x295   : > { %1010 = vrot.lane.b32.xlu2 %v3981_v16, %s3352_s21 }
 0x29c   : > { %1020 = vrot.lane.b32.xlu0 %v3992_v5, %s3352_s21  ;;  %1018 = vrot.lane.b32.xlu1 %v3995_v51, %s3352_s21 }
 0x29d   : > { %1016 = vrot.lane.b32.xlu2 %v3998_v8, %s3352_s21 }
 0x2a4   : > { %1026 = vrot.lane.b32.xlu0 %v4006_v26, %s3352_s21  ;;  %1024 = vrot.lane.b32.xlu1 %v4008_v0, %s3352_s21 }
 0x2a5   : > { %1022 = vrot.lane.b32.xlu2 %v4010_v29, %s3352_s21 }
 0x2ac   : > { %1132 = vrot.lane.b32.xlu0 %v3868_v19, %s3354_s23  ;;  %1130 = vrot.lane.b32.xlu1 %v3865_v4, %s3354_s23 }
 0x2ad   : > { %1128 = vrot.lane.b32.xlu2 %v3862_v50, %s3354_s23 }
 0x2b4   : > { %1138 = vrot.lane.b32.xlu0 %v3887_v25, %s3354_s23  ;;  %1136 = vrot.lane.b32.xlu1 %v3891_v42, %s3354_s23 }
 0x2b5   : > { %1134 = vrot.lane.b32.xlu2 %v3894_v43, %s3354_s23 }
 0x2bc   : > { %1144 = vrot.lane.b32.xlu0 %v3909_v57, %s3354_s23  ;;  %1142 = vrot.lane.b32.xlu1 %v3915_v7, %s3354_s23 }
 0x2bd   : > { %1140 = vrot.lane.b32.xlu2 %v3920_v33, %s3354_s23 }
 0x2c4   : > { %1150 = vrot.lane.b32.xlu0 %v3932_v41, %s3354_s23  ;;  %1148 = vrot.lane.b32.xlu1 %v3936_v58, %s3354_s23 }
 0x2c5   : > { %1146 = vrot.lane.b32.xlu2 %v3940_v11, %s3354_s23 }
 0x2c7   : > { %v4042_v62 = vpop.permute.xlu2 %980 }
 0x2cc   : > { %1156 = vrot.lane.b32.xlu0 %v3953_v12, %s3354_s23  ;;  %1154 = vrot.lane.b32.xlu1 %v3957_v30, %s3354_s23 }
 0x2cd   : > { %1152 = vrot.lane.b32.xlu2 %v3959_v13, %s3354_s23 }
 0x2cf   : > { %v4050_v21 = vpop.permute.xlu2 %986 }
 0x2d4   : > { %1162 = vrot.lane.b32.xlu0 %v3972_v48, %s3354_s23  ;;  %1160 = vrot.lane.b32.xlu1 %v3977_v45, %s3354_s23 }
 0x2d5   : > { %1158 = vrot.lane.b32.xlu2 %v3981_v16, %s3354_s23 }
 0x2d7   : > { %v4058_v32 = vpop.permute.xlu2 %992 }
 0x2dc   : > { %1168 = vrot.lane.b32.xlu0 %v3992_v5, %s3354_s23  ;;  %1166 = vrot.lane.b32.xlu1 %v3995_v51, %s3354_s23 }
 0x2dd   : > { %1164 = vrot.lane.b32.xlu2 %v3998_v8, %s3354_s23 }
 0x2de   : > { %v4064_v6 = vpop.permute.xlu0 %984  ;;  %v4068_v44 = vpop.permute.xlu1 %982 }
 0x2df   : > { %v4070_v63 = vpop.permute.xlu2 %998 }
 0x2e0   : > { %6074 = vst [vmem:[#allocation34_spill] sm:$0xff] %v4070_v63 }
 0x2e4   : > { %1174 = vrot.lane.b32.xlu0 %v4006_v26, %s3354_s23  ;;  %1172 = vrot.lane.b32.xlu1 %v4008_v0, %s3354_s23 }
 0x2e5   : > { %1170 = vrot.lane.b32.xlu2 %v4010_v29, %s3354_s23 }
 0x2e6   : > { %v4078_v31 = vpop.permute.xlu0 %990  ;;  %v4080_v28 = vpop.permute.xlu1 %988 }
 0x2e7   : > { %6075 = vst [vmem:[#allocation35_spill] sm:$0xff] %v4080_v28  ;;  %v4082_v53 = vpop.permute.xlu2 %1004 }
 0x2e8   : > { %6076 = vst [vmem:[#allocation36_spill] sm:$0xff] %v4082_v53 }
 0x2ec   : > { %1280 = vrot.lane.b32.xlu0 %v3868_v19, %s3353_s22  ;;  %1278 = vrot.lane.b32.xlu1 %v3865_v4, %s3353_s22 }
 0x2ed   : > { %1276 = vrot.lane.b32.xlu2 %v3862_v50, %s3353_s22 }
 0x2ee   : > { %v4090_v61 = vpop.permute.xlu0 %996  ;;  %v4092_v49 = vpop.permute.xlu1 %994 }
 0x2ef   : > { %6077 = vst [vmem:[#allocation37_spill] sm:$0xff] %v4090_v61  ;;  %v4094_v1 = vpop.permute.xlu2 %1010 }
 0x2f0   : > { %6078 = vst [vmem:[#allocation38_spill] sm:$0xff] %v4094_v1 }
 0x2f4   : > { %1286 = vrot.lane.b32.xlu0 %v3887_v25, %s3353_s22  ;;  %1284 = vrot.lane.b32.xlu1 %v3891_v42, %s3353_s22 }
 0x2f5   : > { %1282 = vrot.lane.b32.xlu2 %v3894_v43, %s3353_s22 }
 0x2f6   : > { %v4102_v14 = vpop.permute.xlu0 %1002  ;;  %v4104_v15 = vpop.permute.xlu1 %1000 }
 0x2f7   : > { %6079 = vst [vmem:[#allocation39_spill] sm:$0xff] %v4102_v14  ;;  %v4106_v2 = vpop.permute.xlu2 %1016 }
 0x2f8   : > { %6080 = vst [vmem:[#allocation40_spill] sm:$0xff] %v4104_v15 }
 0x2f9   : > { %6081 = vst [vmem:[#allocation41_spill] sm:$0xff] %v4106_v2 }
 0x2fc   : > { %1292 = vrot.lane.b32.xlu0 %v3909_v57, %s3353_s22  ;;  %1290 = vrot.lane.b32.xlu1 %v3915_v7, %s3353_s22 }
 0x2fd   : > { %1288 = vrot.lane.b32.xlu2 %v3920_v33, %s3353_s22 }
 0x2fe   : > { %v4114_v39 = vpop.permute.xlu0 %1008  ;;  %v4116_v37 = vpop.permute.xlu1 %1006 }
 0x2ff   : > { %6082 = vst [vmem:[#allocation42_spill] sm:$0xff] %v4114_v39  ;;  %v4118_v59 = vpop.permute.xlu2 %1022 }
 0x300   : > { %6083 = vst [vmem:[#allocation43_spill] sm:$0xff] %v4116_v37 }
 0x301   : > { %6084 = vst [vmem:[#allocation44_spill] sm:$0xff] %v4118_v59 }
 0x304   : > { %1298 = vrot.lane.b32.xlu0 %v3932_v41, %s3353_s22  ;;  %1296 = vrot.lane.b32.xlu1 %v3936_v58, %s3353_s22 }
 0x305   : > { %1294 = vrot.lane.b32.xlu2 %v3940_v11, %s3353_s22 }
 0x306   : > { %v4126_v46 = vpop.permute.xlu0 %1014  ;;  %v4128_v40 = vpop.permute.xlu1 %1012 }
 0x307   : > { %6085 = vst [vmem:[#allocation45_spill] sm:$0xff] %v4126_v46  ;;  %v4130_v35 = vpop.permute.xlu2 %1128 }
 0x308   : > { %6086 = vst [vmem:[#allocation46_spill] sm:$0xff] %v4128_v40 }
 0x30c   : > { %1304 = vrot.lane.b32.xlu0 %v3953_v12, %s3353_s22  ;;  %1302 = vrot.lane.b32.xlu1 %v3957_v30, %s3353_s22 }
 0x30d   : > { %1300 = vrot.lane.b32.xlu2 %v3959_v13, %s3353_s22 }
 0x30e   : > { %v4138_v34 = vpop.permute.xlu0 %1020  ;;  %v4140_v24 = vpop.permute.xlu1 %1018 }
 0x30f   : > { %6087 = vst [vmem:[#allocation47_spill] sm:$0xff] %v4138_v34  ;;  %v4142_v2 = vpop.permute.xlu2 %1134 }
 0x310   : > { %6088 = vst [vmem:[#allocation48_spill] sm:$0xff] %v4140_v24 }
 0x314   : > { %1310 = vrot.lane.b32.xlu0 %v3972_v48, %s3353_s22  ;;  %1308 = vrot.lane.b32.xlu1 %v3977_v45, %s3353_s22 }
 0x315   : > { %1306 = vrot.lane.b32.xlu2 %v3981_v16, %s3353_s22 }
 0x316   : > { %v4150_v40 = vpop.permute.xlu0 %1026  ;;  %v4152_v46 = vpop.permute.xlu1 %1024 }
 0x317   : > { %6089 = vst [vmem:[#allocation49_spill] sm:$0xff] %v4150_v40  ;;  %v4154_v53 = vpop.permute.xlu2 %1140 }
 0x318   : > { %6090 = vst [vmem:[#allocation50_spill] sm:$0xff] %v4152_v46 }
 0x31c   : > { %1316 = vrot.lane.b32.xlu0 %v3992_v5, %s3353_s22  ;;  %1314 = vrot.lane.b32.xlu1 %v3995_v51, %s3353_s22 }
 0x31d   : > { %1312 = vrot.lane.b32.xlu2 %v3998_v8, %s3353_s22 }
 0x31e   : > { %v4162_v24 = vpop.permute.xlu0 %1132  ;;  %v4164_v37 = vpop.permute.xlu1 %1130 }
 0x31f   : > { %v4166_v39 = vpop.permute.xlu2 %1146 }
 0x320   : > { %6091 = vst [vmem:[#allocation51_spill] sm:$0xff] %v4166_v39 }
 0x324   : > { %1322 = vrot.lane.b32.xlu0 %v4006_v26, %s3353_s22  ;;  %1320 = vrot.lane.b32.xlu1 %v4008_v0, %s3353_s22 }
 0x325   : > { %1318 = vrot.lane.b32.xlu2 %v4010_v29, %s3353_s22 }
 0x326   : > { %v4174_v1 = vpop.permute.xlu0 %1138  ;;  %v4176_v61 = vpop.permute.xlu1 %1136 }
 0x327   : > { %v4178_v17 = vpop.permute.xlu2 %1152 }
 0x328   : > { %6092 = vst [vmem:[#allocation52_spill] sm:$0xff] %v4178_v17 }
 0x32c   : > { %1428 = vrot.lane.b32.xlu0 %v3868_v19, %s3357_s28  ;;  %1426 = vrot.lane.b32.xlu1 %v3865_v4, %s3357_s28 }
 0x32d   : > { %1424 = vrot.lane.b32.xlu2 %v3862_v50, %s3357_s28 }
 0x32e   : > { %v4186_v63 = vpop.permute.xlu0 %1144  ;;  %v4188_v15 = vpop.permute.xlu1 %1142 }
 0x32f   : > { %6093 = vst [vmem:[#allocation53_spill] sm:$0xff] %v4186_v63  ;;  %v4190_v14 = vpop.permute.xlu2 %1158 }
 0x330   : > { %6094 = vst [vmem:[#allocation54_spill] sm:$0xff] %v4190_v14 }
 0x334   : > { %1434 = vrot.lane.b32.xlu0 %v3887_v25, %s3357_s28  ;;  %1432 = vrot.lane.b32.xlu1 %v3891_v42, %s3357_s28 }
 0x335   : > { %1430 = vrot.lane.b32.xlu2 %v3894_v43, %s3357_s28 }
 0x336   : > { %v4198_v17 = vpop.permute.xlu0 %1150  ;;  %v4200_v39 = vpop.permute.xlu1 %1148 }
 0x337   : > { %6095 = vst [vmem:[#allocation55_spill] sm:$0xff] %v4198_v17  ;;  %v4202_v9 = vpop.permute.xlu2 %1164 }
 0x338   : > { %6096 = vst [vmem:[#allocation56_spill] sm:$0xff] %v4200_v39 }
 0x339   : > { %6097 = vst [vmem:[#allocation57_spill] sm:$0xff] %v4202_v9 }
 0x33c   : > { %1440 = vrot.lane.b32.xlu0 %v3909_v57, %s3357_s28  ;;  %1438 = vrot.lane.b32.xlu1 %v3915_v7, %s3357_s28 }
 0x33d   : > { %1436 = vrot.lane.b32.xlu2 %v3920_v33, %s3357_s28 }
 0x33e   : > { %v4210_v14 = vpop.permute.xlu0 %1156  ;;  %v4212_v63 = vpop.permute.xlu1 %1154 }
 0x33f   : > { %6098 = vst [vmem:[#allocation58_spill] sm:$0xff] %v4210_v14  ;;  %v4214_v55 = vpop.permute.xlu2 %1170 }
 0x340   : > { %6099 = vst [vmem:[#allocation59_spill] sm:$0xff] %v4212_v63 }
 0x341   : > { %6100 = vst [vmem:[#allocation60_spill] sm:$0xff] %v4214_v55 }
 0x344   : > { %1950 = vrot.lane.b32.xlu0 %v3894_v43, %s3359_s30  ;;  %1444 = vrot.lane.b32.xlu1 %v3936_v58, %s3357_s28 }
 0x345   : > { %1442 = vrot.lane.b32.xlu2 %v3940_v11, %s3357_s28 }
 0x346   : > { %v4222_v9 = vpop.permute.xlu0 %1162  ;;  %v4224_v39 = vpop.permute.xlu1 %1160 }
 0x347   : > { %6101 = vst [vmem:[#allocation61_spill] sm:$0xff] %v4222_v9  ;;  %v4226_v17 = vpop.permute.xlu2 %1276 }
 0x348   : > { %6102 = vst [vmem:[#allocation62_spill] sm:$0xff] %v4224_v39 }
 0x34c   : > { %1956 = vrot.lane.b32.xlu0 %v3920_v33, %s3359_s30  ;;  %1948 = vrot.lane.b32.xlu1 %v3868_v19, %s3359_s30 }
 0x34d   : > { %1958 = vrot.lane.b32.xlu2 %v3915_v7, %s3359_s30 }
 0x34e   : > { %v4234_v63 = vpop.permute.xlu0 %1168  ;;  %v4236_v14 = vpop.permute.xlu1 %1166 }
 0x34f   : > { %6103 = vst [vmem:[#allocation63_spill] sm:$0xff] %v4234_v63  ;;  %v4238_v23 = vpop.permute.xlu2 %1282 }
 0x350   : > { %6104 = vst [vmem:[#allocation64_spill] sm:$0xff] %v4236_v14 }
 0x354   : > { %1944 = vrot.lane.b32.xlu0 %v3862_v50, %s3359_s30  ;;  %1954 = vrot.lane.b32.xlu1 %v3887_v25, %s3359_s30 }
 0x355   : > { %1946 = vrot.lane.b32.xlu2 %v3865_v4, %s3359_s30 }
 0x356   : > { %v4246_v39 = vpop.permute.xlu0 %1174  ;;  %v4248_v9 = vpop.permute.xlu1 %1172 }
 0x357   : > { %6105 = vst [vmem:[#allocation65_spill] sm:$0xff] %v4246_v39  ;;  %v1289_v34 = vpop.permute.xlu2 %1288 }
 0x358   : > { %6106 = vst [vmem:[#allocation66_spill] sm:$0xff] %v4248_v9 }
 0x35c   : > { %1810 = vrot.lane.b32.xlu0 %v3915_v7, %s3356_s27  ;;  %1802 = vrot.lane.b32.xlu1 %v3894_v43, %s3356_s27 }
 0x35d   : > { %1952 = vrot.lane.b32.xlu2 %v3891_v42, %s3359_s30 }
 0x35e   : > { %v4256_v14 = vpop.permute.xlu0 %1280  ;;  %v1279_v36 = vpop.permute.xlu1 %1278 }
 0x35f   : > { %v4261_v59 = vsel %vm649_vm0, %v4256_v14, %v1289_v34  ;;  %v1295_v46 = vpop.permute.xlu2 %1294 }
 0x364   : > { %1798 = vrot.lane.b32.xlu0 %v3865_v4, %s3356_s27  ;;  %1808 = vrot.lane.b32.xlu1 %v3920_v33, %s3356_s27 }
 0x365   : > { %1800 = vrot.lane.b32.xlu2 %v3868_v19, %s3356_s27 }
 0x366   : > { %v1287_v40 = vpop.permute.xlu0 %1286  ;;  %v4277_v20 = vpop.permute.xlu1 %1284 }
 0x367   : > { %v4271_v63 = vsel %vm649_vm0, %v1287_v40, %v1295_v46  ;;  %v4275_v55 = vsel %vm649_vm0, %v1279_v36, %v1287_v40  ;;  %v1301_v56 = vpop.permute.xlu2 %1300 }
 0x368   : > { %6107 = vst [vmem:[#allocation67_spill] sm:$0xff] %v4271_v63 }
 0x36c   : > { %1804 = vrot.lane.b32.xlu0 %v3891_v42, %s3356_s27  ;;  %1796 = vrot.lane.b32.xlu1 %v3862_v50, %s3356_s27 }
 0x36d   : > { %1806 = vrot.lane.b32.xlu2 %v3887_v25, %s3356_s27 }
 0x36e   : > { %v1293_v9 = vpop.permute.xlu0 %1292  ;;  %v1291_v39 = vpop.permute.xlu1 %1290 }
 0x36f   : > { %v4287_v63 = vsel %vm649_vm0, %v1293_v9, %v1301_v56  ;;  %v4292_v40 = vsel %vm649_vm0, %v4277_v20, %v1293_v9  ;;  %v4297_v38 = vsel %vm649_vm0, %v4238_v23, %v1291_v39  ;;  %v1307_v60 = vpop.permute.xlu2 %1306 }
 0x370   : > { %6108 = vst [vmem:[#allocation68_spill] sm:$0xff] %v4287_v63 }
 0x371   : > { %6109 = vst [vmem:[#allocation69_spill] sm:$0xff] %v4292_v40 }
 0x374   : > { %1662 = vrot.lane.b32.xlu0 %v3915_v7, %s3355_s26  ;;  %1654 = vrot.lane.b32.xlu1 %v3894_v43, %s3355_s26 }
 0x375   : > { %1470 = vrot.lane.b32.xlu2 %v4006_v26, %s3357_s28 }
 0x376   : > { %v1299_v63 = vpop.permute.xlu0 %1298  ;;  %v1297_v45 = vpop.permute.xlu1 %1296 }
 0x377   : > { %v4307_v9 = vsel %vm649_vm0, %v1299_v63, %v1307_v60  ;;  %v4311_v40 = vsel %vm649_vm0, %v1291_v39, %v1299_v63  ;;  %v4315_v8 = vsel %vm649_vm0, %v1289_v34, %v1297_v45  ;;  %v1313_v48 = vpop.permute.xlu2 %1312 }
 0x378   : > { %6110 = vst [vmem:[#allocation70_spill] sm:$0xff] %v4307_v9 }
 0x379   : > { %6111 = vst [vmem:[#allocation71_spill] sm:$0xff] %v4311_v40 }
 0x37a   : > { %6112 = vst [vmem:[#allocation72_spill] sm:$0xff] %v4315_v8 }
 0x37c   : > { %1660 = vrot.lane.b32.xlu0 %v3920_v33, %s3355_s26  ;;  %1652 = vrot.lane.b32.xlu1 %v3868_v19, %s3355_s26 }
 0x37d   : > { %1468 = vrot.lane.b32.xlu2 %v4008_v0, %s3357_s28 }
 0x37e   : > { %v1305_v9 = vpop.permute.xlu0 %1304  ;;  %v1303_v34 = vpop.permute.xlu1 %1302 }
 0x37f   : > { %v4325_v63 = vsel %vm649_vm0, %v1305_v9, %v1313_v48  ;;  %v4329_v39 = vsel %vm649_vm0, %v1297_v45, %v1305_v9  ;;  %v4333_v26 = vsel %vm649_vm0, %v1295_v46, %v1303_v34  ;;  %v1319_v8 = vpop.permute.xlu2 %1318 }
 0x380   : > { %6113 = vst [vmem:[#allocation73_spill] sm:$0xff] %v4325_v63  ;;  %v4337_v40 = vsel %vm649_vm0, %v1319_v8, %v1279_v36 }
 0x381   : > { %6114 = vst [vmem:[#allocation74_spill] sm:$0xff] %v4329_v39 }
 0x382   : > { %6115 = vst [vmem:[#allocation75_spill] sm:$0xff] %v4333_v26 }
 0x384   : > { %1658 = vrot.lane.b32.xlu0 %v3887_v25, %s3355_s26  ;;  %1650 = vrot.lane.b32.xlu1 %v3865_v4, %s3355_s26 }
 0x385   : > { %1466 = vrot.lane.b32.xlu2 %v4010_v29, %s3357_s28 }
 0x386   : > { %v1311_v45 = vpop.permute.xlu0 %1310  ;;  %v1309_v36 = vpop.permute.xlu1 %1308 }
 0x387   : > { %v4347_v9 = vsel %vm649_vm0, %v1311_v45, %v1319_v8  ;;  %v4351_v46 = vsel %vm649_vm0, %v1303_v34, %v1311_v45  ;;  %v4355_v63 = vsel %vm649_vm0, %v1301_v56, %v1309_v36  ;;  %v4357_v26 = vpop.permute.xlu2 %1424 }
 0x388   : > { %6116 = vst [vmem:[#allocation76_spill] sm:$0xff] %v4347_v9 }
 0x389   : > { %6117 = vst [vmem:[#allocation77_spill] sm:$0xff] %v4351_v46 }
 0x38a   : > { %6118 = vst [vmem:[#allocation78_spill] sm:$0xff] %v4355_v63 }
 0x38c   : > { %1464 = vrot.lane.b32.xlu0 %v3992_v5, %s3357_s28  ;;  %2106 = vrot.lane.b32.xlu1 %v3915_v7, %s3358_s29 }
 0x38d   : > { %2098 = vrot.lane.b32.xlu2 %v3894_v43, %s3358_s29 }
 0x38e   : > { %v4365_v8 = vpop.permute.xlu0 %1316  ;;  %v1315_v56 = vpop.permute.xlu1 %1314 }
 0x38f   : > { %v4370_v34 = vsel %vm649_vm0, %v1309_v36, %v4365_v8  ;;  %v4374_v45 = vsel %vm649_vm0, %v1307_v60, %v1315_v56  ;;  %v4376_v9 = vpop.permute.xlu2 %1430 }
 0x390   : > { %6119 = vst [vmem:[#allocation79_spill] sm:$0xff] %v4370_v34 }
 0x391   : > { %6120 = vst [vmem:[#allocation80_spill] sm:$0xff] %v4374_v45 }
 0x394   : > { %2096 = vrot.lane.b32.xlu0 %v3868_v19, %s3358_s29  ;;  %1656 = vrot.lane.b32.xlu1 %v3891_v42, %s3355_s26 }
 0x395   : > { %1648 = vrot.lane.b32.xlu2 %v3862_v50, %s3355_s26 }
 0x396   : > { %v1323_v63 = vpop.permute.xlu0 %1322  ;;  %v1321_v34 = vpop.permute.xlu1 %1320 }
 0x397   : > { %v4386_v36 = vsel %vm649_vm0, %v1315_v56, %v1323_v63  ;;  %v4391_v60 = vsel %vm649_vm0, %v1323_v63, %v4238_v23  ;;  %v4395_v46 = vsel %vm649_vm0, %v1313_v48, %v1321_v34  ;;  %v4400_v45 = vsel %vm649_vm0, %v1321_v34, %v4256_v14  ;;  %v4402_v39 = vpop.permute.xlu2 %1436 }
 0x398   : > { %6121 = vst [vmem:[#allocation81_spill] sm:$0xff] %v4386_v36 }
 0x399   : > { %6122 = vst [vmem:[#allocation82_spill] sm:$0xff] %v4395_v46 }
 0x39c   : > { %2102 = vrot.lane.b32.xlu0 %v3887_v25, %s3358_s29  ;;  %2094 = vrot.lane.b32.xlu1 %v3865_v4, %s3358_s29 }
 0x39d   : > { %2104 = vrot.lane.b32.xlu2 %v3920_v33, %s3358_s29 }
 0x39e   : > { %v4410_v23 = vpop.permute.xlu0 %1428  ;;  %v4412_v48 = vpop.permute.xlu1 %1426 }
 0x39f   : > { %v4414_v63 = vpop.permute.xlu2 %1442 }
 0x3a4   : > { %1966 = vrot.lane.b32.xlu0 %v3932_v41, %s3359_s30  ;;  %2100 = vrot.lane.b32.xlu1 %v3891_v42, %s3358_s29  ;;  %v1490_v42 = vsel %vm660_vm15, %v4410_v23, %v4402_v39 }
 0x3a5   : > { %2092 = vrot.lane.b32.xlu2 %v3862_v50, %s3358_s29  ;;  %v1513_v5 = vmul.f32 %v1490_v42, %v3783_v52 }
 0x3a6   : > { %v4422_v14 = vpop.permute.xlu0 %1434  ;;  %v4424_v34 = vpop.permute.xlu1 %1432 }
 0x3a7   : > { %6123 = vst [vmem:[#allocation83_spill] sm:$0xff] %v4422_v14  ;;  %v4426_v56 = vpop.permute.xlu2 %1958  ;;  %v1489_v7 = vsel %vm660_vm15, %v4412_v48, %v4422_v14  ;;  %v1488_v0 = vsel %vm660_vm15, %v4357_v26, %v4424_v34 }
 0x3a8   : > { %6124 = vst [vmem:[#allocation84_spill] sm:$0xff] %v4424_v34 }
 0x3ac   : > { %1962 = vrot.lane.b32.xlu0 %v3940_v11, %s3359_s30  ;;  %1446 = vrot.lane.b32.xlu1 %v3932_v41, %s3357_s28 }
 0x3ad   : > { %1964 = vrot.lane.b32.xlu2 %v3936_v58, %s3359_s30 }
 0x3ae   : > { %v4434_v46 = vpop.permute.xlu0 %1440  ;;  %v4436_v36 = vpop.permute.xlu1 %1438 }
 0x3af   : > { %6125 = vst [vmem:[#allocation85_spill] sm:$0xff] %v4434_v46  ;;  %v1491_v25 = vsel %vm660_vm15, %v4376_v9, %v4436_v36  ;;  %v4446_v33 = vpop.permute.xlu2 %1946  ;;  %v1501_v46 = vmul.f32 %v1488_v0, %v3783_v52 }
 0x3b0   : > { %6126 = vst [vmem:[#allocation86_spill] sm:$0xff] %v4446_v33  ;;  %v1519_v29 = vmul.f32 %v1491_v25, %v3783_v52  ;;  %v1507_v25 = vmul.f32 %v1489_v7, %v3783_v52  ;;  %v1371_v7 = vmul.f32 %v4297_v38, %v3797_v54  ;;  %v1340_v52 = vsel %vm649_vm0, %v4226_v17, %v4277_v20 }
 0x3b1   : > { %v1359_v38 = vmul.f32 %v4275_v55, %v3797_v54  ;;  %v1195_v20 = vsel %vm638_vm1, %v4142_v2, %v4188_v15 }
 0x3b2   : > { %2568 = vmatpush.msrb.mxu1 %v1519_v29 }
 0x3b4   : > { %1816 = vrot.lane.b32.xlu0 %v3936_v58, %s3356_s27  ;;  %1818 = vrot.lane.b32.xlu1 %v3932_v41, %s3356_s27 }
 0x3b5   : > { %2569 = vmatpush.msrb.mxu1 %v1513_v5  ;;  %1960 = vrot.lane.b32.xlu2 %v3909_v57, %s3359_s30 }
 0x3b6   : > { %v4465_v29 = vpop.permute.xlu0 %1950  ;;  %v4467_v42 = vpop.permute.xlu1 %1444 }
 0x3b7   : > { %6127 = vst [vmem:[#allocation87_spill] sm:$0xff] %v4465_v29  ;;  %2570 = vmatpush.msrb.mxu1 %v1507_v25  ;;  %v2011_v34 = vsel %vm697_vm12, %v4465_v29, %v4426_v56  ;;  %v4474_v14 = vpop.permute.xlu2 %1952  ;;  %v1365_v25 = vmul.f32 %v4261_v59, %v3797_v54 }
 0x3b8   : > { %v2038_v5 = vmul.f32 %v2011_v34, %v3730_v10 }
 0x3b9   : > { %2571 = vmatpush.msrb.mxu1 %v1501_v46  ;;  %v1353_v46 = vmul.f32 %v1340_v52, %v3797_v54  ;;  %v1193_v54 = vsel %vm638_vm1, %v4164_v37, %v4174_v1 }
 0x3ba   : > { %2510 = vmatpush.msra.mxu3 %v2038_v5  ;;  %v1194_v5 = vsel %vm638_vm1, %v4162_v24, %v4154_v53 }
 0x3bb   : > { %2572 = vmatpush.msrb.mxu1 %v1371_v7  ;;  %v1217_v52 = vmul.f32 %v1194_v5, %v3815_v27 }
 0x3bc   : > { %1670 = vrot.lane.b32.xlu0 %v3932_v41, %s3355_s26  ;;  %1812 = vrot.lane.b32.xlu1 %v3909_v57, %s3356_s27 }
 0x3bd   : > { %2573 = vmatpush.msrb.mxu1 %v1365_v25  ;;  %1814 = vrot.lane.b32.xlu2 %v3940_v11, %s3356_s27  ;;  %v1223_v25 = vmul.f32 %v1195_v20, %v3815_v27  ;;  %v1211_v20 = vmul.f32 %v1193_v54, %v3815_v27 }
 0x3be   : > { %v4493_v0 = vpop.permute.xlu0 %1956  ;;  %v4499_v59 = vpop.permute.xlu1 %1948 }
 0x3bf   : > { %6128 = vst [vmem:[#allocation88_spill] sm:$0xff] %v4499_v59  ;;  %2574 = vmatpush.msrb.mxu1 %v1359_v38  ;;  %v2010_v55 = vsel %vm697_vm12, %v4499_v59, %v4493_v0  ;;  %v4506_v34 = vpop.permute.xlu2 %1800  ;;  %v1192_v38 = vsel %vm638_vm1, %v4130_v35, %v4176_v61 }
 0x3c0   : > { %6129 = vst [vmem:[#allocation89_spill] sm:$0xff] %v4506_v34  ;;  %v2032_v7 = vmul.f32 %v2010_v55, %v3730_v10  ;;  %v1047_v55 = vsel %vm627_vm2, %v4050_v21, %v4092_v49 }
 0x3c1   : > { %2575 = vmatpush.msrb.mxu1 %v1353_v46  ;;  %v1075_v29 = vmul.f32 %v1047_v55, %v3831_v47 }
 0x3c2   : > { %2511 = vmatpush.msra.mxu3 %v2032_v7  ;;  %v1205_v7 = vmul.f32 %v1192_v38, %v3815_v27  ;;  %v1046_v27 = vsel %vm627_vm2, %v4064_v6, %v4058_v32 }
 0x3c3   : > { %2576 = vmatpush.msrb.mxu1 %v1223_v25 }
 0x3c4   : > { %1664 = vrot.lane.b32.xlu0 %v3909_v57, %s3355_s26  ;;  %1666 = vrot.lane.b32.xlu1 %v3940_v11, %s3355_s26 }
 0x3c5   : > { %2577 = vmatpush.msrb.mxu1 %v1217_v52  ;;  %1668 = vrot.lane.b32.xlu2 %v3936_v58, %s3355_s26 }
 0x3c6   : > { %v4530_v46 = vpop.permute.xlu0 %1944  ;;  %v4536_v5 = vpop.permute.xlu1 %1954 }
 0x3c7   : > { %6130 = vst [vmem:[#allocation90_spill] sm:$0xff] %v4530_v46  ;;  %2578 = vmatpush.msrb.mxu1 %v1211_v20  ;;  %v2009_v25 = vsel %vm697_vm12, %v4446_v33, %v4536_v5  ;;  %v2008_v54 = vsel %vm697_vm12, %v4530_v46, %v4474_v14  ;;  %v4547_v52 = vpop.permute.xlu2 %1806  ;;  %v1045_v20 = vsel %vm627_vm2, %v4068_v44, %v4078_v31 }
 0x3c8   : > { %v2026_v59 = vmul.f32 %v2009_v25, %v3730_v10  ;;  %v2020_v38 = vmul.f32 %v2008_v54, %v3730_v10 }
 0x3c9   : > { %2579 = vmatpush.msrb.mxu1 %v1205_v7  ;;  %v1069_v7 = vmul.f32 %v1046_v27, %v3831_v47 }
 0x3ca   : > { %2512 = vmatpush.msra.mxu3 %v2026_v59  ;;  %v1063_v59 = vmul.f32 %v1045_v20, %v3831_v47 }
 0x3cb   : > { %2580 = vmatpush.msrb.mxu1 %v1075_v29  ;;  %v1044_v29 = vsel %vm627_vm2, %v4042_v62, %v4080_v28  ;;  %v6148_v28 = vld [vmem:[#allocation16_spill] sm:$0xff] }
 0x3cc   : > { %1970 = vrot.lane.b32.xlu0 %v3957_v30, %s3359_s30  ;;  %1972 = vrot.lane.b32.xlu1 %v3953_v12, %s3359_s30  ;;  %v1057_v27 = vmul.f32 %v1044_v29, %v3831_v47 }
 0x3cd   : > { %2513 = vmatpush.msra.mxu3 %v2020_v38  ;;  %1974 = vrot.lane.b32.xlu2 %v3981_v16, %s3359_s30 }
 0x3ce   : > { %2581 = vmatpush.msrb.mxu1 %v1069_v7  ;;  %v4571_v10 = vpop.permute.xlu0 %1810  ;;  %v4574_v55 = vpop.permute.xlu1 %1802 }
 0x3cf   : > { %6131 = vst [vmem:[#allocation91_spill] sm:$0xff] %v4574_v55  ;;  %v1863_v25 = vsel %vm686_vm13, %v4574_v55, %v4571_v10  ;;  %v4580_v54 = vpop.permute.xlu2 %1470 }
 0x3d0   : > { %2582 = vmatpush.msrb.mxu1 %v1063_v59  ;;  %6132 = vst [vmem:[#allocation92_spill] sm:$0xff] %v4580_v54  ;;  %v1495_v38 = vsel %vm660_vm15, %v4580_v54, %v4376_v9  ;;  %v1890_v7 = vmul.f32 %v1863_v25, %v3737_v3  ;;  %v6135_v54 = vld [vmem:[#allocation27_spill] sm:$0xff] }
 0x3d1   : > { %v1518_v20 = vmul.f32 %v1495_v38, %v3780_v18 }
 0x3d2   : > { %2583 = vmatpush.msrb.mxu1 %v1057_v27  ;;  %2514 = vmatpush.msra.mxu3 %v1890_v7 }
 0x3d3   : > { %2481 = vmatpush.msra.mxu2 %v1518_v20 }
 0x3d4   : > { %1826 = vrot.lane.b32.xlu0 %v3981_v16, %s3356_s27  ;;  %1982 = vrot.lane.b32.xlu1 %v3995_v51, %s3359_s30 }
 0x3d5   : > { %1968 = vrot.lane.b32.xlu2 %v3959_v13, %s3359_s30 }
 0x3d6   : > { %v4595_v47 = vpop.permute.xlu0 %1798  ;;  %v4597_v29 = vpop.permute.xlu1 %1808 }
 0x3d7   : > { %6133 = vst [vmem:[#allocation93_spill] sm:$0xff] %v4595_v47  ;;  %v1862_v9 = vsel %vm686_vm13, %v4506_v34, %v4597_v29  ;;  %v1861_v59 = vsel %vm686_vm13, %v4595_v47, %v4547_v52  ;;  %v4607_v25 = vpop.permute.xlu2 %1468  ;;  %v6136_v47 = vld [vmem:[#allocation30_spill] sm:$0xff] }
 0x3d8   : > { %6134 = vst [vmem:[#allocation94_spill] sm:$0xff] %v4607_v25  ;;  %v1494_v27 = vsel %vm660_vm15, %v4607_v25, %v4410_v23  ;;  %v1884_v38 = vmul.f32 %v1862_v9, %v3737_v3  ;;  %v1878_v20 = vmul.f32 %v1861_v59, %v3737_v3 }
 0x3d9   : > { %v1512_v7 = vmul.f32 %v1494_v27, %v3780_v18 }
 0x3da   : > { %2515 = vmatpush.msra.mxu3 %v1884_v38 }
 0x3db   : > { %2482 = vmatpush.msra.mxu2 %v1512_v7 }
 0x3dc   : > { %1978 = vrot.lane.b32.xlu0 %v6135_v54, %s3359_s30  ;;  %1824 = vrot.lane.b32.xlu1 %v3953_v12, %s3356_s27 }
 0x3dd   : > { %2516 = vmatpush.msra.mxu3 %v1878_v20  ;;  %1980 = vrot.lane.b32.xlu2 %v6136_v47, %s3359_s30  ;;  %v6139_v20 = vld [vmem:[#allocation28_spill] sm:$0xff] }
 0x3de   : > { %v4622_v34 = vpop.permute.xlu0 %1804  ;;  %v4624_v23 = vpop.permute.xlu1 %1796 }
 0x3df   : > { %6137 = vst [vmem:[#allocation30_spill] sm:$0xff] %v4624_v23  ;;  %v1860_v9 = vsel %vm686_vm13, %v4624_v23, %v4622_v34  ;;  %v4630_v59 = vpop.permute.xlu2 %1466 }
 0x3e0   : > { %6138 = vst [vmem:[#allocation95_spill] sm:$0xff] %v4630_v59  ;;  %v1493_v27 = vsel %vm660_vm15, %v4630_v59, %v4412_v48  ;;  %v1872_v38 = vmul.f32 %v1860_v9, %v3737_v3  ;;  %v6142_v9 = vld [vmem:[#allocation12_spill] sm:$0xff] }
 0x3e1   : > { %v1506_v7 = vmul.f32 %v1493_v27, %v3780_v18 }
 0x3e2   : > { %2517 = vmatpush.msra.mxu3 %v1872_v38 }
 0x3e3   : > { %2483 = vmatpush.msra.mxu2 %v1506_v7 }
 0x3e4   : > { %1820 = vrot.lane.b32.xlu0 %v3959_v13, %s3356_s27  ;;  %1976 = vrot.lane.b32.xlu1 %v6139_v20, %s3359_s30 }
 0x3e5   : > { %1822 = vrot.lane.b32.xlu2 %v3957_v30, %s3356_s27 }
 0x3e6   : > { %v4644_v25 = vpop.permute.xlu0 %1662  ;;  %v4646_v23 = vpop.permute.xlu1 %1654 }
 0x3e7   : > { %6140 = vst [vmem:[#allocation96_spill] sm:$0xff] %v4646_v23  ;;  %v1715_v3 = vsel %vm675_vm14, %v4646_v23, %v4644_v25  ;;  %v4652_v48 = vpop.permute.xlu2 %2098 }
 0x3e8   : > { %6141 = vst [vmem:[#allocation97_spill] sm:$0xff] %v4652_v48  ;;  %v1742_v27 = vmul.f32 %v1715_v3, %v6142_v9 }
 0x3ea   : > { %2518 = vmatpush.msra.mxu3 %v1742_v27 }
 0x3ec   : > { %1678 = vrot.lane.b32.xlu0 %v3981_v16, %s3355_s26  ;;  %2114 = vrot.lane.b32.xlu1 %v3932_v41, %s3358_s29 }
 0x3ed   : > { %1834 = vrot.lane.b32.xlu2 %v3995_v51, %s3356_s27 }
 0x3ee   : > { %v4661_v38 = vpop.permute.xlu0 %1660  ;;  %v4663_v7 = vpop.permute.xlu1 %1652 }
 0x3ef   : > { %6143 = vst [vmem:[#allocation12_spill] sm:$0xff] %v4663_v7  ;;  %v1714_v59 = vsel %vm675_vm14, %v4663_v7, %v4661_v38  ;;  %v4669_v3 = vpop.permute.xlu2 %1648 }
 0x3f0   : > { %6144 = vst [vmem:[#allocation98_spill] sm:$0xff] %v4669_v3  ;;  %v1736_v27 = vmul.f32 %v1714_v59, %v6142_v9 }
 0x3f2   : > { %2519 = vmatpush.msra.mxu3 %v1736_v27 }
 0x3f4   : > { %1676 = vrot.lane.b32.xlu0 %v3953_v12, %s3355_s26  ;;  %2112 = vrot.lane.b32.xlu1 %v3936_v58, %s3358_s29  ;;  %v4713_v58 = vld [vmem:[%s5942_s3 + $0x30] ss:$0 sm:$0xff] }
 0x3f5   : > { %1832 = vrot.lane.b32.xlu2 %v6136_v47, %s3356_s27 }
 0x3f6   : > { %v4678_v23 = vpop.permute.xlu0 %1658  ;;  %v4680_v55 = vpop.permute.xlu1 %1650 }
 0x3f7   : > { %6145 = vst [vmem:[#allocation99_spill] sm:$0xff] %v4680_v55  ;;  %v1713_v7 = vsel %vm675_vm14, %v4680_v55, %v4678_v23  ;;  %v4686_v59 = vpop.permute.xlu2 %2104 }
 0x3f8   : > { %v1730_v27 = vmul.f32 %v1713_v7, %v6142_v9 }
 0x3fa   : > { %2520 = vmatpush.msra.mxu3 %v1730_v27 }
 0x3fc   : > { %1674 = vrot.lane.b32.xlu0 %v3957_v30, %s3355_s26  ;;  %2110 = vrot.lane.b32.xlu1 %v3940_v11, %s3358_s29 }
 0x3fd   : > { %1830 = vrot.lane.b32.xlu2 %v6135_v54, %s3356_s27 }
 0x3fe   : > { %v4695_v46 = vpop.permute.xlu0 %1464  ;;  %v4697_v33 = vpop.permute.xlu1 %2106 }
 0x3ff   : > { %6146 = vst [vmem:[#allocation100_spill] sm:$0xff] %v4695_v46  ;;  %v1492_v55 = vsel %vm660_vm15, %v4695_v46, %v4357_v26  ;;  %v2159_v7 = vsel %vm708_vm11, %v4652_v48, %v4697_v33  ;;  %v4707_v27 = vpop.permute.xlu2 %2092  ;;  %v1370_v26 = vmul.f32 %v4391_v60, %v6148_v28  ;;  %v1364_v46 = vmul.f32 %v4400_v45, %v6148_v28 }
 0x400   : > { %6147 = vst [vmem:[#allocation101_spill] sm:$0xff] %v4707_v27  ;;  %v1500_v11 = vmul.f32 %v1492_v55, %v3780_v18  ;;  %v2186_v41 = vmul.f32 %v4713_v58, %v2159_v7  ;;  %v1344_v18 = vsel %vm649_vm0, %v4365_v8, %v4226_v17  ;;  %v6150_v17 = vld [vmem:[#allocation65_spill] sm:$0xff]  ;;  %vm2468_vm0 = vcmask 261120  }
 0x401   : > { %v1199_v8 = vsel %vm638_vm1, %v6150_v17, %v4142_v2  ;;  %v6152_v2 = vld [vmem:[#allocation17_spill] sm:$0xff] }
 0x402   : > { %2484 = vmatpush.msra.mxu2 %v1500_v11  ;;  %2551 = vmatpush.msrb.mxu0 %v2186_v41  ;;  %v1358_v41 = vmul.f32 %v4337_v40, %v6148_v28  ;;  %v1352_v40 = vmul.f32 %v1344_v18, %v6148_v28  ;;  %v1222_v17 = vmul.f32 %v1199_v8, %v6152_v2 }
 0x404   : > { %1454 = vrot.lane.b32.xlu0 %v3981_v16, %s3357_s28  ;;  %2485 = vmatpush.msra.mxu2 %v1370_v26 }
 0x405   : > { %2108 = vrot.lane.b32.xlu1 %v3909_v57, %s3358_s29  ;;  %1828 = vrot.lane.b32.xlu2 %v6139_v20, %s3356_s27 }
 0x406   : > { %v4730_v11 = vpop.permute.xlu0 %2096  ;;  %2486 = vmatpush.msra.mxu2 %v1364_v46  ;;  %v4734_v60 = vpop.permute.xlu1 %1656 }
 0x407   : > { %6149 = vst [vmem:[#allocation16_spill] sm:$0xff] %v4730_v11  ;;  %v2158_v45 = vsel %vm708_vm11, %v4730_v11, %v4686_v59  ;;  %v1712_v46 = vsel %vm675_vm14, %v4669_v3, %v4734_v60  ;;  %v4748_v55 = vpop.permute.xlu2 %1964  ;;  %v6151_v11 = vld [vmem:[#allocation66_spill] sm:$0xff]  ;;  %v6153_v3 = vld [vmem:[#allocation15_spill] sm:$0xff] }
 0x408   : > { %2487 = vmatpush.msra.mxu2 %v1358_v41  ;;  %v2180_v7 = vmul.f32 %v4713_v58, %v2158_v45  ;;  %v1724_v26 = vmul.f32 %v1712_v46, %v6142_v9  ;;  %v1198_v48 = vsel %vm638_vm1, %v6151_v11, %v4162_v24  ;;  %v1594_v57 = vmul.f32 %v3894_v43, %v6153_v3  ;;  %v6154_v41 = vld [vmem:[#allocation60_spill] sm:$0xff]  ;;  %v6155_v43 = vld [vmem:[#allocation63_spill] sm:$0xff] }
 0x409   : > { %v1197_v28 = vsel %vm638_vm1, %v6154_v41, %v4164_v37  ;;  %v1216_v9 = vmul.f32 %v1198_v48, %v6152_v2  ;;  %v1588_v24 = vmul.f32 %v3868_v19, %v6153_v3  ;;  %v1196_v18 = vsel %vm638_vm1, %v6155_v43, %v4130_v35  ;;  %v6157_v19 = vld [vmem:[#allocation49_spill] sm:$0xff] }
 0x40a   : > { %2488 = vmatpush.msra.mxu2 %v1352_v40  ;;  %2552 = vmatpush.msrb.mxu0 %v2180_v7  ;;  %v1210_v48 = vmul.f32 %v1197_v28, %v6152_v2  ;;  %v1204_v46 = vmul.f32 %v1196_v18, %v6152_v2  ;;  %v1576_v40 = vmul.f32 %v3862_v50, %v6153_v3  ;;  %v6158_v7 = vld [vmem:[#allocation50_spill] sm:$0xff] }
 0x40b   : > { %2521 = vmatpush.msra.mxu3 %v1724_v26  ;;  %v6159_v26 = vld [vmem:[#allocation18_spill] sm:$0xff] }
 0x40c   : > { %1452 = vrot.lane.b32.xlu0 %v3953_v12, %s3357_s28  ;;  %2489 = vmatpush.msra.mxu2 %v1222_v17  ;;  %v1051_v17 = vsel %vm627_vm2, %v6157_v19, %v4050_v21  ;;  %v1050_v21 = vsel %vm627_vm2, %v6158_v7, %v4064_v6  ;;  %v6161_v6 = vld [vmem:[#allocation47_spill] sm:$0xff]  ;;  %v6180_v19 = vld [vmem:[#allocation34_spill] sm:$0xff] }
 0x40d   : > { %1686 = vrot.lane.b32.xlu1 %v3995_v51, %s3355_s26  ;;  %2522 = vmatpush.msra.mxu3 %v1594_v57  ;;  %v1582_v57 = vmul.f32 %v3865_v4, %v6153_v3  ;;  %v1074_v28 = vmul.f32 %v1051_v17, %v6159_v26  ;;  %v1068_v50 = vmul.f32 %v1050_v21, %v6159_v26  ;;  %v6162_v17 = vld [vmem:[#allocation10_spill] sm:$0xff] }
 0x40e   : > { %1672 = vrot.lane.b32.xlu2 %v3959_v13, %s3355_s26  ;;  %v4777_v37 = vpop.permute.xlu0 %2102  ;;  %2490 = vmatpush.msra.mxu2 %v1216_v9  ;;  %v4780_v45 = vpop.permute.xlu1 %2094  ;;  %v6160_v9 = vld [vmem:[#allocation44_spill] sm:$0xff]  ;;  %v1048_v3 = vsel %vm627_vm2, %v6161_v6, %v4042_v62  ;;  %v6173_v6 = vld [vmem:[#allocation13_spill] sm:$0xff] }
 0x40f   : > { %6156 = vst [vmem:[#allocation17_spill] sm:$0xff] %v4780_v45  ;;  %2523 = vmatpush.msra.mxu3 %v1588_v24  ;;  %v2157_v35 = vsel %vm708_vm11, %v4780_v45, %v4777_v37  ;;  %v4792_v8 = vpop.permute.xlu2 %1960  ;;  %v1049_v2 = vsel %vm627_vm2, %v6160_v9, %v4068_v44  ;;  %v6179_v9 = vld [vmem:[#allocation40_spill] sm:$0xff]  ;;  %v6192_v45 = vld [vmem:[#allocation26_spill] sm:$0xff] }
 0x410   : > { %2491 = vmatpush.msra.mxu2 %v1210_v48  ;;  %v2174_v4 = vmul.f32 %v4713_v58, %v2157_v35  ;;  %v1062_v44 = vmul.f32 %v1049_v2, %v6159_v26 }
 0x411   : > { %2524 = vmatpush.msra.mxu3 %v1582_v57 }
 0x412   : > { %2492 = vmatpush.msra.mxu2 %v1204_v46  ;;  %2553 = vmatpush.msrb.mxu0 %v2174_v4  ;;  %v1056_v46 = vmul.f32 %v1048_v3, %v6159_v26 }
 0x413   : > { %2525 = vmatpush.msra.mxu3 %v1576_v40  ;;  %v2006_v40 = vsel %vm697_vm12, %v4493_v0, %v4748_v55  ;;  %v2004_v0 = vsel %vm697_vm12, %v4474_v14, %v4792_v8 }
 0x414   : > { %1682 = vrot.lane.b32.xlu0 %v6135_v54, %s3355_s26  ;;  %2493 = vmatpush.msra.mxu2 %v1074_v28 }
 0x415   : > { %1450 = vrot.lane.b32.xlu1 %v3957_v30, %s3357_s28 }
 0x416   : > { %1684 = vrot.lane.b32.xlu2 %v6136_v47, %s3355_s26  ;;  %v1967_v24 = vpop.permute.xlu0 %1966  ;;  %2494 = vmatpush.msra.mxu2 %v1068_v50  ;;  %v4819_v18 = vpop.permute.xlu1 %2100  ;;  %v1486_v50 = vsel %vm660_vm15, %v4402_v39, %v4467_v42 }
 0x417   : > { %v2007_v48 = vsel %vm697_vm12, %v4426_v56, %v1967_v24  ;;  %v2156_v57 = vsel %vm708_vm11, %v4707_v27, %v4819_v18  ;;  %v4829_v35 = vpop.permute.xlu2 %1814  ;;  %v2033_v56 = vmul.f32 %v2006_v40, %v6162_v17  ;;  %v6165_v40 = vld [vmem:[#allocation84_spill] sm:$0xff]  ;;  %v3360_v27 = vmov 0  }
 0x418   : > { %v2039_v62 = vmul.f32 %v2007_v48, %v6162_v17  ;;  %2495 = vmatpush.msra.mxu2 %v1062_v44  ;;  %v2168_v4 = vmul.f32 %v4713_v58, %v2156_v57  ;;  %v4849_v58 = vld [vmem:[%s5942_s3 + $0x10] sm:$0xff]  ;;  %v6163_v57 = vld [vmem:[#allocation83_spill] sm:$0xff]  ;;  %3256 = vset.pattern.permute.xlu1 %v3360_v27 }
 0x419   : > { %v1496_v2 = vperm.slane %v4849_v58, 3  ;;  %3257 = vset.pattern.permute.xlu0 %v3360_v27  ;;  %3255 = vset.pattern.permute.xlu2 %v3360_v27 }
 0x41a   : > { %2496 = vmatpush.msra.mxu2 %v1056_v46  ;;  %2554 = vmatpush.msrb.mxu0 %v2168_v4  ;;  %v6164_v46 = vld [vmem:[#allocation85_spill] sm:$0xff] }
 0x41b   : > { %v1514_v39 = vmul.f32 %v1496_v2, %v1486_v50  ;;  %v1348_v50 = vperm.slane %v4849_v58, 2 }
 0x41c   : > { %2597 = vmatpush.msra.mxu0 %v2039_v62  ;;  %1680 = vrot.lane.b32.xlu0 %v6139_v20, %s3355_s26  ;;  %v2021_v62 = vmul.f32 %v2004_v0, %v6162_v17 }
 0x41d   : > { %1448 = vrot.lane.b32.xlu1 %v3959_v13, %s3357_s28 }
 0x41e   : > { %2122 = vrot.lane.b32.xlu2 %v3981_v16, %s3358_s29  ;;  %2598 = vmatpush.msra.mxu0 %v2033_v56  ;;  %v4844_v21 = vpop.permute.xlu0 %1962  ;;  %v4855_v26 = vpop.permute.xlu1 %1446  ;;  %v4891_v56 = vperm.slane %v4849_v58, 7 }
 0x41f   : > { %v2005_v28 = vsel %vm697_vm12, %v4536_v5, %v4844_v21  ;;  %v1487_v3 = vsel %vm660_vm15, %v4436_v36, %v4855_v26  ;;  %v4871_v44 = vpop.permute.xlu2 %1668  ;;  %v1485_v5 = vsel %vm660_vm15, %v6163_v57, %v4414_v63  ;;  %v1484_v36 = vsel %vm660_vm15, %v6165_v40, %v6164_v46  ;;  %v6166_v57 = vld [vmem:[#allocation11_spill] sm:$0xff] }
 0x420   : > { %v2027_v14 = vmul.f32 %v2005_v28, %v6162_v17  ;;  %v1520_v48 = vmul.f32 %v1496_v2, %v1487_v3  ;;  %v1508_v4 = vmul.f32 %v1496_v2, %v1485_v5  ;;  %v1502_v28 = vmul.f32 %v1496_v2, %v1484_v36  ;;  %v6168_v36 = vld [vmem:[#allocation72_spill] sm:$0xff] }
 0x422   : > { %2599 = vmatpush.msra.mxu0 %v2027_v14  ;;  %2655 = vmatpush.msrb.mxu3 %v1520_v48 }
 0x424   : > { %2116 = vrot.lane.b32.xlu0 %v3959_v13, %s3358_s29  ;;  %2600 = vmatpush.msra.mxu0 %v2021_v62  ;;  %v6167_v62 = vld [vmem:[#allocation71_spill] sm:$0xff] }
 0x425   : > { %2118 = vrot.lane.b32.xlu1 %v3957_v30, %s3358_s29  ;;  %2656 = vmatpush.msrb.mxu3 %v1514_v39  ;;  %v1372_v39 = vmul.f32 %v1348_v50, %v6167_v62 }
 0x426   : > { %2120 = vrot.lane.b32.xlu2 %v3953_v12, %s3358_s29  ;;  %v4888_v17 = vpop.permute.xlu0 %1816  ;;  %v4893_v0 = vpop.permute.xlu1 %1818 }
 0x427   : > { %2657 = vmatpush.msrb.mxu3 %v1508_v4  ;;  %v1859_v3 = vsel %vm686_vm13, %v4571_v10, %v4893_v0  ;;  %v1858_v14 = vsel %vm686_vm13, %v4597_v29, %v4888_v17  ;;  %v4904_v48 = vpop.permute.xlu2 %1974  ;;  %v1857_v10 = vsel %vm686_vm13, %v4547_v52, %v4829_v35  ;;  %v4923_v4 = vld [vmem:[%s5944_s5 + $0x8] sm:$0xff] }
 0x428   : > { %v1891_v5 = vmul.f32 %v1859_v3, %v6166_v57  ;;  %v2003_v2 = vsel %vm697_vm12, %v1967_v24, %v4904_v48  ;;  %v1885_v29 = vmul.f32 %v1858_v14, %v6166_v57  ;;  %v1366_v24 = vmul.f32 %v1348_v50, %v6168_v36  ;;  %v6169_v3 = vld [vmem:[#allocation67_spill] sm:$0xff]  ;;  %2526 = vmatmul.f32.vlgmr.msra.gmra.mxu3 %v4923_v4 }
 0x429   : > { %2658 = vmatpush.msrb.mxu3 %v1502_v28  ;;  %v2040_v40 = vmul.f32 %v4891_v56, %v2003_v2  ;;  %v1879_v28 = vmul.f32 %v1857_v10, %v6166_v57  ;;  %v1360_v14 = vmul.f32 %v1348_v50, %v6169_v3  ;;  %v6170_v2 = vld [vmem:[#allocation55_spill] sm:$0xff] }
 0x42a   : > { %2601 = vmatpush.msra.mxu0 %v1891_v5  ;;  %v1191_v62 = vsel %vm638_vm1, %v4188_v15, %v6170_v2 }
 0x42b   : > { %2659 = vmatpush.msrb.mxu3 %v1372_v39  ;;  %2684 = vmatpush.msra.mxu1 %v2040_v40 }
 0x42c   : > { %1458 = vrot.lane.b32.xlu0 %v6135_v54, %s3357_s28  ;;  %2602 = vmatpush.msra.mxu0 %v1885_v29  ;;  %v6171_v29 = vld [vmem:[#allocation69_spill] sm:$0xff] }
 0x42d   : > { %1460 = vrot.lane.b32.xlu1 %v6136_v47, %s3357_s28  ;;  %2660 = vmatpush.msrb.mxu3 %v1366_v24  ;;  %v1354_v36 = vmul.f32 %v1348_v50, %v6171_v29  ;;  %v1200_v24 = vperm.slane %v4849_v58, 1  ;;  %v6174_v50 = vld [vmem:[#allocation51_spill] sm:$0xff] }
 0x42e   : > { %1462 = vrot.lane.b32.xlu2 %v3995_v51, %s3357_s28  ;;  %v4930_v52 = vpop.permute.xlu0 %1670  ;;  %v4933_v5 = vpop.permute.xlu1 %1812  ;;  %2603 = vmatpush.msra.mxu0 %v1879_v28  ;;  %v6172_v28 = vld [vmem:[#allocation56_spill] sm:$0xff] }
 0x42f   : > { %v1856_v39 = vsel %vm686_vm13, %v4622_v34, %v4933_v5  ;;  %v1711_v10 = vsel %vm675_vm14, %v4644_v25, %v4930_v52  ;;  %v4948_v40 = vpop.permute.xlu2 %1968  ;;  %2661 = vmatpush.msrb.mxu3 %v1360_v14  ;;  %v1190_v3 = vsel %vm638_vm1, %v4154_v53, %v6172_v28  ;;  %v1710_v34 = vsel %vm675_vm14, %v4661_v38, %v4871_v44  ;;  %v6176_v38 = vld [vmem:[#allocation53_spill] sm:$0xff] }
 0x430   : > { %v1873_v15 = vmul.f32 %v1856_v39, %v6166_v57  ;;  %v1224_v25 = vmul.f32 %v1200_v24, %v1191_v62  ;;  %v1743_v14 = vmul.f32 %v1711_v10, %v6173_v6  ;;  %v1189_v57 = vsel %vm638_vm1, %v4174_v1, %v6174_v50  ;;  %v6175_v39 = vld [vmem:[#allocation32_spill] sm:$0xff]  ;;  %v6177_v10 = vld [vmem:[#allocation31_spill] sm:$0xff] }
 0x431   : > { %2662 = vmatpush.msrb.mxu3 %v1354_v36  ;;  %v1218_v53 = vmul.f32 %v1200_v24, %v1190_v3  ;;  %v1737_v29 = vmul.f32 %v1710_v34, %v6173_v6  ;;  %v1188_v62 = vsel %vm638_vm1, %v4176_v61, %v6176_v38  ;;  %v1212_v36 = vmul.f32 %v1200_v24, %v1189_v57  ;;  %v6178_v3 = vld [vmem:[#allocation39_spill] sm:$0xff] }
 0x432   : > { %2604 = vmatpush.msra.mxu0 %v1873_v15  ;;  %v1043_v34 = vsel %vm627_vm2, %v4092_v49, %v6178_v3  ;;  %v1206_v57 = vmul.f32 %v1200_v24, %v1188_v62  ;;  %v1042_v49 = vsel %vm627_vm2, %v4058_v32, %v6179_v9  ;;  %v6181_v62 = vld [vmem:[#allocation29_spill] sm:$0xff]  ;;  %v6182_v32 = vld [vmem:[#allocation14_spill] sm:$0xff] }
 0x433   : > { %2663 = vmatpush.msrb.mxu3 %v1224_v25 }
 0x434   : > { %1988 = vrot.lane.b32.xlu0 %v6175_v39, %s3359_s30  ;;  %2605 = vmatpush.msra.mxu0 %v1743_v14 }
 0x435   : > { %1456 = vrot.lane.b32.xlu1 %v6139_v20, %s3357_s28  ;;  %2664 = vmatpush.msrb.mxu3 %v1218_v53  ;;  %v1052_v53 = vperm.slane %v4849_v58, 0 }
 0x436   : > { %1990 = vrot.lane.b32.xlu2 %v6177_v10, %s3359_s30  ;;  %v4977_v1 = vpop.permute.xlu0 %1664  ;;  %v4979_v15 = vpop.permute.xlu1 %1666  ;;  %2606 = vmatpush.msra.mxu0 %v1737_v29 }
 0x437   : > { %v1709_v61 = vsel %vm675_vm14, %v4678_v23, %v4979_v15  ;;  %v1708_v25 = vsel %vm675_vm14, %v4734_v60, %v4977_v1  ;;  %v4993_v14 = vpop.permute.xlu2 %1980  ;;  %2665 = vmatpush.msrb.mxu3 %v1212_v36  ;;  %v1076_v23 = vmul.f32 %v1052_v53, %v1043_v34  ;;  %v1041_v60 = vsel %vm627_vm2, %v4078_v31, %v6180_v19  ;;  %v6183_v36 = vld [vmem:[#allocation22_spill] sm:$0xff] }
 0x438   : > { %v1731_v29 = vmul.f32 %v1709_v61, %v6173_v6  ;;  %v1725_v7 = vmul.f32 %v1708_v25, %v6173_v6  ;;  %v1070_v24 = vmul.f32 %v1052_v53, %v1042_v49  ;;  %v1595_v34 = vmul.f32 %v6183_v36, %v6182_v32  ;;  %v6184_v61 = vld [vmem:[#allocation37_spill] sm:$0xff]  ;;  %v6185_v6 = vld [vmem:[#allocation35_spill] sm:$0xff] }
 0x439   : > { %2666 = vmatpush.msrb.mxu3 %v1206_v57  ;;  %v1040_v25 = vsel %vm627_vm2, %v6185_v6, %v6184_v61  ;;  %v6186_v57 = vld [vmem:[#allocation33_spill] sm:$0xff]  ;;  %v6187_v49 = vld [vmem:[#allocation23_spill] sm:$0xff] }
 0x43a   : > { %2607 = vmatpush.msra.mxu0 %v1731_v29  ;;  %v1064_v29 = vmul.f32 %v1052_v53, %v1041_v60  ;;  %v1589_v43 = vmul.f32 %v6187_v49, %v6182_v32  ;;  %v1058_v41 = vmul.f32 %v1052_v53, %v1040_v25  ;;  %v6188_v60 = vld [vmem:[#allocation19_spill] sm:$0xff]  ;;  %v6189_v53 = vld [vmem:[#allocation20_spill] sm:$0xff] }
 0x43b   : > { %2667 = vmatpush.msrb.mxu3 %v1076_v23  ;;  %v1577_v25 = vmul.f32 %v6189_v53, %v6182_v32 }
 0x43c   : > { %1842 = vrot.lane.b32.xlu0 %v6177_v10, %s3356_s27  ;;  %2608 = vmatpush.msra.mxu0 %v1725_v7 }
 0x43d   : > { %1984 = vrot.lane.b32.xlu1 %v6181_v62, %s3359_s30  ;;  %2668 = vmatpush.msrb.mxu3 %v1070_v24 }
 0x43e   : > { %1986 = vrot.lane.b32.xlu2 %v6186_v57, %s3359_s30  ;;  %v1971_v31 = vpop.permute.xlu0 %1970  ;;  %v1973_v23 = vpop.permute.xlu1 %1972  ;;  %2609 = vmatpush.msra.mxu0 %v1595_v34  ;;  %v1583_v34 = vmul.f32 %v6188_v60, %v6182_v32 }
 0x43f   : > { %v2002_v7 = vsel %vm697_vm12, %v4748_v55, %v1973_v23  ;;  %v5023_v36 = vpop.permute.xlu2 %1822  ;;  %2669 = vmatpush.msrb.mxu3 %v1064_v29  ;;  %v2001_v24 = vsel %vm697_vm12, %v4844_v21, %v1971_v31  ;;  %v2000_v55 = vsel %vm697_vm12, %v4792_v8, %v4948_v40  ;;  %v1868_v8 = vperm.slane %v4849_v58, 6 }
 0x440   : > { %v2034_v6 = vmul.f32 %v4891_v56, %v2002_v7  ;;  %2610 = vmatpush.msra.mxu0 %v1589_v43  ;;  %v2028_v29 = vmul.f32 %v4891_v56, %v2001_v24  ;;  %v2022_v43 = vmul.f32 %v4891_v56, %v2000_v55  ;;  %v1853_v53 = vsel %vm686_vm13, %v4829_v35, %v5023_v36 }
 0x441   : > { %2670 = vmatpush.msrb.mxu3 %v1058_v41  ;;  %v5045_v41 = vld [vmem:[%s5942_s3 + $0x18] sm:$0xff] }
 0x442   : > { %2611 = vmatpush.msra.mxu0 %v1583_v34  ;;  %2685 = vmatpush.msra.mxu1 %v2034_v6  ;;  %v2017_v32 = vperm.slane %v5045_v41, 7  ;;  %v1998_v6 = vsel %vm697_vm12, %v1973_v23, %v4993_v14 }
 0x444   : > { %1836 = vrot.lane.b32.xlu0 %v6181_v62, %s3356_s27  ;;  %2612 = vmatpush.msra.mxu0 %v1577_v25  ;;  %v2035_v55 = vmul.f32 %v2017_v32, %v1998_v6  ;;  %v5089_v6 = vld [vmem:[%s5944_s5 + $0x10] sm:$0xff] }
 0x445   : > { %1838 = vrot.lane.b32.xlu1 %v6186_v57, %s3356_s27  ;;  %2686 = vmatpush.msra.mxu1 %v2028_v29 }
 0x446   : > { %1840 = vrot.lane.b32.xlu2 %v6175_v39, %s3356_s27  ;;  %v1827_v21 = vpop.permute.xlu0 %1826  ;;  %v5052_v49 = vpop.permute.xlu1 %1982  ;;  %3157 = vmatmul.msk.f32.vlgmr.msrb.gmra.mxu0 %vm2468_vm0, %v5089_v6 }
 0x447   : > { %v1855_v7 = vsel %vm686_vm13, %v4893_v0, %v1827_v21  ;;  %v1999_v56 = vsel %vm697_vm12, %v4904_v48, %v5052_v49  ;;  %2687 = vmatpush.msra.mxu1 %v2022_v43  ;;  %v5064_v60 = vpop.permute.xlu2 %1834 }
 0x448   : > { %v1892_v24 = vmul.f32 %v1868_v8, %v1855_v7  ;;  %v2041_v34 = vmul.f32 %v2017_v32, %v1999_v56 }
 0x44a   : > { %2688 = vmatpush.msra.mxu1 %v1892_v24  ;;  %2771 = vmatpush.msra.mxu3 %v2041_v34  ;;  %v1851_v34 = vsel %vm686_vm13, %v1827_v21, %v5064_v60  ;;  %v5125_v21 = vld [vmem:[%s5944_s5 + $0x28] sm:$0xff] }
 0x44c   : > { %2130 = vrot.lane.b32.xlu0 %v3995_v51, %s3358_s29  ;;  %2772 = vmatpush.msra.mxu3 %v2035_v55 }
 0x44d   : > { %1692 = vrot.lane.b32.xlu1 %v6175_v39, %s3355_s26 }
 0x44e   : > { %1694 = vrot.lane.b32.xlu2 %v6177_v10, %s3355_s26  ;;  %v5072_v0 = vpop.permute.xlu0 %1978  ;;  %v1825_v48 = vpop.permute.xlu1 %1824  ;;  %3158 = vmatmul.msk.f32.gmra.mxu0 %vm2468_vm0, %v5125_v21 }
 0x44f   : > { %v1997_v23 = vsel %vm697_vm12, %v1971_v31, %v5072_v0  ;;  %v1854_v25 = vsel %vm686_vm13, %v4888_v17, %v1825_v48  ;;  %v5084_v43 = vpop.permute.xlu2 %1832  ;;  %v1880_v31 = vmul.f32 %v1868_v8, %v1853_v53  ;;  %v1869_v17 = vperm.slane %v5045_v41, 6 }
 0x450   : > { %v2029_v29 = vmul.f32 %v2017_v32, %v1997_v23  ;;  %v1886_v7 = vmul.f32 %v1868_v8, %v1854_v25 }
 0x452   : > { %2773 = vmatpush.msra.mxu3 %v2029_v29  ;;  %2689 = vmatpush.msra.mxu1 %v1886_v7  ;;  %v1850_v29 = vsel %vm686_vm13, %v1825_v48, %v5084_v43  ;;  %v5140_v48 = vld [vmem:[%s5944_s5 + $0x20] sm:$0xff] }
 0x453   : > { %v1887_v7 = vmul.f32 %v1869_v17, %v1850_v29  ;;  %2529 = vmatmul.f32.gmra.mxu3 %v5140_v48 }
 0x454   : > { %1688 = vrot.lane.b32.xlu0 %v6181_v62, %s3355_s26  ;;  %2690 = vmatpush.msra.mxu1 %v1880_v31 }
 0x455   : > { %2128 = vrot.lane.b32.xlu1 %v6136_v47, %s3358_s29 }
 0x456   : > { %1690 = vrot.lane.b32.xlu2 %v6186_v57, %s3355_s26  ;;  %v1821_v35 = vpop.permute.xlu0 %1820  ;;  %v5100_v56 = vpop.permute.xlu1 %1976 }
 0x457   : > { %v1852_v24 = vsel %vm686_vm13, %v4933_v5, %v1821_v35  ;;  %v1996_v55 = vsel %vm697_vm12, %v4948_v40, %v5100_v56  ;;  %v5112_v53 = vpop.permute.xlu2 %1830  ;;  %v5120_v5 = vld [vmem:[%s5944_s5] sm:$0xff]  ;;  %v1893_v40 = vmul.f32 %v1869_v17, %v1851_v34 }
 0x458   : > { %v1874_v23 = vmul.f32 %v1868_v8, %v1852_v24  ;;  %v2023_v25 = vmul.f32 %v2017_v32, %v1996_v55  ;;  %2497 = vmatmul.f32.vlgmr.msra.gmra.mxu2 %v5120_v5  ;;  %v1849_v8 = vsel %vm686_vm13, %v5023_v36, %v5112_v53  ;;  %v1720_v32 = vperm.slane %v4849_v58, 5  ;;  %2584 = vmatmul.f32.vlgmr.msrb.gmra.mxu1 %v5120_v5 }
 0x459   : > { %v1881_v31 = vmul.f32 %v1869_v17, %v1849_v8 }
 0x45a   : > { %2691 = vmatpush.msra.mxu1 %v1874_v23  ;;  %2774 = vmatpush.msra.mxu3 %v2023_v25 }
 0x45c   : > { %2138 = vrot.lane.b32.xlu0 %v6177_v10, %s3358_s29  ;;  %2775 = vmatpush.msra.mxu3 %v1893_v40 }
 0x45d   : > { %2124 = vrot.lane.b32.xlu1 %v6139_v20, %s3358_s29 }
 0x45e   : > { %2126 = vrot.lane.b32.xlu2 %v6135_v54, %s3358_s29  ;;  %v5146_v36 = vpop.permute.xlu0 %1678  ;;  %v5149_v24 = vpop.permute.xlu1 %2114  ;;  %2776 = vmatpush.msra.mxu3 %v1887_v7 }
 0x45f   : > { %v1707_v34 = vsel %vm675_vm14, %v4930_v52, %v5146_v36  ;;  %v2155_v55 = vsel %vm708_vm11, %v4697_v33, %v5149_v24  ;;  %v5160_v25 = vpop.permute.xlu2 %1828  ;;  %v5168_v52 = vld [vmem:[%s5942_s3 + $0x38] ss:$0 sm:$0xff] }
 0x460   : > { %v1744_v23 = vmul.f32 %v1720_v32, %v1707_v34  ;;  %v1848_v29 = vsel %vm686_vm13, %v1821_v35, %v5160_v25  ;;  %2777 = vmatpush.msra.mxu3 %v1881_v31  ;;  %v2187_v40 = vmul.f32 %v5168_v52, %v2155_v55  ;;  %v5174_v33 = vld [vmem:[%s5944_s5 + $0x18] sm:$0xff]  ;;  %v5179_v35 = vld [vmem:[%s5944_s5 + $0x40] sm:$0xff] }
 0x461   : > { %v1875_v8 = vmul.f32 %v1869_v17, %v1848_v29  ;;  %v5186_v17 = vld [vmem:[%s5944_s5 + $0x38] sm:$0xff]  ;;  %2500 = vmatmul.f32.gmra.mxu2 %v5174_v33  ;;  %3159 = vmatmul.msk.f32.gmra.mxu0 %vm2468_vm0, %v5179_v35 }
 0x462   : > { %2692 = vmatpush.msra.mxu1 %v1744_v23  ;;  %2638 = vmatpush.msrb.mxu2 %v2187_v40 }
 0x463   : > { %2778 = vmatpush.msra.mxu3 %v1875_v8  ;;  %2587 = vmatmul.f32.gmra.mxu1 %v5174_v33  ;;  %v5215_v8 = vld [vmem:[%s5944_s5 + $0x30] sm:$0xff] }
 0x464   : > { %2132 = vrot.lane.b32.xlu0 %v6181_v62, %s3358_s29  ;;  %2532 = vmatmul.f32.gmra.mxu3 %v5186_v17 }
 0x465   : > { %2134 = vrot.lane.b32.xlu1 %v6186_v57, %s3358_s29 }
 0x466   : > { %2136 = vrot.lane.b32.xlu2 %v6175_v39, %s3358_s29  ;;  %v5193_v7 = vpop.permute.xlu0 %1676  ;;  %v5197_v31 = vpop.permute.xlu1 %2112 }
 0x467   : > { %v1706_v34 = vsel %vm675_vm14, %v4871_v44, %v5193_v7  ;;  %v2154_v55 = vsel %vm708_vm11, %v4686_v59, %v5197_v31  ;;  %v5220_v44 = vld [vmem:[%s5944_s5 + $0x58] sm:$0xff]  ;;  %v5225_v59 = vld [vmem:[%s5944_s5 + $0x50] sm:$0xff] }
 0x468   : > { %v1738_v23 = vmul.f32 %v1720_v32, %v1706_v34  ;;  %v5209_v29 = vpop.permute.xlu2 %1672  ;;  %v2181_v40 = vmul.f32 %v5168_v52, %v2154_v55 }
 0x469   : > { %2503 = vmatmul.f32.gmra.mxu2 %v5215_v8  ;;  %3160 = vmatmul.msk.f32.gmra.mxu0 %vm2468_vm0, %v5220_v44  ;;  %v1704_v55 = vsel %vm675_vm14, %v4977_v1, %v5209_v29  ;;  %v1572_v1 = vperm.slane %v4849_v58, 4  ;;  %v6190_v58 = vld [vmem:[#allocation24_spill] sm:$0xff] }
 0x46a   : > { %2693 = vmatpush.msra.mxu1 %v1738_v23  ;;  %2639 = vmatpush.msrb.mxu2 %v2181_v40  ;;  %v1726_v10 = vmul.f32 %v1720_v32, %v1704_v55 }
 0x46b   : > { %2590 = vmatmul.f32.gmra.mxu1 %v5215_v8  ;;  %v1584_v20 = vmul.f32 %v1572_v1, %v6192_v45 }
 0x46c   : > { %2535 = vmatmul.f32.gmra.mxu3 %v5225_v59 }
 0x46e   : > { %v5228_v34 = vpop.permute.xlu0 %1674  ;;  %v5236_v23 = vpop.permute.xlu1 %2110 }
 0x46f   : > { %v1705_v40 = vsel %vm675_vm14, %v4979_v15, %v5228_v34  ;;  %v2153_v11 = vsel %vm708_vm11, %v4777_v37, %v5236_v23  ;;  %v5255_v15 = vld [vmem:[%s5944_s5 + $0x48] sm:$0xff] }
 0x470   : > { %v1732_v62 = vmul.f32 %v1720_v32, %v1705_v40  ;;  %v5248_v57 = vpop.permute.xlu2 %1684  ;;  %v2175_v39 = vmul.f32 %v5168_v52, %v2153_v11  ;;  %v2445_v37 = vld [vmem:[%s5945_s6 + $0x8] sm:$0xff]  ;;  %v5261_v40 = vperm.slane %v5045_v41, 3  ;;  %v1596_v11 = vmul.f32 %v1572_v1, %v6190_v58  ;;  %v6191_v32 = vld [vmem:[#allocation25_spill] sm:$0xff] }
 0x471   : > { %2455 = vperm.xlu1 %3256, %v2445_v37   ;;  %2506 = vmatmul.f32.gmra.mxu2 %v5255_v15  ;;  %v1590_v55 = vmul.f32 %v1572_v1, %v6191_v32 }
 0x472   : > { %2694 = vmatpush.msra.mxu1 %v1732_v62  ;;  %2640 = vmatpush.msrb.mxu2 %v2175_v39  ;;  %v5270_v39 = vld [vmem:[%s5942_s3 + $0x40] ss:$0 sm:$0xff] }
 0x473   : > { %2613 = vmatmul.f32.vlgmr.msra.gmra.mxu0 %v4923_v4  ;;  %2593 = vmatmul.f32.gmra.mxu1 %v5255_v15 }
 0x474   : > { %2695 = vmatpush.msra.mxu1 %v1726_v10  ;;  %2671 = vmatmul.f32.vlgmr.msrb.gmra.mxu3 %v5120_v5 }
 0x476   : > { %v5265_v62 = vpop.permute.xlu0 %1454  ;;  %2696 = vmatpush.msra.mxu1 %v1596_v11 }
 0x477   : > { %v5274_v10 = vpop.permute.xlu1 %2108  ;;  %v1483_v37 = vsel %vm660_vm15, %v4855_v26, %v5265_v62 }
 0x478   : > { %v2152_v58 = vsel %vm708_vm11, %v4819_v18, %v5274_v10  ;;  %v1521_v11 = vmul.f32 %v5261_v40, %v1483_v37  ;;  %v5286_v32 = vpop.permute.xlu2 %2122  ;;  %2697 = vmatpush.msra.mxu1 %v1590_v55  ;;  %v6193_v18 = vld [vmem:[#allocation21_spill] sm:$0xff]  ;;  %v2446_v55 = vld [vmem:[%s5945_s6 + $0x10] sm:$0xff] }
 0x479   : > { %v2151_v26 = vsel %vm708_vm11, %v5149_v24, %v5286_v32  ;;  %v2169_v54 = vmul.f32 %v5168_v52, %v2152_v58  ;;  %v1578_v37 = vmul.f32 %v1572_v1, %v6193_v18  ;;  %2460 = vperm.xlu0 %3257, %v2446_v55   ;;  %v1702_v52 = vsel %vm675_vm14, %v5193_v7, %v5248_v57 }
 0x47a   : > { %v2188_v27 = vmul.f32 %v5270_v39, %v2151_v26  ;;  %2698 = vmatpush.msra.mxu1 %v1584_v20  ;;  %v1721_v20 = vperm.slane %v5045_v41, 5 }
 0x47b   : > { %2641 = vmatpush.msrb.mxu2 %v2169_v54  ;;  %2616 = vmatmul.f32.gmra.mxu0 %v5140_v48 }
 0x47c   : > { %2725 = vmatpush.msrb.mxu0 %v2188_v27  ;;  %2699 = vmatpush.msra.mxu1 %v1578_v37  ;;  %v1739_v7 = vmul.f32 %v1721_v20, %v1702_v52 }
 0x47d   : > { %2742 = vmatpush.msra.mxu2 %v1521_v11  ;;  %2674 = vmatmul.f32.gmra.mxu3 %v5174_v33 }
 0x47e   : > { %v5300_v45 = vpop.permute.xlu0 %1452  ;;  %3161 = vmatmul.msk.f32.vlgmr.msrb.gmra.mxu2 %vm2468_vm0, %v5089_v6  ;;  %2700 = vmatmul.f32.vlgmr.msra.gmra.mxu1 %v4923_v4 }
 0x47f   : > { %v5306_v54 = vpop.permute.xlu1 %1686  ;;  %v1482_v24 = vsel %vm660_vm15, %v4467_v42, %v5300_v45 }
 0x480   : > { %v1703_v1 = vsel %vm675_vm14, %v5146_v36, %v5306_v54  ;;  %v1515_v58 = vmul.f32 %v5261_v40, %v1482_v24  ;;  %v5322_v11 = vpop.permute.xlu2 %2120  ;;  %v2444_v36 = vld [vmem:[%s5945_s6] sm:$0xff] }
 0x481   : > { %v1745_v26 = vmul.f32 %v1721_v20, %v1703_v1  ;;  %v2150_v42 = vsel %vm708_vm11, %v5197_v31, %v5322_v11  ;;  %2450 = vperm.xlu2 %3255, %v2444_v36  }
 0x482   : > { %v2182_v27 = vmul.f32 %v5270_v39, %v2150_v42  ;;  %2743 = vmatpush.msra.mxu2 %v1515_v58 }
 0x483   : > { %2779 = vmatpush.msra.mxu3 %v1745_v26  ;;  %2619 = vmatmul.f32.gmra.mxu0 %v5186_v17 }
 0x484   : > { %2726 = vmatpush.msrb.mxu0 %v2182_v27 }
 0x485   : > { %2780 = vmatpush.msra.mxu3 %v1739_v7  ;;  %v1349_v7 = vperm.slane %v5045_v41, 2 }
 0x486   : > { %v5333_v18 = vpop.permute.xlu0 %1682  ;;  %3162 = vmatmul.msk.f32.gmra.mxu2 %vm2468_vm0, %v5125_v21  ;;  %2677 = vmatmul.f32.gmra.mxu3 %v5215_v8 }
 0x487   : > { %v5338_v31 = vpop.permute.xlu1 %1450  ;;  %v1701_v37 = vsel %vm675_vm14, %v5228_v34, %v5333_v18  ;;  %2703 = vmatmul.f32.gmra.mxu1 %v5140_v48  ;;  %v1573_v34 = vperm.slane %v5045_v41, 4 }
 0x488   : > { %v1481_v55 = vsel %vm660_vm15, %v4414_v63, %v5338_v31  ;;  %v1733_v24 = vmul.f32 %v1721_v20, %v1701_v37  ;;  %v5350_v1 = vpop.permute.xlu2 %1462 }
 0x489   : > { %v1509_v52 = vmul.f32 %v5261_v40, %v1481_v55  ;;  %v1597_v37 = vmul.f32 %v1573_v34, %v3981_v16  ;;  %v6194_v55 = vld [vmem:[#allocation70_spill] sm:$0xff] }
 0x48a   : > { %2781 = vmatpush.msra.mxu3 %v1733_v24  ;;  %v1373_v24 = vmul.f32 %v1349_v7, %v6194_v55  ;;  %v1579_v55 = vmul.f32 %v1573_v34, %v3959_v13  ;;  %v6199_v13 = vld [vmem:[#allocation68_spill] sm:$0xff] }
 0x48b   : > { %2744 = vmatpush.msra.mxu2 %v1509_v52  ;;  %2622 = vmatmul.f32.gmra.mxu0 %v5225_v59  ;;  %v1591_v52 = vmul.f32 %v1573_v34, %v3953_v12  ;;  %v6197_v12 = vld [vmem:[#allocation75_spill] sm:$0xff] }
 0x48e   : > { %v5353_v58 = vpop.permute.xlu0 %1680  ;;  %3163 = vmatmul.msk.f32.gmra.mxu2 %vm2468_vm0, %v5179_v35  ;;  %2680 = vmatmul.f32.gmra.mxu3 %v5255_v15 }
 0x48f   : > { %v5359_v26 = vpop.permute.xlu1 %1448  ;;  %v1700_v63 = vsel %vm675_vm14, %v5209_v29, %v5353_v58  ;;  %2706 = vmatmul.f32.gmra.mxu1 %v5186_v17 }
 0x490   : > { %v1480_v42 = vsel %vm660_vm15, %v6164_v46, %v5359_v26  ;;  %v1727_v27 = vmul.f32 %v1721_v20, %v1700_v63  ;;  %v5375_v29 = vpop.permute.xlu2 %1990  ;;  %v5381_v46 = vld [vmem:[%s5942_s3 + $0x20] sm:$0xff] }
 0x491   : > { %v1503_v36 = vmul.f32 %v5261_v40, %v1480_v42  ;;  %v6195_v20 = vld [vmem:[#allocation74_spill] sm:$0xff]  ;;  %v5385_v63 = vperm.slane %v5381_v46, 7  ;;  %v1585_v42 = vmul.f32 %v1573_v34, %v3957_v30  ;;  %v1355_v34 = vmul.f32 %v1349_v7, %v6199_v13  ;;  %v6201_v13 = vld [vmem:[#allocation59_spill] sm:$0xff] }
 0x492   : > { %2782 = vmatpush.msra.mxu3 %v1727_v27  ;;  %v1367_v40 = vmul.f32 %v1349_v7, %v6195_v20  ;;  %v1361_v27 = vmul.f32 %v1349_v7, %v6197_v12  ;;  %v1201_v12 = vperm.slane %v5045_v41, 1 }
 0x493   : > { %2745 = vmatpush.msra.mxu2 %v1503_v36  ;;  %v1995_v36 = vsel %vm697_vm12, %v5052_v49, %v5375_v29 }
 0x494   : > { %2783 = vmatpush.msra.mxu3 %v1597_v37 }
 0x495   : > { %2746 = vmatpush.msra.mxu2 %v1373_v24  ;;  %v6198_v24 = vld [vmem:[#allocation54_spill] sm:$0xff] }
 0x496   : > { %v5387_v16 = vpop.permute.xlu0 %2116  ;;  %2784 = vmatpush.msra.mxu3 %v1591_v52  ;;  %3164 = vmatmul.msk.f32.gmra.mxu2 %vm2468_vm0, %v5220_v44  ;;  %v1187_v30 = vsel %vm638_vm1, %v6170_v2, %v6198_v24  ;;  %v5405_v52 = vperm.slane %v5381_v46, 3  ;;  %v1479_v2 = vsel %vm660_vm15, %v5265_v62, %v5350_v1 }
 0x497   : > { %6196 = vst [vmem:[#allocation15_spill] sm:$0xff] %v5387_v16  ;;  %v5397_v37 = vpop.permute.xlu1 %2118  ;;  %2747 = vmatpush.msra.mxu2 %v1367_v40  ;;  %v2148_v49 = vsel %vm708_vm11, %v5274_v10, %v5387_v16  ;;  %2709 = vmatmul.f32.gmra.mxu1 %v5225_v59  ;;  %v1225_v62 = vmul.f32 %v1201_v12, %v1187_v30 }
 0x498   : > { %v2149_v20 = vsel %vm708_vm11, %v5236_v23, %v5397_v37  ;;  %2785 = vmatpush.msra.mxu3 %v1585_v42  ;;  %v6200_v23 = vld [vmem:[#allocation58_spill] sm:$0xff]  ;;  %v2042_v42 = vmul.f32 %v5385_v63, %v1995_v36  ;;  %v2170_v7 = vmul.f32 %v5270_v39, %v2148_v49  ;;  %v5434_v16 = vpop.permute.xlu2 %1986  ;;  %v6202_v36 = vld [vmem:[#allocation52_spill] sm:$0xff] }
 0x499   : > { %v2176_v40 = vmul.f32 %v5270_v39, %v2149_v20  ;;  %2748 = vmatpush.msra.mxu2 %v1361_v27  ;;  %v1186_v10 = vsel %vm638_vm1, %v6172_v28, %v6200_v23  ;;  %v1185_v27 = vsel %vm638_vm1, %v6174_v50, %v6201_v13  ;;  %v1522_v20 = vmul.f32 %v5405_v52, %v1479_v2  ;;  %v2447_v39 = vld [vmem:[%s5945_s6 + $0x18] sm:$0xff] }
 0x49a   : > { %2786 = vmatpush.msra.mxu3 %v1579_v55  ;;  %v1219_v28 = vmul.f32 %v1201_v12, %v1186_v10  ;;  %v1184_v55 = vsel %vm638_vm1, %v6176_v38, %v6202_v36  ;;  %v1213_v49 = vmul.f32 %v1201_v12, %v1185_v27  ;;  %2465 = vperm.xlu2 %3255, %v2447_v39  }
 0x49b   : > { %2727 = vmatpush.msrb.mxu0 %v2176_v40  ;;  %2749 = vmatpush.msra.mxu2 %v1355_v34  ;;  %v6203_v34 = vld [vmem:[#allocation38_spill] sm:$0xff]  ;;  %v1207_v10 = vmul.f32 %v1201_v12, %v1184_v55 }
 0x49c   : > { %3199 = vmatpush.msrb.mxu3 %v2042_v42  ;;  %v1039_v2 = vsel %vm627_vm2, %v6178_v3, %v6203_v34 }
 0x49d   : > { %2728 = vmatpush.msrb.mxu0 %v2170_v7  ;;  %2750 = vmatpush.msra.mxu2 %v1225_v62  ;;  %v1053_v7 = vperm.slane %v5045_v41, 0  ;;  %v6204_v62 = vld [vmem:[#allocation42_spill] sm:$0xff] }
 0x49e   : > { %v5443_v30 = vpop.permute.xlu0 %1458  ;;  %2787 = vmatmul.f32.vlgmr.msra.gmra.mxu3 %v4923_v4  ;;  %3165 = vmatmul.msk.f32.vlgmr.msrb.gmra.mxu0 %vm2468_vm0, %v5089_v6  ;;  %v1038_v3 = vsel %vm627_vm2, %v6179_v9, %v6204_v62  ;;  %v1993_v9 = vsel %vm697_vm12, %v5072_v0, %v5434_v16 }
 0x49f   : > { %2829 = vmatpush.msra.mxu0 %v1522_v20  ;;  %v5446_v50 = vpop.permute.xlu1 %1460  ;;  %2751 = vmatpush.msra.mxu2 %v1219_v28  ;;  %v1477_v4 = vsel %vm660_vm15, %v5338_v31, %v5443_v30  ;;  %v6205_v20 = vld [vmem:[#allocation43_spill] sm:$0xff]  ;;  %v1071_v12 = vmul.f32 %v1053_v7, %v1038_v3  ;;  %v6206_v28 = vld [vmem:[#allocation36_spill] sm:$0xff] }
 0x4a0   : > { %v1478_v38 = vsel %vm660_vm15, %v5300_v45, %v5446_v50  ;;  %v1510_v27 = vmul.f32 %v5405_v52, %v1477_v4  ;;  %v1077_v45 = vmul.f32 %v1053_v7, %v1039_v2  ;;  %v1037_v31 = vsel %vm627_vm2, %v6180_v19, %v6205_v20  ;;  %v5484_v55 = vpop.permute.xlu2 %1840 }
 0x4a1   : > { %v1516_v40 = vmul.f32 %v5405_v52, %v1478_v38  ;;  %2752 = vmatpush.msra.mxu2 %v1213_v49  ;;  %v1036_v41 = vsel %vm627_vm2, %v6184_v61, %v6206_v28  ;;  %v1065_v61 = vmul.f32 %v1053_v7, %v1037_v31  ;;  %v1350_v38 = vperm.slane %v5381_v46, 2 }
 0x4a3   : > { %2753 = vmatpush.msra.mxu2 %v1207_v10  ;;  %2830 = vmatpush.msra.mxu0 %v1516_v40  ;;  %v1059_v40 = vmul.f32 %v1053_v7, %v1036_v41  ;;  %v6207_v10 = vld [vmem:[#allocation80_spill] sm:$0xff] }
 0x4a4   : > { %v1374_v3 = vmul.f32 %v1350_v38, %v6207_v10 }
 0x4a5   : > { %2754 = vmatpush.msra.mxu2 %v1077_v45  ;;  %2831 = vmatpush.msra.mxu0 %v1510_v27  ;;  %v6208_v27 = vld [vmem:[#allocation73_spill] sm:$0xff] }
 0x4a6   : > { %v5477_v39 = vpop.permute.xlu0 %1988  ;;  %2790 = vmatmul.f32.gmra.mxu3 %v5140_v48  ;;  %3166 = vmatmul.msk.f32.gmra.mxu0 %vm2468_vm0, %v5125_v21  ;;  %v1368_v45 = vmul.f32 %v1350_v38, %v6208_v27  ;;  %v6214_v27 = vld [vmem:[#allocation62_spill] sm:$0xff] }
 0x4a7   : > { %v5486_v19 = vpop.permute.xlu1 %1456  ;;  %v1994_v49 = vsel %vm697_vm12, %v4993_v14, %v5477_v39  ;;  %2755 = vmatpush.msra.mxu2 %v1071_v12  ;;  %v2030_v14 = vmul.f32 %v5385_v63, %v1993_v9  ;;  %v6210_v12 = vld [vmem:[#allocation64_spill] sm:$0xff] }
 0x4a8   : > { %v1476_v2 = vsel %vm660_vm15, %v5359_v26, %v5486_v19  ;;  %v2036_v0 = vmul.f32 %v5385_v63, %v1994_v49  ;;  %v6211_v49 = vld [vmem:[#allocation78_spill] sm:$0xff] }
 0x4a9   : > { %v1504_v4 = vmul.f32 %v5405_v52, %v1476_v2  ;;  %2756 = vmatpush.msra.mxu2 %v1065_v61  ;;  %v6209_v52 = vld [vmem:[#allocation77_spill] sm:$0xff]  ;;  %v1356_v61 = vmul.f32 %v1350_v38, %v6211_v49  ;;  %v1870_v2 = vperm.slane %v5381_v46, 6 }
 0x4aa   : > { %3200 = vmatpush.msrb.mxu3 %v2036_v0  ;;  %v1362_v7 = vmul.f32 %v1350_v38, %v6209_v52 }
 0x4ab   : > { %2757 = vmatpush.msra.mxu2 %v1059_v40  ;;  %2832 = vmatpush.msra.mxu0 %v1504_v4  ;;  %v6212_v40 = vld [vmem:[#allocation57_spill] sm:$0xff] }
 0x4ac   : > { %3201 = vmatpush.msrb.mxu3 %v2030_v14  ;;  %2758 = vmatmul.f32.vlgmr.msra.gmra.mxu2 %v5120_v5 }
 0x4ad   : > { %2858 = vmatpush.msrb.mxu2 %v2042_v42  ;;  %2833 = vmatpush.msra.mxu0 %v1374_v3  ;;  %v1183_v42 = vsel %vm638_vm1, %v6198_v24, %v6210_v12  ;;  %v1202_v24 = vperm.slane %v5381_v46, 1 }
 0x4ae   : > { %v5505_v26 = vpop.permute.xlu0 %1842  ;;  %2793 = vmatmul.f32.gmra.mxu3 %v5186_v17  ;;  %3167 = vmatmul.msk.f32.gmra.mxu0 %vm2468_vm0, %v5179_v35 }
 0x4af   : > { %2859 = vmatpush.msrb.mxu2 %v2036_v0  ;;  %v5509_v31 = vpop.permute.xlu1 %1984  ;;  %2834 = vmatpush.msra.mxu0 %v1368_v45  ;;  %v1847_v9 = vsel %vm686_vm13, %v5064_v60, %v5505_v26  ;;  %v5525_v0 = vpop.permute.xlu2 %1694  ;;  %v1846_v60 = vsel %vm686_vm13, %v5084_v43, %v5484_v55  ;;  %v1180_v43 = vsel %vm638_vm1, %v6202_v36, %v6214_v27 }
 0x4b0   : > { %v1992_v41 = vsel %vm697_vm12, %v5100_v56, %v5509_v31  ;;  %v1182_v56 = vsel %vm638_vm1, %v6200_v23, %v6212_v40  ;;  %v1894_v38 = vmul.f32 %v1870_v2, %v1847_v9  ;;  %v1888_v3 = vmul.f32 %v1870_v2, %v1846_v60 }
 0x4b1   : > { %2860 = vmatpush.msrb.mxu2 %v2030_v14  ;;  %v2024_v4 = vmul.f32 %v5385_v63, %v1992_v41  ;;  %2835 = vmatpush.msra.mxu0 %v1362_v7  ;;  %v1226_v63 = vmul.f32 %v1202_v24, %v1183_v42  ;;  %v6213_v14 = vld [vmem:[#allocation61_spill] sm:$0xff]  ;;  %v1220_v23 = vmul.f32 %v1202_v24, %v1182_v56  ;;  %v6215_v7 = vld [vmem:[#allocation48_spill] sm:$0xff]  ;;  %v5565_v9 = vperm.slane %v5381_v46, 5 }
 0x4b2   : > { %v1181_v10 = vsel %vm638_vm1, %v6201_v13, %v6213_v14  ;;  %v1035_v42 = vsel %vm627_vm2, %v6203_v34, %v6215_v7  ;;  %v6216_v34 = vld [vmem:[#allocation41_spill] sm:$0xff] }
 0x4b3   : > { %2836 = vmatpush.msra.mxu0 %v1356_v61  ;;  %2861 = vmatpush.msrb.mxu2 %v2024_v4  ;;  %v1214_v13 = vmul.f32 %v1202_v24, %v1181_v10  ;;  %v1208_v61 = vmul.f32 %v1202_v24, %v1180_v43 }
 0x4b4   : > { %3202 = vmatpush.msrb.mxu3 %v2024_v4  ;;  %2761 = vmatmul.f32.gmra.mxu2 %v5174_v33  ;;  %v1054_v4 = vperm.slane %v5381_v46, 0 }
 0x4b5   : > { %2837 = vmatpush.msra.mxu0 %v1226_v63  ;;  %2862 = vmatpush.msrb.mxu2 %v1894_v38 }
 0x4b6   : > { %3203 = vmatpush.msrb.mxu3 %v1894_v38  ;;  %v5547_v45 = vpop.permute.xlu0 %1836  ;;  %3168 = vmatmul.msk.f32.gmra.mxu0 %vm2468_vm0, %v5220_v44  ;;  %v1078_v60 = vmul.f32 %v1054_v4, %v1035_v42  ;;  %v6217_v38 = vld [vmem:[#allocation45_spill] sm:$0xff] }
 0x4b7   : > { %v5550_v52 = vpop.permute.xlu1 %1838  ;;  %2838 = vmatpush.msra.mxu0 %v1220_v23  ;;  %2863 = vmatpush.msrb.mxu2 %v1888_v3  ;;  %v1844_v41 = vsel %vm686_vm13, %v5160_v25, %v5547_v45  ;;  %v1699_v25 = vsel %vm675_vm14, %v5306_v54, %v5525_v0  ;;  %v5579_v56 = vpop.permute.xlu2 %1690  ;;  %v1033_v63 = vsel %vm627_vm2, %v6205_v20, %v6217_v38  ;;  %v5599_v20 = vld [vmem:[%s5942_s3 + $0x48] ss:$0 sm:$0xff] }
 0x4b8   : > { %v1845_v36 = vsel %vm686_vm13, %v5112_v53, %v5550_v52  ;;  %3204 = vmatpush.msrb.mxu3 %v1888_v3  ;;  %v1034_v53 = vsel %vm627_vm2, %v6204_v62, %v6216_v34  ;;  %v1876_v24 = vmul.f32 %v1870_v2, %v1844_v41  ;;  %v5588_v62 = vld [vmem:[%s5942_s3 + $0x28] sm:$0xff]  ;;  %v1746_v54 = vmul.f32 %v5565_v9, %v1699_v25 }
 0x4b9   : > { %v1882_v49 = vmul.f32 %v1870_v2, %v1845_v36  ;;  %2839 = vmatpush.msra.mxu0 %v1214_v13  ;;  %2796 = vmatmul.f32.gmra.mxu3 %v5225_v59  ;;  %v1072_v10 = vmul.f32 %v1054_v4, %v1034_v53  ;;  %v6218_v2 = vld [vmem:[#allocation46_spill] sm:$0xff]  ;;  %v2019_v23 = vperm.slane %v5588_v62, 7  ;;  %v6219_v13 = vld [vmem:[#allocation87_spill] sm:$0xff]  ;;  %v1066_v41 = vmul.f32 %v1054_v4, %v1033_v63  ;;  %v6220_v53 = vld [vmem:[#allocation88_spill] sm:$0xff] }
 0x4ba   : > { %v1032_v3 = vsel %vm627_vm2, %v6206_v28, %v6218_v2  ;;  %v2015_v42 = vsel %vm697_vm12, %v5375_v29, %v6219_v13  ;;  %v1574_v13 = vperm.slane %v5381_v46, 4 }
 0x4bb   : > { %2840 = vmatpush.msra.mxu0 %v1208_v61  ;;  %2864 = vmatpush.msrb.mxu2 %v1882_v49 }
 0x4bc   : > { %3205 = vmatpush.msrb.mxu3 %v1882_v49  ;;  %2764 = vmatmul.f32.gmra.mxu2 %v5215_v8  ;;  %v1697_v49 = vsel %vm675_vm14, %v5333_v18, %v5579_v56  ;;  %v6221_v18 = vld [vmem:[#allocation86_spill] sm:$0xff] }
 0x4bd   : > { %2841 = vmatpush.msra.mxu0 %v1078_v60  ;;  %2865 = vmatpush.msrb.mxu2 %v1876_v24  ;;  %v2043_v60 = vmul.f32 %v2019_v23, %v2015_v42  ;;  %v2013_v63 = vsel %vm697_vm12, %v5434_v16, %v6221_v18  ;;  %v1871_v42 = vperm.slane %v5588_v62, 6 }
 0x4be   : > { %3206 = vmatpush.msrb.mxu3 %v1876_v24  ;;  %v5601_v43 = vpop.permute.xlu0 %2130  ;;  %v1060_v24 = vmul.f32 %v1054_v4, %v1032_v3  ;;  %v2031_v3 = vmul.f32 %v2019_v23, %v2013_v63 }
 0x4bf   : > { %v5608_v36 = vpop.permute.xlu1 %1692  ;;  %v2147_v28 = vsel %vm708_vm11, %v5286_v32, %v5601_v43  ;;  %2842 = vmatpush.msra.mxu0 %v1072_v10  ;;  %2866 = vmatpush.msrb.mxu2 %v1746_v54  ;;  %v2014_v32 = vsel %vm697_vm12, %v5477_v39, %v6220_v53  ;;  %v6222_v10 = vld [vmem:[#allocation90_spill] sm:$0xff]  ;;  %v5637_v4 = vpop.permute.xlu2 %2126 }
 0x4c0   : > { %v1698_v29 = vsel %vm675_vm14, %v5248_v57, %v5608_v36  ;;  %v2189_v61 = vmul.f32 %v5599_v20, %v2147_v28  ;;  %3207 = vmatpush.msrb.mxu3 %v1746_v54  ;;  %v1734_v57 = vmul.f32 %v5565_v9, %v1697_v49  ;;  %v2037_v54 = vmul.f32 %v2019_v23, %v2014_v32  ;;  %v6223_v28 = vld [vmem:[#allocation91_spill] sm:$0xff] }
 0x4c1   : > { %v1740_v25 = vmul.f32 %v5565_v9, %v1698_v29  ;;  %2843 = vmatpush.msra.mxu0 %v1066_v41  ;;  %v2012_v39 = vsel %vm697_vm12, %v5509_v31, %v6222_v10  ;;  %v1867_v41 = vsel %vm686_vm13, %v5505_v26, %v6223_v28  ;;  %v2145_v46 = vsel %vm708_vm11, %v5397_v37, %v5637_v4  ;;  %v6225_v37 = vld [vmem:[#allocation93_spill] sm:$0xff] }
 0x4c2   : > { %2812 = vmatpush.msrb.mxu1 %v2189_v61  ;;  %v2025_v49 = vmul.f32 %v2019_v23, %v2012_v39  ;;  %v6224_v61 = vld [vmem:[#allocation89_spill] sm:$0xff]  ;;  %v1895_v23 = vmul.f32 %v1871_v42, %v1867_v41  ;;  %v1598_v32 = vmul.f32 %v1574_v13, %v3995_v51  ;;  %v6230_v41 = vld [vmem:[#allocation92_spill] sm:$0xff] }
 0x4c3   : > { %2844 = vmatpush.msra.mxu0 %v1060_v24  ;;  %2867 = vmatpush.msrb.mxu2 %v1740_v25  ;;  %v6226_v24 = vld [vmem:[#allocation30_spill] sm:$0xff]  ;;  %v6228_v10 = vld [vmem:[#allocation97_spill] sm:$0xff] }
 0x4c4   : > { %3208 = vmatpush.msrb.mxu3 %v1740_v25  ;;  %2845 = vmatmul.f32.vlgmr.msra.gmra.mxu0 %v5120_v5 }
 0x4c5   : > { %2945 = vmatpush.msrb.mxu0 %v2043_v60  ;;  %2868 = vmatpush.msrb.mxu2 %v1734_v57  ;;  %v1864_v60 = vsel %vm686_vm13, %v5547_v45, %v6226_v24 }
 0x4c6   : > { %3209 = vmatpush.msrb.mxu3 %v1734_v57  ;;  %v5640_v16 = vpop.permute.xlu0 %1688  ;;  %2767 = vmatmul.f32.gmra.mxu2 %v5255_v15  ;;  %v1499_v57 = vperm.slane %v5588_v62, 3 }
 0x4c7   : > { %2946 = vmatpush.msrb.mxu0 %v2037_v54  ;;  %v2129_v31 = vpop.permute.xlu1 %2128  ;;  %v1696_v5 = vsel %vm675_vm14, %v5353_v58, %v5640_v16  ;;  %v1866_v58 = vsel %vm686_vm13, %v5484_v55, %v6224_v61  ;;  %v1592_v55 = vmul.f32 %v1574_v13, %v6136_v47  ;;  %v5682_v54 = vld [vmem:[%s5942_s3 + $0x50] ss:$0 sm:$0xff] }
 0x4c8   : > { %v2146_v29 = vsel %vm708_vm11, %v5322_v11, %v2129_v31  ;;  %v1728_v26 = vmul.f32 %v5565_v9, %v1696_v5  ;;  %v1865_v11 = vsel %vm686_vm13, %v5550_v52, %v6225_v37  ;;  %v2177_v9 = vmul.f32 %v5599_v20, %v2145_v46  ;;  %v6227_v52 = vld [vmem:[#allocation27_spill] sm:$0xff]  ;;  %v6232_v61 = vld [vmem:[#allocation96_spill] sm:$0xff] }
 0x4c9   : > { %2947 = vmatpush.msrb.mxu0 %v2031_v3  ;;  %v2183_v53 = vmul.f32 %v5599_v20, %v2146_v29  ;;  %v1889_v25 = vmul.f32 %v1871_v42, %v1866_v58  ;;  %v1883_v51 = vmul.f32 %v1871_v42, %v1865_v11  ;;  %v1586_v63 = vmul.f32 %v1574_v13, %v6227_v52  ;;  %v6229_v3 = vld [vmem:[#allocation28_spill] sm:$0xff]  ;;  %v2137_v29 = vpop.permute.xlu2 %2136 }
 0x4ca   : > { %2869 = vmatpush.msrb.mxu2 %v1728_v26  ;;  %3210 = vmatpush.msrb.mxu3 %v1728_v26  ;;  %v1580_v28 = vmul.f32 %v1574_v13, %v6229_v3  ;;  %v1475_v5 = vsel %vm660_vm15, %v5350_v1, %v6230_v41  ;;  %v1877_v46 = vmul.f32 %v1871_v42, %v1864_v60  ;;  %v6231_v26 = vld [vmem:[#allocation15_spill] sm:$0xff] }
 0x4cb   : > { %2948 = vmatpush.msrb.mxu0 %v2025_v49  ;;  %2813 = vmatpush.msrb.mxu1 %v2183_v53  ;;  %v1723_v49 = vperm.slane %v5588_v62, 5  ;;  %v1719_v1 = vsel %vm675_vm14, %v5525_v0, %v6232_v61  ;;  %v6233_v53 = vld [vmem:[#allocation94_spill] sm:$0xff]  ;;  %v1523_v11 = vmul.f32 %v1499_v57, %v1475_v5  ;;  %v6237_v60 = vld [vmem:[#allocation99_spill] sm:$0xff]  ;;  %v1575_v5 = vperm.slane %v5588_v62, 4 }
 0x4cc   : > { %2870 = vmatpush.msrb.mxu2 %v1598_v32  ;;  %3211 = vmatpush.msrb.mxu3 %v1598_v32  ;;  %v2142_v32 = vsel %vm708_vm11, %v2129_v31, %v2137_v29 }
 0x4cd   : > { %2949 = vmatpush.msrb.mxu0 %v1895_v23  ;;  %2814 = vmatpush.msrb.mxu1 %v2177_v9  ;;  %v1474_v23 = vsel %vm660_vm15, %v5446_v50, %v6233_v53  ;;  %v6234_v9 = vld [vmem:[#allocation12_spill] sm:$0xff]  ;;  %v6236_v50 = vld [vmem:[#allocation95_spill] sm:$0xff] }
 0x4ce   : > { %v2139_v18 = vpop.permute.xlu0 %2138  ;;  %2871 = vmatpush.msrb.mxu2 %v1592_v55  ;;  %3212 = vmatpush.msrb.mxu3 %v1592_v55  ;;  %v1718_v0 = vsel %vm675_vm14, %v5608_v36, %v6234_v9  ;;  %v1473_v31 = vsel %vm660_vm15, %v5443_v30, %v6236_v50  ;;  %v1747_v55 = vmul.f32 %v1723_v49, %v1719_v1  ;;  %v6241_v1 = vld [vmem:[#allocation101_spill] sm:$0xff] }
 0x4cf   : > { %2950 = vmatpush.msrb.mxu0 %v1889_v25  ;;  %v5684_v47 = vpop.permute.xlu1 %2124  ;;  %v2143_v45 = vsel %vm708_vm11, %v5601_v43, %v2139_v18  ;;  %v2163_v39 = vsel %vm708_vm11, %v2139_v18, %v6228_v10  ;;  %v5702_v43 = vld [vmem:[%s5942_s3 + $0x58] ss:$0 sm:$0xff]  ;;  %v1517_v24 = vmul.f32 %v1499_v57, %v1474_v23  ;;  %v1717_v36 = vsel %vm675_vm14, %v5579_v56, %v6237_v60  ;;  %v6238_v18 = vld [vmem:[#allocation100_spill] sm:$0xff]  ;;  %v6243_v23 = vld [vmem:[#allocation31_spill] sm:$0xff] }
 0x4d0   : > { %2848 = vmatmul.f32.gmra.mxu0 %v5174_v33  ;;  %v2144_v13 = vsel %vm708_vm11, %v6231_v26, %v5684_v47  ;;  %2872 = vmatpush.msrb.mxu2 %v1586_v63  ;;  %v5708_v33 = vpop.f32.mrf.mxu0  ;;  %v2190_v58 = vmul.f32 %v5682_v54, %v2143_v45  ;;  %v2191_v37 = vmul.f32 %v5702_v43, %v2163_v39  ;;  %v6239_v45 = vld [vmem:[#allocation98_spill] sm:$0xff]  ;;  %v5763_v26 = vld [vmem:[%s5944_s5 + $0x8] sm:$0xff] }
 0x4d1   : > { %2951 = vmatpush.msrb.mxu0 %v1883_v51  ;;  %v2171_v42 = vmul.f32 %v5599_v20, %v2144_v13  ;;  %3213 = vmatpush.msrb.mxu3 %v1586_v63  ;;  %v6235_v20 = vld [vmem:[#allocation16_spill] sm:$0xff]  ;;  %v2184_v51 = vmul.f32 %v5682_v54, %v2142_v32  ;;  %v1472_v30 = vsel %vm660_vm15, %v5486_v19, %v6238_v18  ;;  %v1351_v13 = vperm.slane %v5588_v62, 2 }
 0x4d2   : > { %2873 = vmatpush.msrb.mxu2 %v1580_v28  ;;  %v2162_v25 = vsel %vm708_vm11, %v2137_v29, %v6235_v20  ;;  %v1741_v52 = vmul.f32 %v1723_v49, %v1718_v0  ;;  %v1716_v56 = vsel %vm675_vm14, %v5640_v16, %v6239_v45  ;;  %v1735_v3 = vmul.f32 %v1723_v49, %v1717_v36  ;;  %v6245_v0 = vld [vmem:[#allocation32_spill] sm:$0xff] }
 0x4d3   : > { %2952 = vmatpush.msrb.mxu0 %v1877_v46  ;;  %2815 = vmatpush.msrb.mxu1 %v2171_v42  ;;  %v2185_v63 = vmul.f32 %v5702_v43, %v2162_v25  ;;  %v1505_v46 = vmul.f32 %v1499_v57, %v1472_v30  ;;  %v1729_v61 = vmul.f32 %v1723_v49, %v1716_v56  ;;  %v6250_v30 = vld [vmem:[#allocation29_spill] sm:$0xff]  ;;  %v6252_v56 = vld [vmem:[#allocation60_spill] sm:$0xff] }
 0x4d4   : > { %3214 = vmatpush.msrb.mxu3 %v1580_v28  ;;  %3169 = vmatmul.msk.f32.vlgmr.msrb.gmra.mxu1 %vm2468_vm0, %v5089_v6  ;;  %v6240_v28 = vld [vmem:[#allocation17_spill] sm:$0xff]  ;;  %v1599_v32 = vmul.f32 %v1575_v5, %v6243_v23  ;;  %v1593_v20 = vmul.f32 %v1575_v5, %v6245_v0  ;;  %v3297_v0 = vld [vmem:[%s5944_s5 + $0x20] sm:$0xff] }
 0x4d5   : > { %2877 = vmatmul.f32.vlgmr.msrb.gmra.mxu3 %v5140_v48  ;;  %2916 = vmatpush.msra.mxu1 %v1523_v11  ;;  %v1511_v48 = vmul.f32 %v1499_v57, %v1473_v31 }
 0x4d6   : > { %2899 = vmatpush.msra.mxu3 %v2190_v58  ;;  %2953 = vmatpush.msrb.mxu0 %v1747_v55  ;;  %v2133_v39 = vpop.permute.xlu0 %2132  ;;  %v6242_v58 = vld [vmem:[#allocation81_spill] sm:$0xff] }
 0x4d7   : > { %2986 = vmatpush.msra.mxu2 %v2191_v37  ;;  %2917 = vmatpush.msra.mxu1 %v1517_v24  ;;  %v2135_v10 = vpop.permute.xlu1 %2134  ;;  %v2140_v57 = vsel %vm708_vm11, %v5684_v47, %v2133_v39  ;;  %v2160_v42 = vsel %vm708_vm11, %v2133_v39, %v6241_v1  ;;  %v1375_v53 = vmul.f32 %v1351_v13, %v6242_v58  ;;  %v2527_v37 = vpop.f32.mrf.mxu3  ;;  %v6244_v47 = vld [vmem:[#allocation82_spill] sm:$0xff]  ;;  %v6247_v55 = vld [vmem:[#allocation33_spill] sm:$0xff]  ;;  %v6256_v1 = vld [vmem:[#allocation44_spill] sm:$0xff] }
 0x4d8   : > { %2900 = vmatpush.msra.mxu3 %v2184_v51  ;;  %2954 = vmatpush.msrb.mxu0 %v1741_v52  ;;  %v2141_v19 = vsel %vm708_vm11, %v5637_v4, %v2135_v10  ;;  %v2161_v41 = vsel %vm708_vm11, %v2135_v10, %v6240_v28  ;;  %v5766_v4 = vpop.f32.mrf.mxu0  ;;  %v2172_v49 = vmul.f32 %v5682_v54, %v2140_v57  ;;  %v6248_v24 = vld [vmem:[#allocation65_spill] sm:$0xff]  ;;  %v6249_v51 = vld [vmem:[#allocation79_spill] sm:$0xff] }
 0x4d9   : > { %2987 = vmatpush.msra.mxu2 %v2185_v63  ;;  %v2178_v16 = vmul.f32 %v5682_v54, %v2141_v19  ;;  %v2179_v29 = vmul.f32 %v5702_v43, %v2161_v41  ;;  %2918 = vmatpush.msra.mxu1 %v1511_v48  ;;  %v2173_v11 = vmul.f32 %v5702_v43, %v2160_v42  ;;  %v6246_v43 = vld [vmem:[#allocation76_spill] sm:$0xff]  ;;  %v1203_v63 = vperm.slane %v5588_v62, 1  ;;  %v6257_v58 = vld [vmem:[#allocation47_spill] sm:$0xff] }
 0x4da   : > { %2874 = vmatmul.f32.vlgmr.msrb.gmra.mxu2 %v5763_v26  ;;  %2955 = vmatpush.msrb.mxu0 %v1735_v3  ;;  %v1369_v9 = vmul.f32 %v1351_v13, %v6244_v47  ;;  %v1363_v31 = vmul.f32 %v1351_v13, %v6246_v43  ;;  %v1179_v60 = vsel %vm638_vm1, %v6210_v12, %v6248_v24  ;;  %v6251_v12 = vld [vmem:[#allocation66_spill] sm:$0xff] }
 0x4db   : > { %2919 = vmatpush.msra.mxu1 %v1505_v46  ;;  %2901 = vmatpush.msra.mxu3 %v2178_v16  ;;  %v2498_v25 = vpop.f32.mrf.mxu2  ;;  %v5784_v50 = vpop.permute.xlu2 %2450  ;;  %v1357_v18 = vmul.f32 %v1351_v13, %v6249_v51  ;;  %v1581_v52 = vmul.f32 %v1575_v5, %v6250_v30  ;;  %v1227_v45 = vmul.f32 %v1203_v63, %v1179_v60  ;;  %v6255_v16 = vld [vmem:[#allocation50_spill] sm:$0xff] }
 0x4dc   : > { %2956 = vmatpush.msrb.mxu0 %v1729_v61  ;;  %2988 = vmatpush.msra.mxu2 %v2179_v29  ;;  %v2499_v54 = vadd.f32 %v2498_v25, %v5784_v50  ;;  %v1177_v10 = vsel %vm638_vm1, %v6213_v14, %v6252_v56  ;;  %v6254_v14 = vld [vmem:[#allocation49_spill] sm:$0xff]  ;;  %v1030_v29 = vsel %vm627_vm2, %v6216_v34, %v6255_v16 }
 0x4dd   : > { %3170 = vmatmul.msk.f32.gmra.mxu1 %vm2468_vm0, %v5125_v21  ;;  %2880 = vmatmul.f32.gmra.mxu3 %v5186_v17  ;;  %v1587_v17 = vmul.f32 %v1575_v5, %v6247_v55  ;;  %v1215_v28 = vmul.f32 %v1203_v63, %v1177_v10  ;;  %v1031_v5 = vsel %vm627_vm2, %v6215_v7, %v6254_v14  ;;  %v2585_v7 = vpop.f32.mrf.mxu1  ;;  %v3299_v55 = vld [vmem:[%s5944_s5 + $0x18] sm:$0xff] }
 0x4de   : > { %2920 = vmatpush.msra.mxu1 %v1375_v53  ;;  %2957 = vmatpush.msrb.mxu0 %v1599_v32  ;;  %v2528_v36 = vadd.f32 %v2527_v37, %v2499_v54  ;;  %v1028_v53 = vsel %vm627_vm2, %v6218_v2, %v6257_v58  ;;  %v3295_v2 = vld [vmem:[%s5944_s5 + $0x28] sm:$0xff] }
 0x4df   : > { %2902 = vmatpush.msra.mxu3 %v2172_v49  ;;  %2989 = vmatpush.msra.mxu2 %v2173_v11 }
 0x4e0   : > { %2921 = vmatpush.msra.mxu1 %v1369_v9  ;;  %2958 = vmatpush.msrb.mxu0 %v1593_v20  ;;  %v2562_v48 = vpop.f32.mrf.mxu0  ;;  %v2586_v20 = vadd.f32 %v2585_v7, %v5784_v50 }
 0x4e1   : > { %2851 = vmatmul.f32.gmra.mxu0 %v5215_v8  ;;  %v2557_v8 = vadd.f32 %v5708_v33, %v2528_v36  ;;  %v6253_v33 = vld [vmem:[#allocation63_spill] sm:$0xff] }
 0x4e2   : > { %3177 = vmatmul.msk.f32.vlgmr.msra.gmra.mxu2 %vm2468_vm0, %v5089_v6  ;;  %2922 = vmatpush.msra.mxu1 %v1363_v31  ;;  %v1178_v6 = vsel %vm638_vm1, %v6212_v40, %v6251_v12  ;;  %v2530_v40 = vpop.f32.mrf.mxu3  ;;  %v1176_v19 = vsel %vm638_vm1, %v6214_v27, %v6253_v33  ;;  %v1055_v27 = vperm.slane %v5588_v62, 0  ;;  %v3294_v62 = vld [vmem:[%s5944_s5 + $0x10] sm:$0xff]  ;;  %v3298_v31 = vld [vmem:[%s5944_s5 + $0x40] sm:$0xff] }
 0x4e3   : > { %2959 = vmatpush.msrb.mxu0 %v1587_v17  ;;  %3003 = vst [vmem:[%s5804_s17] sm:$0xff] %v2557_v8  ;;  %v1221_v39 = vmul.f32 %v1203_v63, %v1178_v6  ;;  %v5819_v3 = vpop.permute.xlu1 %2455  ;;  %v1209_v46 = vmul.f32 %v1203_v63, %v1176_v19  ;;  %v3301_v12 = vld [vmem:[%s5944_s5 + $0x30] sm:$0xff] }
 0x4e4   : > { %2923 = vmatpush.msra.mxu1 %v1357_v18  ;;  %v2501_v41 = vpop.f32.mrf.mxu2  ;;  %v1079_v57 = vmul.f32 %v1055_v27, %v1031_v5  ;;  %v1073_v42 = vmul.f32 %v1055_v27, %v1030_v29  ;;  %v1061_v49 = vmul.f32 %v1055_v27, %v1028_v53  ;;  %v3300_v18 = vld [vmem:[%s5944_s5 + $0x38] sm:$0xff] }
 0x4e5   : > { %2960 = vmatpush.msrb.mxu0 %v1581_v52  ;;  %3171 = vmatmul.msk.f32.gmra.mxu1 %vm2468_vm0, %v5179_v35 }
 0x4e6   : > { %2883 = vmatmul.f32.gmra.mxu3 %v5225_v59  ;;  %2924 = vmatpush.msra.mxu1 %v1227_v45  ;;  %v2502_v59 = vadd.f32 %v2501_v41, %v5819_v3  ;;  %v3302_v45 = vld [vmem:[%s5944_s5 + $0x50] sm:$0xff] }
 0x4e8   : > { %2925 = vmatpush.msra.mxu1 %v1221_v39  ;;  %v2531_v13 = vadd.f32 %v2530_v40, %v2502_v59  ;;  %v2565_v61 = vpop.f32.mrf.mxu0 }
 0x4e9   : > { %2854 = vmatmul.f32.gmra.mxu0 %v5255_v15 }
 0x4ea   : > { %3178 = vmatmul.msk.f32.gmra.mxu2 %vm2468_vm0, %v5125_v21  ;;  %2926 = vmatpush.msra.mxu1 %v1215_v28  ;;  %v1029_v21 = vsel %vm627_vm2, %v6217_v38, %v6256_v1  ;;  %v2560_v34 = vadd.f32 %v5766_v4, %v2531_v13  ;;  %v2533_v32 = vpop.f32.mrf.mxu3 }
 0x4eb   : > { %v5854_v38 = vpop.permute.xlu0 %2460  ;;  %v1067_v23 = vmul.f32 %v1055_v27, %v1029_v21 }
 0x4ec   : > { %2927 = vmatpush.msra.mxu1 %v1209_v46  ;;  %3005 = vst [vmem:[%s5804_s17 + $0x10] sm:$0xff] %v2560_v34  ;;  %v2504_v37 = vpop.f32.mrf.mxu2 }
 0x4ed   : > { %3172 = vmatmul.msk.f32.gmra.mxu1 %vm2468_vm0, %v5220_v44  ;;  %v2505_v4 = vadd.f32 %v2504_v37, %v5854_v38 }
 0x4ee   : > { %3173 = vmatmul.msk.f32.vlgmr.msra.gmra.mxu3 %vm2468_vm0, %v3294_v62  ;;  %2928 = vmatpush.msra.mxu1 %v1079_v57 }
 0x4ef   : > { %v2534_v11 = vadd.f32 %v2533_v32, %v2505_v4 }
 0x4f0   : > { %2929 = vmatpush.msra.mxu1 %v1073_v42  ;;  %v2614_v22 = vpop.f32.mrf.mxu0 }
 0x4f1   : > { %2961 = vmatmul.f32.vlgmr.msrb.gmra.mxu0 %v5763_v26  ;;  %v3296_v26 = vld [vmem:[%s5944_s5] sm:$0xff]  ;;  %v2563_v47 = vadd.f32 %v2562_v48, %v2534_v11  ;;  %v2615_v24 = vadd.f32 %v2614_v22, %v2586_v20 }
 0x4f2   : > { %3179 = vmatmul.msk.f32.gmra.mxu2 %vm2468_vm0, %v5179_v35  ;;  %2930 = vmatpush.msra.mxu1 %v1067_v23  ;;  %v2588_v35 = vpop.f32.mrf.mxu1  ;;  %v2536_v25 = vpop.f32.mrf.mxu3 }
 0x4f3   : > { %3007 = vst [vmem:[%s5804_s17 + $0x20] sm:$0xff] %v2563_v47  ;;  %v2589_v52 = vadd.f32 %v2588_v35, %v5819_v3 }
 0x4f4   : > { %2931 = vmatpush.msra.mxu1 %v1061_v49  ;;  %v2507_v9 = vpop.f32.mrf.mxu2  ;;  %v5874_v54 = vpop.permute.xlu2 %2465 }
 0x4f5   : > { %2932 = vmatmul.f32.vlgmr.msra.gmra.mxu1 %v3296_v26  ;;  %v2508_v43 = vadd.f32 %v2507_v9, %v5874_v54 }
 0x4f6   : > { %3174 = vmatmul.msk.f32.gmra.mxu3 %vm2468_vm0, %v3295_v2 }
 0x4f7   : > { %v2537_v17 = vadd.f32 %v2536_v25, %v2508_v43 }
 0x4f8   : > { %v2617_v60 = vpop.f32.mrf.mxu0 }
 0x4f9   : > { %2964 = vmatmul.f32.gmra.mxu0 %v3297_v0  ;;  %v2566_v36 = vadd.f32 %v2565_v61, %v2537_v17  ;;  %v2618_v6 = vadd.f32 %v2617_v60, %v2589_v52 }
 0x4fa   : > { %3180 = vmatmul.msk.f32.gmra.mxu2 %vm2468_vm0, %v5220_v44  ;;  %v2591_v51 = vpop.f32.mrf.mxu1  ;;  %v2672_v8 = vpop.f32.mrf.mxu3 }
 0x4fb   : > { %3009 = vst [vmem:[%s5804_s17 + $0x30] sm:$0xff] %v2566_v36  ;;  %v2592_v39 = vadd.f32 %v2591_v51, %v5854_v38  ;;  %v2673_v59 = vadd.f32 %v2672_v8, %v5784_v50 }
 0x4fd   : > { %2935 = vmatmul.f32.gmra.mxu1 %v3299_v55 }
 0x4fe   : > { %3175 = vmatmul.msk.f32.gmra.mxu3 %vm2468_vm0, %v3298_v31 }
 0x500   : > { %v2620_v48 = vpop.f32.mrf.mxu0 }
 0x501   : > { %2967 = vmatmul.f32.gmra.mxu0 %v3300_v18  ;;  %v2643_v30 = vpop.f32.mrf.mxu2 }
 0x502   : > { %v2644_v63 = vadd.f32 %v2643_v30, %v2615_v24  ;;  %v2594_v56 = vpop.f32.mrf.mxu1  ;;  %v2675_v33 = vpop.f32.mrf.mxu3 }
 0x503   : > { %v2595_v28 = vadd.f32 %v2594_v56, %v5874_v54  ;;  %v2676_v61 = vadd.f32 %v2675_v33, %v5819_v3 }
 0x504   : > { %3004 = vst [vmem:[%s5804_s17 + $0x8] sm:$0xff] %v2644_v63 }
 0x505   : > { %2938 = vmatmul.f32.gmra.mxu1 %v3301_v12 }
 0x506   : > { %3176 = vmatmul.msk.f32.gmra.mxu3 %vm2468_vm0, %v5220_v44  ;;  %v2621_v44 = vadd.f32 %v2620_v48, %v2592_v39 }
 0x508   : > { %v2623_v41 = vpop.f32.mrf.mxu0 }
 0x509   : > { %2970 = vmatmul.f32.gmra.mxu0 %v3302_v45  ;;  %v2646_v10 = vpop.f32.mrf.mxu2  ;;  %v2624_v46 = vadd.f32 %v2623_v41, %v2595_v28 }
 0x50a   : > { %v2647_v40 = vadd.f32 %v2646_v10, %v2618_v6  ;;  %v2701_v5 = vpop.f32.mrf.mxu1  ;;  %v2678_v13 = vpop.f32.mrf.mxu3 }
 0x50b   : > { %v2702_v27 = vadd.f32 %v2701_v5, %v2673_v59  ;;  %v2679_v58 = vadd.f32 %v2678_v13, %v5854_v38 }
 0x50c   : > { %3006 = vst [vmem:[%s5804_s17 + $0x18] sm:$0xff] %v2647_v40 }
 0x50d   : > { %2941 = vmatmul.f32.gmra.mxu1 %v5255_v15 }
 0x511   : > { %v2649_v19 = vpop.f32.mrf.mxu2 }
 0x512   : > { %v2650_v14 = vadd.f32 %v2649_v19, %v2621_v44  ;;  %v2704_v57 = vpop.f32.mrf.mxu1  ;;  %v2681_v62 = vpop.f32.mrf.mxu3 }
 0x513   : > { %v2705_v1 = vadd.f32 %v2704_v57, %v2676_v61  ;;  %v2682_v37 = vadd.f32 %v2681_v62, %v5874_v54 }
 0x514   : > { %3008 = vst [vmem:[%s5804_s17 + $0x28] sm:$0xff] %v2650_v14 }
 0x519   : > { %v2652_v16 = vpop.f32.mrf.mxu2 }
 0x51a   : > { %v2653_v29 = vadd.f32 %v2652_v16, %v2624_v46  ;;  %v2707_v42 = vpop.f32.mrf.mxu1 }
 0x51b   : > { %v2730_v15 = vpop.f32.mrf.mxu0  ;;  %v2708_v53 = vadd.f32 %v2707_v42, %v2679_v58 }
 0x51c   : > { %3010 = vst [vmem:[%s5804_s17 + $0x38] sm:$0xff] %v2653_v29  ;;  %v2731_v7 = vadd.f32 %v2730_v15, %v2702_v27 }
 0x51e   : > { %3181 = vst [vmem:[%s5804_s17 + $0x40] sm:$0xff] %v2731_v7 }
 0x521   : > { %v2788_v23 = vpop.f32.mrf.mxu3 }
 0x522   : > { %v2710_v49 = vpop.f32.mrf.mxu1 }
 0x523   : > { %v2733_v21 = vpop.f32.mrf.mxu0  ;;  %v2711_v11 = vadd.f32 %v2710_v49, %v2682_v37 }
 0x524   : > { %v2734_v34 = vadd.f32 %v2733_v21, %v2705_v1 }
 0x526   : > { %3183 = vst [vmem:[%s5804_s17 + $0x50] sm:$0xff] %v2734_v34 }
 0x529   : > { %v2791_v26 = vpop.f32.mrf.mxu3 }
 0x52b   : > { %v2736_v32 = vpop.f32.mrf.mxu0 }
 0x52c   : > { %v2737_v4 = vadd.f32 %v2736_v32, %v2708_v53 }
 0x52e   : > { %3185 = vst [vmem:[%s5804_s17 + $0x60] sm:$0xff] %v2737_v4 }
 0x52f   : > { %v2759_v47 = vpop.f32.mrf.mxu2 }
 0x530   : > { %v2760_v20 = vadd.f32 %v2759_v47, %v5784_v50 }
 0x531   : > { %v2794_v35 = vpop.f32.mrf.mxu3 }
 0x532   : > { %v2789_v43 = vadd.f32 %v2788_v23, %v2760_v20 }
 0x533   : > { %v2739_v22 = vpop.f32.mrf.mxu0 }
 0x534   : > { %v2740_v2 = vadd.f32 %v2739_v22, %v2711_v11 }
 0x536   : > { %3187 = vst [vmem:[%s5804_s17 + $0x70] sm:$0xff] %v2740_v2 }
 0x537   : > { %v2762_v9 = vpop.f32.mrf.mxu2 }
 0x538   : > { %v2763_v60 = vadd.f32 %v2762_v9, %v5819_v3 }
 0x53a   : > { %v2792_v51 = vadd.f32 %v2791_v26, %v2763_v60 }
 0x53c   : > { %v2797_v25 = vpop.f32.mrf.mxu3 }
 0x53f   : > { %v2765_v17 = vpop.f32.mrf.mxu2 }
 0x540   : > { %v2766_v63 = vadd.f32 %v2765_v17, %v5854_v38 }
 0x541   : > { %v2846_v0 = vpop.f32.mrf.mxu0 }
 0x542   : > { %v2795_v8 = vadd.f32 %v2794_v35, %v2766_v63  ;;  %v2847_v28 = vadd.f32 %v2846_v0, %v5784_v50 }
 0x549   : > { %v2768_v52 = vpop.f32.mrf.mxu2 }
 0x54a   : > { %v2769_v56 = vadd.f32 %v2768_v52, %v5874_v54 }
 0x54c   : > { %v2798_v44 = vadd.f32 %v2797_v25, %v2769_v56 }
 0x54d   : > { %v2849_v24 = vpop.f32.mrf.mxu0 }
 0x54e   : > { %v2850_v16 = vadd.f32 %v2849_v24, %v5819_v3 }
 0x551   : > { %v2817_v31 = vpop.f32.mrf.mxu1 }
 0x552   : > { %v2818_v55 = vadd.f32 %v2817_v31, %v2789_v43 }
 0x554   : > { %3182 = vst [vmem:[%s5804_s17 + $0x48] sm:$0xff] %v2818_v55 }
 0x558   : > { %v2878_v36 = vpop.f32.mrf.mxu3 }
 0x559   : > { %v2879_v61 = vadd.f32 %v2878_v36, %v2850_v16 }
 0x55a   : > { %v2820_v18 = vpop.f32.mrf.mxu1 }
 0x55b   : > { %v2821_v30 = vadd.f32 %v2820_v18, %v2792_v51 }
 0x55d   : > { %3184 = vst [vmem:[%s5804_s17 + $0x58] sm:$0xff] %v2821_v30  ;;  %v2875_v10 = vpop.f32.mrf.mxu2 }
 0x55e   : > { %v2852_v12 = vpop.f32.mrf.mxu0  ;;  %v2876_v5 = vadd.f32 %v2875_v10, %v2847_v28 }
 0x55f   : > { %v2853_v34 = vadd.f32 %v2852_v12, %v5854_v38 }
 0x560   : > { %v2881_v6 = vpop.f32.mrf.mxu3 }
 0x561   : > { %v2882_v53 = vadd.f32 %v2881_v6, %v2853_v34 }
 0x562   : > { %v2823_v48 = vpop.f32.mrf.mxu1 }
 0x563   : > { %v2824_v45 = vadd.f32 %v2823_v48, %v2795_v8 }
 0x565   : > { %3186 = vst [vmem:[%s5804_s17 + $0x68] sm:$0xff] %v2824_v45  ;;  %v2991_v14 = vpop.f32.mrf.mxu2 }
 0x566   : > { %v2855_v39 = vpop.f32.mrf.mxu0 }
 0x567   : > { %v2856_v11 = vadd.f32 %v2855_v39, %v5874_v54 }
 0x569   : > { %v2884_v40 = vpop.f32.mrf.mxu3 }
 0x56a   : > { %v2826_v33 = vpop.f32.mrf.mxu1  ;;  %v2885_v26 = vadd.f32 %v2884_v40, %v2856_v11 }
 0x56b   : > { %v2827_v19 = vadd.f32 %v2826_v33, %v2798_v44 }
 0x56d   : > { %3188 = vst [vmem:[%s5804_s17 + $0x78] sm:$0xff] %v2827_v19  ;;  %v2994_v1 = vpop.f32.mrf.mxu2 }
 0x56e   : > { %v2962_v41 = vpop.f32.mrf.mxu0 }
 0x571   : > { %v2904_v59 = vpop.f32.mrf.mxu3 }
 0x572   : > { %v2905_v46 = vadd.f32 %v2904_v59, %v2876_v5  ;;  %v2933_v27 = vpop.f32.mrf.mxu1 }
 0x573   : > { %v2934_v29 = vadd.f32 %v2933_v27, %v5784_v50 }
 0x574   : > { %3189 = vst [vmem:[%s5804_s17 + $0x80] sm:$0xff] %v2905_v46 }
 0x575   : > { %v2963_v13 = vadd.f32 %v2962_v41, %v2934_v29  ;;  %v2997_v49 = vpop.f32.mrf.mxu2 }
 0x576   : > { %v2965_v15 = vpop.f32.mrf.mxu0 }
 0x577   : > { %v2992_v7 = vadd.f32 %v2991_v14, %v2963_v13 }
 0x579   : > { %v2907_v57 = vpop.f32.mrf.mxu3  ;;  %3190 = vst [vmem:[%s5804_s17 + $0x88] sm:$0xff] %v2992_v7 }
 0x57a   : > { %v2908_v21 = vadd.f32 %v2907_v57, %v2879_v61  ;;  %v2936_v62 = vpop.f32.mrf.mxu1 }
 0x57b   : > { %v2937_v42 = vadd.f32 %v2936_v62, %v5819_v3 }
 0x57c   : > { %3191 = vst [vmem:[%s5804_s17 + $0x90] sm:$0xff] %v2908_v21 }
 0x57d   : > { %v2966_v58 = vadd.f32 %v2965_v15, %v2937_v42  ;;  %v3000_v25 = vpop.f32.mrf.mxu2 }
 0x57e   : > { %v2968_v32 = vpop.f32.mrf.mxu0 }
 0x57f   : > { %v2995_v50 = vadd.f32 %v2994_v1, %v2966_v58 }
 0x581   : > { %v2910_v23 = vpop.f32.mrf.mxu3  ;;  %3192 = vst [vmem:[%s5804_s17 + $0x98] sm:$0xff] %v2995_v50 }
 0x582   : > { %v2911_v37 = vadd.f32 %v2910_v23, %v2882_v53  ;;  %v2939_v4 = vpop.f32.mrf.mxu1 }
 0x583   : > { %v2940_v22 = vadd.f32 %v2939_v4, %v5854_v38 }
 0x584   : > { %3193 = vst [vmem:[%s5804_s17 + $0xa0] sm:$0xff] %v2911_v37 }
 0x585   : > { %v2969_v2 = vadd.f32 %v2968_v32, %v2940_v22 }
 0x586   : > { %v2971_v0 = vpop.f32.mrf.mxu0 }
 0x587   : > { %v2998_v3 = vadd.f32 %v2997_v49, %v2969_v2 }
 0x589   : > { %v2913_v47 = vpop.f32.mrf.mxu3  ;;  %3194 = vst [vmem:[%s5804_s17 + $0xa8] sm:$0xff] %v2998_v3 }
 0x58a   : > { %v2914_v35 = vadd.f32 %v2913_v47, %v2885_v26  ;;  %v2942_v9 = vpop.f32.mrf.mxu1 }
 0x58b   : > { %v2943_v20 = vadd.f32 %v2942_v9, %v5874_v54 }
 0x58c   : > { %3195 = vst [vmem:[%s5804_s17 + $0xb0] sm:$0xff] %v2914_v35 }
 0x58d   : > { %v2972_v43 = vadd.f32 %v2971_v0, %v2943_v20 }
 0x58f   : > { %v3001_v31 = vadd.f32 %v3000_v25, %v2972_v43 }
 0x591   : > { %3196 = vst [vmem:[%s5804_s17 + $0xb8] sm:$0xff] %v3001_v31 }
 0x592 PF: > { %s19_s24 = sadd.s32 1, %s3347_s24  }
 0x593   : > { %p16_p7 = scmp.ge.s32.totalorder %s19_s24, 4  }
 0x595   :  { %18 = sbr.rel (!%p16_p7) target bundleno = 2 (0x2), region = 91 }
 0x59a   :  { %3050 = vsyncpa [#allocation5], 1 }
 0x59b   :  { %3052 = vsyncpa [#allocation5 + $0x1], 1 }
 0x59c   :  { %3053 = vsyncpa [#allocation7], 1 }

</bundles_post_ra>
